<compile_context>
chip_gen: v6e
topology: v6e:2x2x1
jax: 0.10.0
libtpu: 0.0.40
codegen_flags: <defaults>
</compile_context>

<pallas_src>
import jax
import jax.numpy as jnp
from jax.experimental import pallas as pl
from jax.experimental.pallas import tpu as pltpu


def _vae_decoder_kernel(mu_ref, logvar_ref, eps_ref,
                        w1_ref, b1_ref, w2_ref, b2_ref,
                        recon_ref):
    # Reparameterize in f32 (VPU + EUP exp). Keep f32: v5e has no bf16 VPU/EUP.
    std = jnp.exp(0.5 * logvar_ref[...])
    z = mu_ref[...] + eps_ref[...] * std

    # Linear(768 -> 1024) + ReLU. bf16 MXU operands, f32 accumulation.
    h = jnp.dot(z.astype(jnp.bfloat16), w1_ref[...],
                preferred_element_type=jnp.float32)
    h = jnp.maximum(h + b1_ref[...], 0.0)

    # Linear(1024 -> 768). bf16 MXU operands, f32 accumulation.
    out = jnp.dot(h.astype(jnp.bfloat16), w2_ref[...],
                  preferred_element_type=jnp.float32)
    recon_ref[...] = (out + b2_ref[...]).astype(recon_ref.dtype)


def _pick_tile_s(half):
    # Largest sublane-aligned tile that divides the mu/log_var seq length.
    # Real BERT scale half=384 -> 128; toy scale half=8 -> 8.
    for t in (256, 128, 64, 32, 16, 8):
        if half % t == 0:
            return t
    return half


def vae_forward(last_hidden_state, eps, w1, b1, w2, b2):
    """Reproduces VAE.forward given a precomputed encoder output.

    last_hidden_state: [B, S, D] f32
    eps:               [B, S//2, D] f32   (randn_like(std))
    w1: [D, H], b1: [H], w2: [H, D], b2: [D]
    Returns (reconstructed [B, S//2, D], last_hidden_state [B, S, D]).
    """
    B, S, D = last_hidden_state.shape
    assert S % 2 == 0, "seq length must be even to split into (mu, log_var)"
    half = S // 2
    H = w1.shape[1]
    assert eps.shape == (B, half, D)

    tile_s = _pick_tile_s(half)
    n_s_blocks = half // tile_s

    # bf16 weights: MXU-native operand dtype on v5e/v6e/v7x.
    w1_b = w1.astype(jnp.bfloat16)
    w2_b = w2.astype(jnp.bfloat16)
    b1_2 = b1.reshape(1, H).astype(jnp.float32)
    b2_2 = b2.reshape(1, D).astype(jnp.float32)

    M = B * half
    cost = pl.CostEstimate(
        flops=4 * M * D * H,                     # two matmuls: 2*M*D*H each
        transcendentals=M * D,                   # exp in reparameterize
        bytes_accessed=(3 * M * D + M * D) * 4   # mu/logvar/eps in + recon out (f32)
        + (D * H + H * D) * 2                    # bf16 weights
        + (H + D) * 4,                           # biases
    )

    # Batch dim squeezed out of the kernel view -> kernel sees (tile_s, D).
    act_block = (None, tile_s, D)

    recon = pl.pallas_call(
        _vae_decoder_kernel,
        out_shape=jax.ShapeDtypeStruct((B, half, D), jnp.float32),
        grid=(B, n_s_blocks),
        in_specs=[
            # mu: first seq half, read straight from last_hidden_state.
            pl.BlockSpec(act_block, lambda b, s: (b, s, 0)),
            # log_var: second seq half, selected via block-index offset.
            pl.BlockSpec(act_block, lambda b, s, _n=n_s_blocks: (b, s + _n, 0)),
            # eps.
            pl.BlockSpec(act_block, lambda b, s: (b, s, 0)),
            # Weights/biases: grid-invariant -> stay VMEM-resident across steps.
            pl.BlockSpec((D, H), lambda b, s: (0, 0)),
            pl.BlockSpec((1, H), lambda b, s: (0, 0)),
            pl.BlockSpec((H, D), lambda b, s: (0, 0)),
            pl.BlockSpec((1, D), lambda b, s: (0, 0)),
        ],
        out_specs=pl.BlockSpec(act_block, lambda b, s: (b, s, 0)),
        compiler_params=pltpu.CompilerParams(
            dimension_semantics=("parallel", "parallel"),
            vmem_limit_bytes=40 << 20,
        ),
        cost_estimate=cost,
    )(last_hidden_state, last_hidden_state, eps, w1_b, b1_2, w2_b, b2_2)

    return recon, last_hidden_state


if __name__ == "__main__":
    key = jax.random.PRNGKey(0)
    k_h, k_eps, k_w1, k_b1, k_w2, k_b2 = jax.random.split(key, 6)

    # Small shapes: batch=2, seq=16 (split 8/8), hidden=768, decoder width=1024.
    B, S, D, H = 2, 16, 768, 1024
    half = S // 2

    last_hidden_state = jax.random.normal(k_h, (B, S, D), dtype=jnp.float32)
    eps = jax.random.normal(k_eps, (B, half, D), dtype=jnp.float32)

    # Deterministic Linear params (PyTorch-style uniform(-1/sqrt(fan_in), ...)).
    lim1 = 1.0 / jnp.sqrt(jnp.float32(D))
    lim2 = 1.0 / jnp.sqrt(jnp.float32(H))
    w1 = jax.random.uniform(k_w1, (D, H), jnp.float32, -lim1, lim1)
    b1 = jax.random.uniform(k_b1, (H,), jnp.float32, -lim1, lim1)
    w2 = jax.random.uniform(k_w2, (H, D), jnp.float32, -lim2, lim2)
    b2 = jax.random.uniform(k_b2, (D,), jnp.float32, -lim2, lim2)

    recon, hidden = vae_forward(last_hidden_state, eps, w1, b1, w2, b2)
    jax.block_until_ready((recon, hidden))

    # Same-precision pure-JAX reference (bf16 MXU operands, f32 accumulation).
    mu = last_hidden_state[:, :half, :]
    lv = last_hidden_state[:, half:, :]
    z_ref = (mu + eps * jnp.exp(0.5 * lv)).reshape(B * half, D)
    h_ref = jnp.dot(z_ref.astype(jnp.bfloat16), w1.astype(jnp.bfloat16),
                    preferred_element_type=jnp.float32) + b1
    h_ref = jnp.maximum(h_ref, 0.0)
    ref = jnp.dot(h_ref.astype(jnp.bfloat16), w2.astype(jnp.bfloat16),
                  preferred_element_type=jnp.float32) + b2
    ref = ref.reshape(B, half, D)

    assert recon.shape == (B, half, D)
    assert hidden.shape == (B, S, D)
    assert jnp.allclose(recon, ref, atol=2e-3, rtol=2e-3), \
        float(jnp.max(jnp.abs(recon - ref)))

    print("KERNEL_OK")
</pallas_src>

<mosaic_0001>
module attributes {stable_mosaic.version = 11 : i64} {
  func.func @_vae_decoder_kernel(%arg0: i32, %arg1: i32, %arg2: memref<1x8x768xf32, #tpu.memory_space<vmem>>, %arg3: memref<1x8x768xf32, #tpu.memory_space<vmem>>, %arg4: memref<1x8x768xf32, #tpu.memory_space<vmem>>, %arg5: memref<768x1024xbf16, #tpu.memory_space<vmem>>, %arg6: memref<1x1024xf32, #tpu.memory_space<vmem>>, %arg7: memref<1024x768xbf16, #tpu.memory_space<vmem>>, %arg8: memref<1x768xf32, #tpu.memory_space<vmem>>, %arg9: memref<1x8x768xf32, #tpu.memory_space<vmem>>) attributes {dimension_semantics = [#tpu.dimension_semantics<parallel>, #tpu.dimension_semantics<parallel>], iteration_bounds = array<i64: 2, 1>, scalar_prefetch = 0 : i64, scratch_operands = 0 : i64, tpu.core_type = #tpu.core_type<tc>, window_params = [{transform_indices = @transform_0, window_bounds = array<i64: 1, 8, 768>}, {transform_indices = @transform_1, window_bounds = array<i64: 1, 8, 768>}, {transform_indices = @transform_2, window_bounds = array<i64: 1, 8, 768>}, {pipeline_mode = #tpu.pipeline_mode<synchronous>, transform_indices = @transform_3, window_bounds = array<i64: 768, 1024>}, {pipeline_mode = #tpu.pipeline_mode<synchronous>, transform_indices = @transform_4, window_bounds = array<i64: 1, 1024>}, {pipeline_mode = #tpu.pipeline_mode<synchronous>, transform_indices = @transform_5, window_bounds = array<i64: 1024, 768>}, {pipeline_mode = #tpu.pipeline_mode<synchronous>, transform_indices = @transform_6, window_bounds = array<i64: 1, 768>}, {transform_indices = @transform_7, window_bounds = array<i64: 1, 8, 768>}]} {
    %c0 = arith.constant 0 : index
    %c0_0 = arith.constant 0 : index
    %c0_1 = arith.constant 0 : index
    %0 = vector.load %arg3[%c0, %c0_0, %c0_1] : memref<1x8x768xf32, #tpu.memory_space<vmem>>, vector<1x8x768xf32>
    %1 = vector.shape_cast %0 : vector<1x8x768xf32> to vector<8x768xf32>
    %cst = arith.constant 5.000000e-01 : f32
    %2 = vector.broadcast %cst : f32 to vector<8x768xf32>
    %3 = arith.mulf %2, %1 : vector<8x768xf32>
    %4 = math.exp %3 : vector<8x768xf32>
    %c0_2 = arith.constant 0 : index
    %c0_3 = arith.constant 0 : index
    %c0_4 = arith.constant 0 : index
    %5 = vector.load %arg2[%c0_2, %c0_3, %c0_4] : memref<1x8x768xf32, #tpu.memory_space<vmem>>, vector<1x8x768xf32>
    %6 = vector.shape_cast %5 : vector<1x8x768xf32> to vector<8x768xf32>
    %c0_5 = arith.constant 0 : index
    %c0_6 = arith.constant 0 : index
    %c0_7 = arith.constant 0 : index
    %7 = vector.load %arg4[%c0_5, %c0_6, %c0_7] : memref<1x8x768xf32, #tpu.memory_space<vmem>>, vector<1x8x768xf32>
    %8 = vector.shape_cast %7 : vector<1x8x768xf32> to vector<8x768xf32>
    %9 = arith.mulf %8, %4 : vector<8x768xf32>
    %10 = arith.addf %6, %9 : vector<8x768xf32>
    %11 = arith.truncf %10 : vector<8x768xf32> to vector<8x768xbf16>
    %c0_8 = arith.constant 0 : index
    %c0_9 = arith.constant 0 : index
    %12 = vector.load %arg5[%c0_8, %c0_9] : memref<768x1024xbf16, #tpu.memory_space<vmem>>, vector<768x1024xbf16>
    %cst_10 = arith.constant dense<0.000000e+00> : vector<8x1024xf32>
    %13 = tpu.matmul %11, %12, %cst_10 {dimension_numbers = #tpu.dot_dimension_numbers<[1], [0], [0], [1], [0, 0, 1, 1], [], []>} : vector<8x768xbf16>, vector<768x1024xbf16>, vector<8x1024xf32> -> vector<8x1024xf32>
    %c0_11 = arith.constant 0 : index
    %c0_12 = arith.constant 0 : index
    %14 = vector.load %arg6[%c0_11, %c0_12] : memref<1x1024xf32, #tpu.memory_space<vmem>>, vector<1x1024xf32>
    %15 = vector.broadcast %14 : vector<1x1024xf32> to vector<8x1024xf32>
    %16 = arith.addf %13, %15 : vector<8x1024xf32>
    %cst_13 = arith.constant 0.000000e+00 : f32
    %17 = vector.broadcast %cst_13 : f32 to vector<8x1024xf32>
    %18 = arith.maximumf %16, %17 : vector<8x1024xf32>
    %19 = arith.truncf %18 : vector<8x1024xf32> to vector<8x1024xbf16>
    %c0_14 = arith.constant 0 : index
    %c0_15 = arith.constant 0 : index
    %20 = vector.load %arg7[%c0_14, %c0_15] : memref<1024x768xbf16, #tpu.memory_space<vmem>>, vector<1024x768xbf16>
    %cst_16 = arith.constant dense<0.000000e+00> : vector<8x768xf32>
    %21 = tpu.matmul %19, %20, %cst_16 {dimension_numbers = #tpu.dot_dimension_numbers<[1], [0], [0], [1], [0, 0, 1, 1], [], []>} : vector<8x1024xbf16>, vector<1024x768xbf16>, vector<8x768xf32> -> vector<8x768xf32>
    %c0_17 = arith.constant 0 : index
    %c0_18 = arith.constant 0 : index
    %22 = vector.load %arg8[%c0_17, %c0_18] : memref<1x768xf32, #tpu.memory_space<vmem>>, vector<1x768xf32>
    %23 = vector.broadcast %22 : vector<1x768xf32> to vector<8x768xf32>
    %24 = arith.addf %21, %23 : vector<8x768xf32>
    %c0_19 = arith.constant 0 : index
    %c0_20 = arith.constant 0 : index
    %c0_21 = arith.constant 0 : index
    %25 = vector.load %arg9[%c0_19, %c0_20, %c0_21] : memref<1x8x768xf32, #tpu.memory_space<vmem>>, vector<1x8x768xf32>
    %26 = vector.shape_cast %25 : vector<1x8x768xf32> to vector<8x768xf32>
    %27 = vector.shape_cast %24 : vector<8x768xf32> to vector<1x8x768xf32>
    tpu.vector_store %arg9[%c0_19, %c0_20, %c0_21], %27 {strides = array<i32>} : memref<1x8x768xf32, #tpu.memory_space<vmem>>, vector<1x8x768xf32>,
    return
  }
  func.func @transform_0(%arg0: i32, %arg1: i32) -> (i32, i32, i32) {
    %c0_i32 = arith.constant 0 : i32
    %c0_i32_0 = arith.constant 0 : i32
    return %arg0, %arg1, %c0_i32 : i32, i32, i32
  }
  func.func @transform_1(%arg0: i32, %arg1: i32) -> (i32, i32, i32) {
    %c1_i32 = arith.constant 1 : i32
    %0 = arith.addi %arg1, %c1_i32 : i32
    %c0_i32 = arith.constant 0 : i32
    %c0_i32_0 = arith.constant 0 : i32
    return %arg0, %0, %c0_i32 : i32, i32, i32
  }
  func.func @transform_2(%arg0: i32, %arg1: i32) -> (i32, i32, i32) {
    %c0_i32 = arith.constant 0 : i32
    %c0_i32_0 = arith.constant 0 : i32
    return %arg0, %arg1, %c0_i32 : i32, i32, i32
  }
  func.func @transform_3(%arg0: i32, %arg1: i32) -> (i32, i32) {
    %c0_i32 = arith.constant 0 : i32
    %c0_i32_0 = arith.constant 0 : i32
    %c0_i32_1 = arith.constant 0 : i32
    return %c0_i32, %c0_i32_0 : i32, i32
  }
  func.func @transform_4(%arg0: i32, %arg1: i32) -> (i32, i32) {
    %c0_i32 = arith.constant 0 : i32
    %c0_i32_0 = arith.constant 0 : i32
    %c0_i32_1 = arith.constant 0 : i32
    return %c0_i32, %c0_i32_0 : i32, i32
  }
  func.func @transform_5(%arg0: i32, %arg1: i32) -> (i32, i32) {
    %c0_i32 = arith.constant 0 : i32
    %c0_i32_0 = arith.constant 0 : i32
    %c0_i32_1 = arith.constant 0 : i32
    return %c0_i32, %c0_i32_0 : i32, i32
  }
  func.func @transform_6(%arg0: i32, %arg1: i32) -> (i32, i32) {
    %c0_i32 = arith.constant 0 : i32
    %c0_i32_0 = arith.constant 0 : i32
    %c0_i32_1 = arith.constant 0 : i32
    return %c0_i32, %c0_i32_0 : i32, i32
  }
  func.func @transform_7(%arg0: i32, %arg1: i32) -> (i32, i32, i32) {
    %c0_i32 = arith.constant 0 : i32
    %c0_i32_0 = arith.constant 0 : i32
    return %arg0, %arg1, %c0_i32 : i32, i32, i32
  }
}

</mosaic_0001>

<bundles_post_ra>
// kernel: tpu_custom_call.1
= control target key start
LH: loop header
LB: loop body
LE: loop exit
PB: predicated region body
PF: predicated region fallthrough
CT: control target
= control target key end

     0   :  { %s8694_s0 = inlined_call_operand.hbm [shape: f32[2,16,768], index: 0, kind: input, shape index: {}]   ;;  %s8695_s1 = inlined_call_operand.hbm [shape: f32[2,16,768], index: 1, kind: input, shape index: {}]   ;;  %s8696_s2 = inlined_call_operand.hbm [shape: f32[2,8,768], index: 2, kind: input, shape index: {}]   ;;  %s8697_s3 = inlined_call_operand.hbm [shape: bf16[768,1024], index: 3, kind: input, shape index: {}]   ;;  %s8698_s4 = inlined_call_operand.hbm [shape: f32[1,1024], index: 4, kind: input, shape index: {}]   ;;  %s8699_s5 = inlined_call_operand.hbm [shape: bf16[1024,768], index: 5, kind: input, shape index: {}]   ;;  %s8700_s6 = inlined_call_operand.hbm [shape: f32[1,768], index: 6, kind: input, shape index: {}]   ;;  %s8701_s7 = inlined_call_operand.hbm [shape: f32[2,8,768], index: 7, kind: output, shape index: {}]  }
   0x1   :  { %8714 = sst [smem:[#allocation25_spill]] %s8697_s3 }
   0x2   :  { %8715 = sst [smem:[#allocation26_spill]] %s8699_s5 }
   0x3   :  { %12 = vsyncpa [#allocation3], 0 }
   0x4   :  { %14 = vsyncpa [#allocation3 + $0x1], 0 }
   0x5   :  { %15 = vsyncpa [#allocation6], 0 }
   0x6   :  { %17 = vsyncpa [#allocation6 + $0x1], 0 }
   0x7   :  { %18 = vsyncpa [#allocation9], 0 }
   0x8   :  { %19 = vsyncpa [#allocation12], 0 }
   0x9   :  { %20 = vsyncpa [#allocation4], 0 }
   0xa   :  { %22 = vsyncpa [#allocation4 + $0x1], 0  ;;  %s8218_s24 = smov 0   ;;  %s8220_s25 = smov 0  }
   0xb   :  { %s8222_s26 = smov 0   ;;  %s8224_s27 = smov 0  }
   0xc   :  { %s8226_s28 = smov 0   ;;  %s8228_s29 = smov 0  }
   0xd LB: > { %8716 = sst [smem:[#allocation20_spill]] %s8144_s24  ;;  %s8249_s30 = sadd.s32 4294967295, %s8164_s29   ;;  %s8164_s29 = sphi %s8228_s29, %s28_s29   ;;  %s8160_s28 = sphi %s8226_s28, %s8753_s28   ;;  %s8156_s27 = sphi %s8224_s27, %s8752_s27   ;;  %s8152_s26 = sphi %s8222_s26, %s8751_s26   ;;  %s8148_s25 = sphi %s8220_s25, %s8750_s25   ;;  %s8144_s24 = sphi %s8218_s24, %s8749_s24  }
   0xe   : > { %8717 = sst [smem:[#allocation21_spill]] %s8164_s29  ;;  %p6385_p0 = scmp.ge.s32.totalorder %s8164_s29, 1 }
   0xf   : > { %p8702_p1 = scmp.eq.s32.totalorder %s8249_s30, 0  ;;  %p243_p2 = scmp.lt.s32.totalorder %s8164_s29, 3 }
  0x10   : > { %s8166_s9 = smov [#allocation8]   ;;  %s8167_s12 = smov [#allocation11]  }
  0x11   : > { %p8254_p3 = pnand %p6385_p0, %p243_p2  ;;  %s255_s10 = sshll.u32 %s8166_s9, 4  ;;  %s256_s10 = int_to_ptr.vmem [resolvable:$true] %s255_s10 }
  0x12   : > { %s279_s13 = sshll.u32 %s8167_s12, 4  ;;  %s7894_s14 = scalar_lea.vmem %s256_s10, 49152  ;;  %s280_s13 = int_to_ptr.vmem [resolvable:$true] %s279_s13 }
  0x13   : > { %s8718_s8 = scalar_select %p8254_p3, 1, 0 }
  0x14   : > { %p7201_p4 = pneg %p8254_p3  ;;  %p7895_p8 = scmp.ne.s32.totalorder %s256_s10, %s7894_s14 }
  0x15   : > { %p7902_p11 = scmp.lt.s32.totalorder %s256_s10, %s256_s10  ;;  %p7903_p12 = scmp.lt.s32.totalorder %s7894_s14, %s7894_s14 }
  0x16   : > { %p8263_p6 = pnand %p7201_p4, %p8702_p1 }
  0x17   : > { %p7904_p13 = por %p7903_p12, %p7902_p11 }
  0x18   : > { %p8709_p7 = pneg %p8263_p6 }
  0x1a   : > { %p7897_p9 = pnand %p7895_p8, %p8709_p7 }
  0x1c   : > { %p7898_p10 = pneg %p7897_p9 }
  0x1e   : > { %p7905_p0 = pnand %p7904_p13, %p7898_p10 }
  0x20   : > { %7908 = shalt.err (!%p7905_p0)
}
  0x21   : > { %s8168_s15 = smov 512   ;;  %s8169_s16 = smov 32  }
  0x22   : > { %s8720_s3 = sld [smem:[#allocation25_spill]]  ;;  %s7920_s19 = scalar_lea.vmem %s280_s13, 49152 }
  0x23   : > { %p7921_p2 = scmp.ne.s32.totalorder %s280_s13, %s7920_s19  ;;  %p7928_p9 = scmp.lt.s32.totalorder %s280_s13, %s280_s13 }
  0x24   : > { %p7929_p5 = scmp.lt.s32.totalorder %s7920_s19, %s7920_s19 }
  0x25   : > { %p7923_p4 = pnand %p7921_p2, %p8709_p7 }
  0x26   : > { %p7930_p11 = por %p7929_p5, %p7928_p9 }
  0x27   : > { %p7924_p8 = pneg %p7923_p4 }
  0x28   : > { %7204 = dma.hbm_to_vmem [thread:$0]  (!%p8263_p6), %s8720_s3, 49152, %s256_s10, [#allocation9], %s8168_s15, %s8168_s15, %s8169_s16  }
  0x29   : > { %p7931_p10 = pnand %p7930_p11, %p7924_p8 }
  0x2b   : > { %7934 = shalt.err (!%p7931_p10)
}
  0x2c   : > { %s8170_s20 = smov 384   ;;  %s8171_s21 = smov 24  }
  0x2d   : > { %s8721_s5 = sld [smem:[#allocation26_spill]]  ;;  %s6384_s9 = sadd.s32 4294967294, %s8164_s29  }
  0x2e   : > { %s40_s10 = sadd.s32 1, %s8160_s28  ;;  %s49_s12 = sadd.s32 1, %s8152_s26 }
  0x2f   : > { %p42_p5 = scmp.ge.s32.totalorder %s40_s10, 2  ;;  %p56_p12 = scmp.ne.s32.totalorder %s8152_s26, %s8148_s25 }
  0x30   : > { %p57_p13 = scmp.eq.s32.totalorder %s8164_s29, 0  ;;  %p62_p2 = scmp.ne.s32.totalorder %s8148_s25, %s8144_s24 }
  0x31   : > { %s8755_s10 = smov (%p42_p5, %s40_s10), 0  ;;  %p230_p4 = scmp.eq.s32.totalorder %s8249_s30, 1 }
  0x32   : > { %8722 = sst [smem:[#allocation22_spill]] %s8755_s10  ;;  %p8293_p0 = por %p57_p13, %p56_p12 }
  0x33   : > { %7210 = dma.hbm_to_vmem [thread:$0]  (!%p8263_p6), %s8721_s5, 49152, %s280_s13, [#allocation12], %s8170_s20, %s8170_s20, %s8171_s21  }
  0x34   : > { %s44_s13 = ssub.s32 %s8160_s28, %s8755_s10  ;;  %p8304_p9 = por %p8702_p1, %p62_p2 }
  0x35   : > { %p47_p8 = scmp.eq.s32.totalorder %s44_s13, 0  ;;  %p8308_p11 = por %p230_p4, %p56_p12 }
  0x36   : > { %s8724_s15 = scalar_select %p8304_p9, 1, 0 }
  0x37   : > { %s8725_s16 = scalar_select %p8308_p11, 1, 0 }
  0x38   : > { %p236_p10 = scmp.eq.s32.totalorder %s6384_s9, 1  ;;  %p7232_p13 = scmp.lt.s32.totalorder %s8164_s29, 2 }
  0x39   : > { %s8313_s17 = scalar_select %p47_p8, %s8152_s26, %s49_s12  }
  0x3a   : > { %p8315_p5 = por %p236_p10, %p62_p2  ;;  %s8704_s19 = sand.u32 1, %s8152_s26  }
  0x3b   : > { %8726 = sst [smem:[#allocation23_spill]] %s8313_s17  ;;  %s7171_s20 = smul.u32 1536, %s8160_s28 }
  0x3c   : > { %s8727_s18 = scalar_select %p8315_p5, 1, 0 }
  0x3d   : > { %s8324_s21 = smul.u32 48, %s8704_s19  ;;  %p8328_p1 = pnand %p7232_p13, %p8293_p0 }
  0x3e   : > { %8728 = sst [smem:[#allocation24_spill]] %s8727_s18  ;;  %s325_s23 = sand.u32 1, %s8164_s29  }
  0x3f   : > { %s6255_s13 = scalar_lea.hbm %s8695_s1, %s7171_s20  ;;  %s329_s5 = scalar_lea.vmem [#allocation5], %s8324_s21 }
  0x40   : > { %s6256_s3 = scalar_lea.hbm %s6255_s13, 768  ;;  %s340_s10 = sshll.u32 %s329_s5, 4  ;;  %s341_s10 = int_to_ptr.vmem [resolvable:$true] %s340_s10 }
  0x41   : > { %s8172_s19 = smov [#allocation10]   ;;  %s8339_s14 = scalar_lea.sflag [#allocation6], %s325_s23 }
  0x42   : > { %s269_s17 = sshll.u32 %s8172_s19, 4  ;;  %p8710_p12 = pneg %p8328_p1  ;;  %s270_s17 = int_to_ptr.vmem [resolvable:$true] %s269_s17 }
  0x43   : > { %s7948_s18 = scalar_lea.vmem %s341_s10, 768  ;;  %s8173_s29 = smov [#allocation5]  }
  0x44   : > { %p7949_p0 = scmp.ne.s32.totalorder %s341_s10, %s7948_s18  ;;  %s7953_s24 = sshll.u32 %s8173_s29, 4  ;;  %s7954_s24 = int_to_ptr.vmem [resolvable:$false] %s7953_s24 }
  0x45   : > { %s7955_s9 = scalar_lea.vmem %s7954_s24, 1536  ;;  %p7956_p8 = scmp.lt.s32.totalorder %s341_s10, %s7954_s24 }
  0x46   : > { %p7951_p2 = pnand %p7949_p0, %p8710_p12  ;;  %p7957_p10 = scmp.lt.s32.totalorder %s7955_s9, %s7948_s18 }
  0x48   : > { %p7952_p4 = pneg %p7951_p2  ;;  %p7958_p13 = por %p7957_p10, %p7956_p8 }
  0x4a   : > { %p7959_p7 = pnand %p7958_p13, %p7952_p4 }
  0x4c   : > { %7962 = shalt.err (!%p7959_p7)
}
  0x4d   : > { %7220 = dma.hbm_to_vmem [thread:$0]  (!%p8328_p1), %s6256_s3, 768, %s341_s10, %s8339_s14  }
  0x4e   : > { %s7975_s5 = scalar_lea.vmem %s270_s17, 128  ;;  %p8730_p0 = pneg %p8263_p6 }
  0x4f   : > { %p7976_p5 = scmp.ne.s32.totalorder %s270_s17, %s7975_s5  ;;  %p7983_p11 = scmp.lt.s32.totalorder %s270_s17, %s270_s17 }
  0x50   : > { %p7984_p9 = scmp.lt.s32.totalorder %s7975_s5, %s7975_s5 }
  0x51   : > { %p7978_p2 = pnand %p7976_p5, %p8730_p0 }
  0x52   : > { %p7985_p3 = por %p7984_p9, %p7983_p11 }
  0x53   : > { %p7979_p12 = pneg %p7978_p2 }
  0x55   : > { %p7986_p8 = pnand %p7985_p3, %p7979_p12 }
  0x57   : > { %7989 = shalt.err (!%p7986_p8)
}
  0x58   : > { %7207 = dma.hbm_to_vmem [thread:$0]  (!%p8263_p6), %s8698_s4, 128, %s270_s17, [#allocation9]  }
  0x59   : > { %s8174_s3 = smov [#allocation13]   ;;  %p8731_p5 = pmov %p8730_p0 }
  0x5a   : > { %s293_s10 = sshll.u32 %s8174_s3, 4  ;;  %s294_s10 = int_to_ptr.vmem [resolvable:$true] %s293_s10 }
  0x5b   : > { %s8001_s18 = scalar_lea.vmem %s294_s10, 96  ;;  %p8009_p13 = scmp.lt.s32.totalorder %s294_s10, %s294_s10 }
  0x5c   : > { %p8002_p7 = scmp.ne.s32.totalorder %s294_s10, %s8001_s18  ;;  %p8010_p9 = scmp.lt.s32.totalorder %s8001_s18, %s8001_s18 }
  0x5e   : > { %p8004_p4 = pnand %p8002_p7, %p8731_p5  ;;  %p8011_p3 = por %p8010_p9, %p8009_p13 }
  0x60   : > { %p8005_p10 = pneg %p8004_p4 }
  0x62   : > { %p8012_p11 = pnand %p8011_p3, %p8005_p10 }
  0x64   : > { %8015 = shalt.err (!%p8012_p11)
}
  0x65   : > { %7213 = dma.hbm_to_vmem [thread:$0]  (!%p8263_p6), %s8700_s6, 96, %s294_s10, [#allocation12]  }
  0x66   : > { %s316_s13 = scalar_lea.hbm %s8694_s0, %s7171_s20  ;;  %s308_s9 = scalar_lea.vmem [#allocation2], %s8324_s21 }
  0x67   : > { %s318_s5 = sshll.u32 %s308_s9, 4  ;;  %s8732_s24 = sand.u32 1, %s8152_s26   ;;  %s319_s5 = int_to_ptr.vmem [resolvable:$true] %s318_s5 }
  0x68   : > { %s305_s29 = scalar_lea.sflag [#allocation3], %s8732_s24  ;;  %s8029_s3 = scalar_lea.vmem %s319_s5, 768 }
  0x69   : > { %p8030_p12 = scmp.ne.s32.totalorder %s319_s5, %s8029_s3  ;;  %p8733_p0 = pneg %p8328_p1 }
  0x6a   : > { %s8175_s11 = smov [#allocation2]  }
  0x6b   : > { %p8032_p2 = pnand %p8030_p12, %p8733_p0  ;;  %s8034_s18 = sshll.u32 %s8175_s11, 4  ;;  %s8035_s18 = int_to_ptr.vmem [resolvable:$false] %s8034_s18 }
  0x6c   : > { %s8036_s10 = scalar_lea.vmem %s8035_s18, 1536  ;;  %p8037_p6 = scmp.lt.s32.totalorder %s319_s5, %s8035_s18 }
  0x6d   : > { %p8033_p8 = pneg %p8032_p2  ;;  %p8038_p7 = scmp.lt.s32.totalorder %s8036_s10, %s8029_s3 }
  0x6f   : > { %p8039_p5 = por %p8038_p7, %p8037_p6 }
  0x71   : > { %p8040_p4 = pnand %p8039_p5, %p8033_p8 }
  0x73   : > { %8043 = shalt.err (!%p8040_p4)
}
  0x74   : > { %7217 = dma.hbm_to_vmem [thread:$0]  (!%p8328_p1), %s316_s13, 768, %s319_s5, %s305_s29  }
  0x75   : > { %s7174_s20 = smul.u32 768, %s8160_s28  ;;  %s351_s19 = scalar_lea.vmem [#allocation7], %s8324_s21 }
  0x76   : > { %s361_s23 = sshll.u32 %s351_s19, 4  ;;  %p8734_p13 = pmov %p8733_p0  ;;  %s362_s23 = int_to_ptr.vmem [resolvable:$true] %s361_s23 }
  0x77   : > { %s359_s9 = scalar_lea.hbm %s8696_s2, %s7174_s20  ;;  %s8057_s24 = scalar_lea.vmem %s362_s23, 768 }
  0x78   : > { %p8058_p10 = scmp.ne.s32.totalorder %s362_s23, %s8057_s24  ;;  %s8176_s3 = smov [#allocation7]  }
  0x79   : > { %s8062_s11 = sshll.u32 %s8176_s3, 4  ;;  %s8063_s11 = int_to_ptr.vmem [resolvable:$false] %s8062_s11 }
  0x7a   : > { %p8060_p9 = pnand %p8058_p10, %p8734_p13  ;;  %s8064_s18 = scalar_lea.vmem %s8063_s11, 1536 }
  0x7b   : > { %p8065_p11 = scmp.lt.s32.totalorder %s362_s23, %s8063_s11  ;;  %p8066_p12 = scmp.lt.s32.totalorder %s8064_s18, %s8057_s24 }
  0x7c   : > { %p8061_p3 = pneg %p8060_p9 }
  0x7d   : > { %p8067_p0 = por %p8066_p12, %p8065_p11 }
  0x7f   : > { %p8068_p2 = pnand %p8067_p0, %p8061_p3 }
  0x81   : > { %8071 = shalt.err (!%p8068_p2)
}
  0x82   : > { %7223 = dma.hbm_to_vmem [thread:$0]  (!%p8328_p1), %s359_s9, 768, %s362_s23, %s8339_s14  }
  0x83   : > { %p8735_p8 = scmp.ne.s32.totalorder %s8718_s8, 0 }
  0x84   : > { %s8392_s21 = sand.u32 (!%p8735_p8), 1, %s8148_s25   ;;  %p8736_p6 = scmp.ne.s32.totalorder (!%p8735_p8), %s8724_s15, 0 }
  0x85   : > { %370 = sbr.rel (%p8735_p8) target bundleno = 1211 (0x4bb), region = 48  ;;  %s373_s5 = scalar_lea.sflag (!%p8735_p8), [#allocation3], %s8392_s21 }
  0x86   : > { %s8395_s13 = smul.u32 (!%p8735_p8), 48, %s8392_s21 }
  0x88   : > { %s8399_s29 = scalar_lea.vmem (!%p8735_p8), [#allocation2], %s8395_s13 }
  0x8a   : > { %8123 = dma.done.wait (%p8736_p6), %s373_s5, 768  }
  0x8b   : > { %8125 = vsyncadd (%p8736_p6), %s373_s5, 4294966528  ;;  %s381_s8 = sand.u32 1, %s8249_s30   ;;  %s8407_s14 = scalar_lea.vmem [#allocation5], %s8395_s13 }
  0x8c   : > { %s382_s22 = scalar_lea.sflag [#allocation6], %s381_s8 }
  0x8d   : > { %8127 = dma.done.wait (%p8736_p6), %s382_s22, 1536  }
  0x8e   : > { %8129 = vsyncadd (%p8736_p6), %s382_s22, 4294965760  ;;  %s8414_s10 = scalar_lea.vmem [#allocation7], %s8395_s13  ;;  %p8737_p1 = scmp.eq.s32.totalorder %s8249_s30, 0 }
  0x90   : > { %8131 = dma.done.wait (%p8737_p1), [#allocation9], 49280   ;;  %p8738_p7 = pmov %p8737_p1 }
  0x91   : > { %p8739_p5 = pmov %p8737_p1 }
  0x92   : > { %8133 = vsyncadd (%p8738_p7), [#allocation9], 4294918016 }
  0x93   : > { %8135 = dma.done.wait (%p8739_p5), [#allocation12], 49248   ;;  %p8740_p4 = pmov %p8737_p1 }
  0x94   : > { %v562_v0 = vld [vmem:[#allocation8 + $0x1c0] sm:$0xff]  ;;  %v453_v53 = vld [vmem:[%s8407_s14 + $0x8] sm:$0xff]  ;;  %v455_v58 = vld [vmem:[%s8407_s14 + $0x18] sm:$0xff]  ;;  %s8617_s30 = scalar_lea.vmem [#allocation14], %s8395_s13  ;;  %s7176_s15 = smul.u32 768, %s8156_s27 }
  0x95   : > { %8137 = vsyncadd (%p8740_p4), [#allocation12], 4294918048  ;;  %v566_v1 = vld [vmem:[#allocation8 + $0x1e0] sm:$0xff]  ;;  %v459_v57 = vmul.f32 0.5, %v453_v53  ;;  %v461_v61 = vmul.f32 0.5, %v455_v58  ;;  %s6211_s20 = sshll.u32 %s8617_s30, 4  ;;  %s8647_s20 = int_to_ptr.vmem [resolvable:$true] %s6211_s20 }
  0x96   : > { %v690_v2 = vld [vmem:[#allocation8 + $0x5c0] sm:$0xff]  ;;  %v6456_v3 = vcombine.high %v562_v0, %v566_v1  ;;  %v6455_v5 = vcombine.low %v562_v0, %v566_v1  ;;  %s8645_s17 = scalar_lea.hbm %s8701_s7, %s7176_s15  ;;  %s6195_s27 = scalar_lea.sflag [#allocation4], %s8392_s21 }
  0x97   : > { %v694_v4 = vld [vmem:[#allocation8 + $0x5e0] sm:$0xff]  ;;  %v466_v63 = vmul.f32 1.442695, %v459_v57  ;;  %s8072_s12 = scalar_lea.vmem %s8647_s20, 768  ;;  %p8741_p13 = scmp.ne.s32.totalorder %s8725_s16, 0 }
  0x98   : > { %v554_v6 = vld [vmem:[#allocation8 + $0x180] sm:$0xff]  ;;  %v6584_v8 = vcombine.high %v690_v2, %v694_v4  ;;  %v6583_v9 = vcombine.low %v690_v2, %v694_v4  ;;  %2852 = vmatprep.subr.bf16.mxu0 %v6456_v3  ;;  %v470_v2 = vmul.f32 1.442695, %v461_v61  ;;  %p8073_p10 = scmp.ne.s32.totalorder %s8647_s20, %s8072_s12  ;;  %s8177_s9 = smov [#allocation14]  }
  0x99   : > { %v558_v7 = vld [vmem:[#allocation8 + $0x1a0] sm:$0xff]  ;;  %2853 = vmatpush1.bf16.msra.mxu0 %v6455_v5  ;;  %7870 = vpow2.f32 %v466_v63  ;;  %s8076_s24 = sshll.u32 %s8177_s9, 4  ;;  %s8077_s24 = int_to_ptr.vmem [resolvable:$false] %s8076_s24 }
  0x9a   : > { %v6448_v10 = vcombine.high %v554_v6, %v558_v7  ;;  %v682_v11 = vld [vmem:[#allocation8 + $0x580] sm:$0xff]  ;;  %2893 = vmatprep.subr.bf16.mxu1 %v6584_v8  ;;  %v6447_v18 = vcombine.low %v554_v6, %v558_v7  ;;  %7872 = vpow2.f32 %v470_v2  ;;  %p8074_p9 = pnand %p8073_p10, %p8741_p13  ;;  %s8078_s3 = scalar_lea.vmem %s8077_s24, 1536 }
  0x9b   : > { %v686_v12 = vld [vmem:[#allocation8 + $0x5a0] sm:$0xff]  ;;  %2894 = vmatpush1.bf16.msra.mxu1 %v6583_v9  ;;  %p8079_p11 = scmp.lt.s32.totalorder %s8647_s20, %s8077_s24  ;;  %p8080_p12 = scmp.lt.s32.totalorder %s8078_s3, %s8072_s12 }
  0x9c   : > { %v546_v13 = vld [vmem:[#allocation8 + $0x140] sm:$0xff]  ;;  %v6576_v14 = vcombine.high %v682_v11, %v686_v12  ;;  %2854 = vmatprep.subr.bf16.mxu0 %v6448_v10  ;;  %v6575_v19 = vcombine.low %v682_v11, %v686_v12  ;;  %p8075_p3 = pneg %p8074_p9 }
  0x9d   : > { %v550_v15 = vld [vmem:[#allocation8 + $0x160] sm:$0xff]  ;;  %2855 = vmatpush1.bf16.msra.mxu0 %v6447_v18  ;;  %p8081_p0 = por %p8080_p12, %p8079_p11 }
  0x9e   : > { %v674_v16 = vld [vmem:[#allocation8 + $0x540] sm:$0xff]  ;;  %v6440_v20 = vcombine.high %v546_v13, %v550_v15  ;;  %2895 = vmatprep.subr.bf16.mxu1 %v6576_v14  ;;  %v6439_v26 = vcombine.low %v546_v13, %v550_v15 }
  0x9f   : > { %v678_v17 = vld [vmem:[#allocation8 + $0x560] sm:$0xff]  ;;  %2896 = vmatpush1.bf16.msra.mxu1 %v6575_v19  ;;  %p8082_p2 = pnand %p8081_p0, %p8075_p3 }
  0xa0   : > { %v6568_v21 = vcombine.high %v674_v16, %v678_v17  ;;  %v538_v22 = vld [vmem:[#allocation8 + $0x100] sm:$0xff]  ;;  %2856 = vmatprep.subr.bf16.mxu0 %v6440_v20  ;;  %v6567_v27 = vcombine.low %v674_v16, %v678_v17 }
  0xa1   : > { %v542_v23 = vld [vmem:[#allocation8 + $0x120] sm:$0xff]  ;;  %2857 = vmatpush1.bf16.msra.mxu0 %v6439_v26 }
  0xa2   : > { %v666_v24 = vld [vmem:[#allocation8 + $0x500] sm:$0xff]  ;;  %v6432_v28 = vcombine.high %v538_v22, %v542_v23  ;;  %2897 = vmatprep.subr.bf16.mxu1 %v6568_v21  ;;  %v6431_v34 = vcombine.low %v538_v22, %v542_v23 }
  0xa3   : > { %v670_v25 = vld [vmem:[#allocation8 + $0x520] sm:$0xff]  ;;  %2898 = vmatpush1.bf16.msra.mxu1 %v6567_v27 }
  0xa4   : > { %v6560_v29 = vcombine.high %v666_v24, %v670_v25  ;;  %v530_v30 = vld [vmem:[#allocation8 + $0xc0] sm:$0xff]  ;;  %2858 = vmatprep.subr.bf16.mxu0 %v6432_v28  ;;  %v6559_v35 = vcombine.low %v666_v24, %v670_v25 }
  0xa5   : > { %v534_v31 = vld [vmem:[#allocation8 + $0xe0] sm:$0xff]  ;;  %2859 = vmatpush1.bf16.msra.mxu0 %v6431_v34 }
  0xa6   : > { %v658_v32 = vld [vmem:[#allocation8 + $0x4c0] sm:$0xff]  ;;  %v6424_v36 = vcombine.high %v530_v30, %v534_v31  ;;  %2899 = vmatprep.subr.bf16.mxu1 %v6560_v29  ;;  %v6423_v42 = vcombine.low %v530_v30, %v534_v31 }
  0xa7   : > { %v662_v33 = vld [vmem:[#allocation8 + $0x4e0] sm:$0xff]  ;;  %2900 = vmatpush1.bf16.msra.mxu1 %v6559_v35 }
  0xa8   : > { %v6552_v37 = vcombine.high %v658_v32, %v662_v33  ;;  %v522_v38 = vld [vmem:[#allocation8 + $0x80] sm:$0xff]  ;;  %2860 = vmatprep.subr.bf16.mxu0 %v6424_v36  ;;  %v6551_v43 = vcombine.low %v658_v32, %v662_v33  ;;  %v483_v33 = vld [vmem:[%s8414_s10 + $0x8] sm:$0xff] }
  0xa9   : > { %v526_v39 = vld [vmem:[#allocation8 + $0xa0] sm:$0xff]  ;;  %2861 = vmatpush1.bf16.msra.mxu0 %v6423_v42 }
  0xaa   : > { %v650_v40 = vld [vmem:[#allocation8 + $0x480] sm:$0xff]  ;;  %v6416_v44 = vcombine.high %v522_v38, %v526_v39  ;;  %2901 = vmatprep.subr.bf16.mxu1 %v6552_v37  ;;  %v6415_v50 = vcombine.low %v522_v38, %v526_v39  ;;  %v485_v37 = vld [vmem:[%s8414_s10 + $0x18] sm:$0xff]  ;;  %v7871_v38 = vpop.eup %7870 }
  0xab   : > { %v654_v41 = vld [vmem:[#allocation8 + $0x4a0] sm:$0xff]  ;;  %2902 = vmatpush1.bf16.msra.mxu1 %v6551_v43  ;;  %v7873_v42 = vpop.eup %7872 }
  0xac   : > { %v6544_v45 = vcombine.high %v650_v40, %v654_v41  ;;  %v514_v46 = vld [vmem:[#allocation8 + $0x40] sm:$0xff]  ;;  %2862 = vmatprep.subr.bf16.mxu0 %v6416_v44  ;;  %v6543_v51 = vcombine.low %v650_v40, %v654_v41  ;;  %v477_v41 = vld [vmem:[%s8399_s29 + $0x8] sm:$0xff]  ;;  %v489_v44 = vmul.f32 %v7871_v38, %v483_v33 }
  0xad   : > { %v518_v47 = vld [vmem:[#allocation8 + $0x60] sm:$0xff]  ;;  %2863 = vmatpush1.bf16.msra.mxu0 %v6415_v50 }
  0xae   : > { %v642_v48 = vld [vmem:[#allocation8 + $0x440] sm:$0xff]  ;;  %v6408_v52 = vcombine.high %v514_v46, %v518_v47  ;;  %2903 = vmatprep.subr.bf16.mxu1 %v6544_v45  ;;  %v6407_v62 = vcombine.low %v514_v46, %v518_v47  ;;  %v479_v45 = vld [vmem:[%s8399_s29 + $0x18] sm:$0xff] }
  0xaf   : > { %v646_v49 = vld [vmem:[#allocation8 + $0x460] sm:$0xff]  ;;  %2904 = vmatpush1.bf16.msra.mxu1 %v6543_v51 }
  0xb0   : > { %v6536_v54 = vcombine.high %v642_v48, %v646_v49  ;;  %v506_v55 = vld [vmem:[#allocation8] sm:$0xff]  ;;  %2864 = vmatprep.subr.bf16.mxu0 %v6408_v52  ;;  %v6535_v0 = vcombine.low %v642_v48, %v646_v49  ;;  %v491_v48 = vmul.f32 %v7873_v42, %v485_v37  ;;  %v495_v52 = vadd.f32 %v489_v44, %v477_v41  ;;  %v567_v37 = vld [vmem:[#allocation8 + $0x1e8] sm:$0xff] }
  0xb1   : > { %v510_v56 = vld [vmem:[#allocation8 + $0x20] sm:$0xff]  ;;  %2865 = vmatpush1.bf16.msra.mxu0 %v6407_v62 }
  0xb2   : > { %v634_v59 = vld [vmem:[#allocation8 + $0x400] sm:$0xff]  ;;  %v6400_v1 = vcombine.high %v506_v55, %v510_v56  ;;  %2905 = vmatprep.subr.bf16.mxu1 %v6536_v54  ;;  %v6399_v8 = vcombine.low %v506_v55, %v510_v56  ;;  %v497_v55 = vadd.f32 %v491_v48, %v479_v45  ;;  %v8432_v57 = vpack.c.bf16 %v495_v52, %v495_v52 }
  0xb3   : > { %v638_v60 = vld [vmem:[#allocation8 + $0x420] sm:$0xff]  ;;  %2906 = vmatpush1.bf16.msra.mxu1 %v6535_v0  ;;  %v457_v0 = vld [vmem:[%s8407_s14 + $0x28] sm:$0xff] }
  0xb4   : > { %v6528_v3 = vcombine.high %v634_v59, %v638_v60  ;;  %v626_v4 = vld [vmem:[#allocation8 + $0x3c0] sm:$0xff]  ;;  %2866 = vmatprep.subr.bf16.mxu0 %v6400_v1  ;;  %v6527_v10 = vcombine.low %v634_v59, %v638_v60  ;;  %v8434_v60 = vpack.c.bf16 %v497_v55, %v497_v55  ;;  %2884 = vmatprep.mubr.bf16.mxu0 %v8432_v57 }
  0xb5   : > { %v630_v5 = vld [vmem:[#allocation8 + $0x3e0] sm:$0xff]  ;;  %2867 = vmatpush1.bf16.msra.mxu0 %v6399_v8 }
  0xb6   : > { %v754_v6 = vld [vmem:[#allocation8 + $0x7c0] sm:$0xff]  ;;  %v6520_v11 = vcombine.high %v626_v4, %v630_v5  ;;  %2907 = vmatprep.subr.bf16.mxu1 %v6528_v3  ;;  %v6519_v19 = vcombine.low %v626_v4, %v630_v5  ;;  %2925 = vmatprep.mubr.bf16.mxu1 %v8434_v60 }
  0xb7   : > { %v758_v7 = vld [vmem:[#allocation8 + $0x7e0] sm:$0xff]  ;;  %2908 = vmatpush1.bf16.msra.mxu1 %v6527_v10 }
  0xb8   : > { %v452_v9 = vld [vmem:[%s8407_s14] sm:$0xff]  ;;  %v454_v12 = vld [vmem:[%s8407_s14 + $0x10] sm:$0xff]  ;;  %v6648_v13 = vcombine.high %v754_v6, %v758_v7  ;;  %2868 = vmatprep.subr.bf16.mxu0 %v6520_v11  ;;  %v6647_v21 = vcombine.low %v754_v6, %v758_v7  ;;  %v463_v6 = vmul.f32 0.5, %v457_v0 }
  0xb9   : > { %v618_v14 = vld [vmem:[#allocation8 + $0x380] sm:$0xff]  ;;  %v458_v18 = vmul.f32 0.5, %v452_v9  ;;  %v460_v20 = vmul.f32 0.5, %v454_v12  ;;  %2869 = vmatpush2.bf16.msra.mxu0 %v6519_v19 }
  0xba   : > { %v622_v15 = vld [vmem:[#allocation8 + $0x3a0] sm:$0xff]  ;;  %2909 = vmatprep.subr.bf16.mxu1 %v6648_v13  ;;  %v474_v12 = vmul.f32 1.442695, %v463_v6  ;;  %v539_v6 = vld [vmem:[#allocation8 + $0x108] sm:$0xff] }
  0xbb   : > { %v746_v16 = vld [vmem:[#allocation8 + $0x780] sm:$0xff]  ;;  %v6512_v22 = vcombine.high %v618_v14, %v622_v15  ;;  %v464_v28 = vmul.f32 1.442695, %v458_v18  ;;  %v6511_v29 = vcombine.low %v618_v14, %v622_v15  ;;  %v468_v30 = vmul.f32 1.442695, %v460_v20  ;;  %2910 = vmatpush2.bf16.msra.mxu1 %v6647_v21 }
  0xbc   : > { %v750_v17 = vld [vmem:[#allocation8 + $0x7a0] sm:$0xff] }
  0xbd   : > { %v6640_v23 = vcombine.high %v746_v16, %v750_v17  ;;  %v610_v24 = vld [vmem:[#allocation8 + $0x340] sm:$0xff]  ;;  %2870 = vmatprep.subr.bf16.mxu0 %v6512_v22  ;;  %v6639_v31 = vcombine.low %v746_v16, %v750_v17  ;;  %7874 = vpow2.f32 %v464_v28 }
  0xbe   : > { %v614_v25 = vld [vmem:[#allocation8 + $0x360] sm:$0xff]  ;;  %2871 = vmatpush2.bf16.msra.mxu0 %v6511_v29  ;;  %7876 = vpow2.f32 %v468_v30 }
  0xbf   : > { %v738_v26 = vld [vmem:[#allocation8 + $0x740] sm:$0xff]  ;;  %v6504_v32 = vcombine.high %v610_v24, %v614_v25  ;;  %2911 = vmatprep.subr.bf16.mxu1 %v6640_v23  ;;  %v6503_v43 = vcombine.low %v610_v24, %v614_v25  ;;  %7878 = vpow2.f32 %v474_v12 }
  0xc0   : > { %v742_v27 = vld [vmem:[#allocation8 + $0x760] sm:$0xff]  ;;  %2912 = vmatpush2.bf16.msra.mxu1 %v6639_v31 }
  0xc1   : > { %v6632_v34 = vcombine.high %v738_v26, %v742_v27  ;;  %v602_v35 = vld [vmem:[#allocation8 + $0x300] sm:$0xff]  ;;  %2872 = vmatprep.subr.bf16.mxu0 %v6504_v32  ;;  %v6631_v46 = vcombine.low %v738_v26, %v742_v27 }
  0xc2   : > { %v606_v36 = vld [vmem:[#allocation8 + $0x320] sm:$0xff]  ;;  %2873 = vmatpush2.bf16.msra.mxu0 %v6503_v43 }
  0xc3   : > { %v730_v39 = vld [vmem:[#allocation8 + $0x700] sm:$0xff]  ;;  %v6496_v47 = vcombine.high %v602_v35, %v606_v36  ;;  %2913 = vmatprep.subr.bf16.mxu1 %v6632_v34  ;;  %v6495_v56 = vcombine.low %v602_v35, %v606_v36  ;;  %v563_v36 = vld [vmem:[#allocation8 + $0x1c8] sm:$0xff] }
  0xc4   : > { %v734_v40 = vld [vmem:[#allocation8 + $0x720] sm:$0xff]  ;;  %2914 = vmatpush2.bf16.msra.mxu1 %v6631_v46  ;;  %v6458_v42 = vcombine.high %v563_v36, %v567_v37  ;;  %v555_v46 = vld [vmem:[#allocation8 + $0x188] sm:$0xff] }
  0xc5   : > { %v6624_v49 = vcombine.high %v730_v39, %v734_v40  ;;  %v594_v50 = vld [vmem:[#allocation8 + $0x2c0] sm:$0xff]  ;;  %2874 = vmatprep.subr.bf16.mxu0 %v6496_v47  ;;  %v6623_v58 = vcombine.low %v730_v39, %v734_v40  ;;  %v559_v47 = vld [vmem:[#allocation8 + $0x1a8] sm:$0xff] }
  0xc6   : > { %v598_v51 = vld [vmem:[#allocation8 + $0x2e0] sm:$0xff]  ;;  %2875 = vmatpush2.bf16.msra.mxu0 %v6495_v56  ;;  %v6449_v0 = vcombine.low %v555_v46, %v559_v47 }
  0xc7   : > { %v722_v53 = vld [vmem:[#allocation8 + $0x6c0] sm:$0xff]  ;;  %v6488_v59 = vcombine.high %v594_v50, %v598_v51  ;;  %2915 = vmatprep.subr.bf16.mxu1 %v6624_v49  ;;  %v6487_v3 = vcombine.low %v594_v50, %v598_v51  ;;  %v487_v50 = vld [vmem:[%s8414_s10 + $0x28] sm:$0xff]  ;;  %v6457_v51 = vcombine.low %v563_v36, %v567_v37 }
  0xc8   : > { %v726_v54 = vld [vmem:[#allocation8 + $0x6e0] sm:$0xff]  ;;  %2916 = vmatpush2.bf16.msra.mxu1 %v6623_v58  ;;  %v481_v58 = vld [vmem:[%s8399_s29 + $0x28] sm:$0xff] }
  0xc9   : > { %v6616_v61 = vcombine.high %v722_v53, %v726_v54  ;;  %v586_v62 = vld [vmem:[#allocation8 + $0x280] sm:$0xff]  ;;  %2876 = vmatprep.subr.bf16.mxu0 %v6488_v59  ;;  %v6615_v4 = vcombine.low %v722_v53, %v726_v54  ;;  %v6450_v54 = vcombine.high %v555_v46, %v559_v47  ;;  %v547_v59 = vld [vmem:[#allocation8 + $0x148] sm:$0xff] }
  0xca   : > { %v590_v63 = vld [vmem:[#allocation8 + $0x2a0] sm:$0xff]  ;;  %v7875_v13 = vpop.eup %7874  ;;  %2877 = vmatpush2.bf16.msra.mxu0 %v6487_v3  ;;  %v627_v47 = vld [vmem:[#allocation8 + $0x3c8] sm:$0xff] }
  0xcb   : > { %v714_v1 = vld [vmem:[#allocation8 + $0x680] sm:$0xff]  ;;  %v6480_v5 = vcombine.high %v586_v62, %v590_v63  ;;  %2917 = vmatprep.subr.bf16.mxu1 %v6616_v61  ;;  %v6479_v14 = vcombine.low %v586_v62, %v590_v63  ;;  %v7877_v16 = vpop.eup %7876  ;;  %v551_v61 = vld [vmem:[#allocation8 + $0x168] sm:$0xff] }
  0xcc   : > { %v718_v2 = vld [vmem:[#allocation8 + $0x6a0] sm:$0xff]  ;;  %2918 = vmatpush2.bf16.msra.mxu1 %v6615_v4  ;;  %v7879_v53 = vpop.eup %7878  ;;  %v6442_v3 = vcombine.high %v547_v59, %v551_v61 }
  0xcd   : > { %v6608_v7 = vcombine.high %v714_v1, %v718_v2  ;;  %v578_v8 = vld [vmem:[#allocation8 + $0x240] sm:$0xff]  ;;  %2878 = vmatprep.subr.bf16.mxu0 %v6480_v5  ;;  %v6607_v17 = vcombine.low %v714_v1, %v718_v2  ;;  %v493_v62 = vmul.f32 %v7879_v53, %v487_v50 }
  0xce   : > { %v582_v9 = vld [vmem:[#allocation8 + $0x260] sm:$0xff]  ;;  %2879 = vmatpush2.bf16.msra.mxu0 %v6479_v14  ;;  %v531_v14 = vld [vmem:[#allocation8 + $0xc8] sm:$0xff] }
  0xcf   : > { %v706_v10 = vld [vmem:[#allocation8 + $0x640] sm:$0xff]  ;;  %v6472_v18 = vcombine.high %v578_v8, %v582_v9  ;;  %2919 = vmatprep.subr.bf16.mxu1 %v6608_v7  ;;  %v6471_v26 = vcombine.low %v578_v8, %v582_v9  ;;  %v499_v2 = vadd.f32 %v493_v62, %v481_v58  ;;  %v543_v7 = vld [vmem:[#allocation8 + $0x128] sm:$0xff] }
  0xd0   : > { %v710_v11 = vld [vmem:[#allocation8 + $0x660] sm:$0xff]  ;;  %2920 = vmatpush2.bf16.msra.mxu1 %v6607_v17  ;;  %v619_v58 = vld [vmem:[#allocation8 + $0x388] sm:$0xff] }
  0xd1   : > { %v482_v15 = vld [vmem:[%s8414_s10] sm:$0xff]  ;;  %v484_v19 = vld [vmem:[%s8414_s10 + $0x10] sm:$0xff]  ;;  %v6600_v20 = vcombine.high %v706_v10, %v710_v11  ;;  %2880 = vmatprep.subr.bf16.mxu0 %v6472_v18  ;;  %v6599_v29 = vcombine.low %v706_v10, %v710_v11  ;;  %v8452_v8 = vpack.c.bf16 %v499_v2, %v499_v2  ;;  %v6441_v10 = vcombine.low %v547_v59, %v551_v61  ;;  %v623_v61 = vld [vmem:[#allocation8 + $0x3a8] sm:$0xff] }
  0xd2   : > { %v570_v21 = vld [vmem:[#allocation8 + $0x200] sm:$0xff]  ;;  %v488_v25 = vmul.f32 %v7875_v13, %v482_v15  ;;  %v490_v28 = vmul.f32 %v7877_v16, %v484_v19  ;;  %2881 = vmatpush2.bf16.msra.mxu0 %v6471_v26  ;;  %v6434_v15 = vcombine.high %v539_v6, %v543_v7  ;;  %v535_v16 = vld [vmem:[#allocation8 + $0xe8] sm:$0xff]  ;;  %v6433_v18 = vcombine.low %v539_v6, %v543_v7 }
  0xd3   : > { %v574_v22 = vld [vmem:[#allocation8 + $0x220] sm:$0xff]  ;;  %2921 = vmatprep.subr.bf16.mxu1 %v6600_v20  ;;  %v6425_v26 = vcombine.low %v531_v14, %v535_v16  ;;  %v615_v6 = vld [vmem:[#allocation8 + $0x368] sm:$0xff] }
  0xd4   : > { %v698_v23 = vld [vmem:[#allocation8 + $0x600] sm:$0xff]  ;;  %v6464_v30 = vcombine.high %v570_v21, %v574_v22  ;;  %v6463_v38 = vcombine.low %v570_v21, %v574_v22  ;;  %2922 = vmatpush2.bf16.msra.mxu1 %v6599_v29  ;;  %v523_v22 = vld [vmem:[#allocation8 + $0x88] sm:$0xff] }
  0xd5   : > { %v702_v24 = vld [vmem:[#allocation8 + $0x620] sm:$0xff] }
  0xd6   : > { %v476_v27 = vld [vmem:[%s8399_s29] sm:$0xff]  ;;  %v478_v31 = vld [vmem:[%s8399_s29 + $0x10] sm:$0xff]  ;;  %v6592_v32 = vcombine.high %v698_v23, %v702_v24  ;;  %2882 = vmatprep.subr.bf16.mxu0 %v6464_v30  ;;  %v6591_v40 = vcombine.low %v698_v23, %v702_v24  ;;  %v6426_v23 = vcombine.high %v531_v14, %v535_v16  ;;  %v527_v24 = vld [vmem:[#allocation8 + $0xa8] sm:$0xff] }
  0xd7   : > { %v818_v33 = vld [vmem:[#allocation8 + $0x9c0] sm:$0xff]  ;;  %v494_v35 = vadd.f32 %v488_v25, %v476_v27  ;;  %v496_v39 = vadd.f32 %v490_v28, %v478_v31  ;;  %2883 = vmatpush2.bf16.msra.mxu0 %v6463_v38  ;;  %v515_v30 = vld [vmem:[#allocation8 + $0x48] sm:$0xff]  ;;  %v6418_v31 = vcombine.high %v523_v22, %v527_v24 }
  0xd8   : > { %v822_v34 = vld [vmem:[#allocation8 + $0x9e0] sm:$0xff]  ;;  %2923 = vmatprep.subr.bf16.mxu1 %v6592_v32  ;;  %v519_v32 = vld [vmem:[#allocation8 + $0x68] sm:$0xff] }
  0xd9   : > { %v6712_v41 = vcombine.high %v818_v33, %v822_v34  ;;  %v810_v43 = vld [vmem:[#allocation8 + $0x980] sm:$0xff]  ;;  %v8443_v45 = vpack.c.bf16 %v494_v35, %v494_v35  ;;  %v8445_v48 = vpack.c.bf16 %v496_v39, %v496_v39  ;;  %v6711_v49 = vcombine.low %v818_v33, %v822_v34  ;;  %2924 = vmatpush2.bf16.msra.mxu1 %v6591_v40  ;;  %v507_v38 = vld [vmem:[#allocation8 + $0x8] sm:$0xff] }
  0xda   : > { %v814_v44 = vld [vmem:[#allocation8 + $0x9a0] sm:$0xff]  ;;  %2975 = vmatprep.subr.bf16.mxu1 %v6458_v42  ;;  %v6417_v34 = vcombine.low %v523_v22, %v527_v24  ;;  %v6410_v39 = vcombine.high %v515_v30, %v519_v32  ;;  %v511_v40 = vld [vmem:[#allocation8 + $0x28] sm:$0xff] }
  0xdb   : > { %2934 = vmatprep.subr.bf16.mxu0 %v6712_v41  ;;  %v6704_v52 = vcombine.high %v810_v43, %v814_v44  ;;  %v802_v55 = vld [vmem:[#allocation8 + $0x940] sm:$0xff]  ;;  %2885 = vmatmul.mubr.bf16.vlgmr.msra.gmra.mxu0 %v8443_v45  ;;  %v6703_v63 = vcombine.low %v810_v43, %v814_v44  ;;  %v6409_v43 = vcombine.low %v515_v30, %v519_v32  ;;  %v603_v14 = vld [vmem:[#allocation8 + $0x308] sm:$0xff] }
  0xdc   : > { %v806_v56 = vld [vmem:[#allocation8 + $0x960] sm:$0xff]  ;;  %2926 = vmatmul.mubr.bf16.vlgmr.msra.gmra.mxu1 %v8445_v48  ;;  %2935 = vmatpush1.bf16.msra.mxu0 %v6711_v49  ;;  %v631_v49 = vld [vmem:[#allocation8 + $0x3e8] sm:$0xff]  ;;  %v6402_v50 = vcombine.high %v507_v38, %v511_v40  ;;  %v6401_v53 = vcombine.low %v507_v38, %v511_v40 }
  0xdd   : > { %2976 = vmatpush1.bf16.msra.mxu1 %v6457_v51  ;;  %2936 = vmatprep.subr.bf16.mxu0 %v6704_v52  ;;  %v6696_v1 = vcombine.high %v802_v55, %v806_v56  ;;  %v794_v4 = vld [vmem:[#allocation8 + $0x900] sm:$0xff]  ;;  %v6695_v9 = vcombine.low %v802_v55, %v806_v56  ;;  %v6522_v59 = vcombine.high %v627_v47, %v631_v49  ;;  %v607_v16 = vld [vmem:[#allocation8 + $0x328] sm:$0xff] }
  0xde   : > { %2977 = vmatprep.subr.bf16.mxu1 %v6450_v54  ;;  %v798_v5 = vld [vmem:[#allocation8 + $0x920] sm:$0xff]  ;;  %3007 = vmatprep.mubr.bf16.mxu1 %v8432_v57  ;;  %v595_v22 = vld [vmem:[#allocation8 + $0x2c8] sm:$0xff] }
  0xdf   : > { %v6688_v11 = vcombine.high %v794_v4, %v798_v5  ;;  %v786_v12 = vld [vmem:[#allocation8 + $0x8c0] sm:$0xff]  ;;  %2966 = vmatprep.mubr.bf16.mxu0 %v8452_v8  ;;  %v6687_v17 = vcombine.low %v794_v4, %v798_v5  ;;  %v611_v4 = vld [vmem:[#allocation8 + $0x348] sm:$0xff]  ;;  %v6514_v5 = vcombine.high %v619_v58, %v623_v61 }
  0xe0   : > { %2937 = vmatpush1.bf16.msra.mxu0 %v6703_v63  ;;  %v790_v13 = vld [vmem:[#allocation8 + $0x8e0] sm:$0xff]  ;;  %v599_v24 = vld [vmem:[#allocation8 + $0x2e8] sm:$0xff] }
  0xe1   : > { %2978 = vmatpush1.bf16.msra.mxu1 %v6449_v0  ;;  %2938 = vmatprep.subr.bf16.mxu0 %v6696_v1  ;;  %v6680_v19 = vcombine.high %v786_v12, %v790_v13  ;;  %v778_v20 = vld [vmem:[#allocation8 + $0x880] sm:$0xff]  ;;  %v6679_v25 = vcombine.low %v786_v12, %v790_v13  ;;  %v6521_v0 = vcombine.low %v627_v47, %v631_v49  ;;  %v587_v30 = vld [vmem:[#allocation8 + $0x288] sm:$0xff] }
  0xe2   : > { %2979 = vmatprep.subr.bf16.mxu1 %v6442_v3  ;;  %v782_v21 = vld [vmem:[#allocation8 + $0x8a0] sm:$0xff]  ;;  %v591_v32 = vld [vmem:[#allocation8 + $0x2a8] sm:$0xff] }
  0xe3   : > { %v6672_v27 = vcombine.high %v778_v20, %v782_v21  ;;  %v770_v28 = vld [vmem:[#allocation8 + $0x840] sm:$0xff]  ;;  %v6671_v33 = vcombine.low %v778_v20, %v782_v21  ;;  %v579_v38 = vld [vmem:[#allocation8 + $0x248] sm:$0xff]  ;;  %v6482_v40 = vcombine.high %v587_v30, %v591_v32 }
  0xe4   : > { %2939 = vmatpush1.bf16.msra.mxu0 %v6695_v9  ;;  %v774_v29 = vld [vmem:[#allocation8 + $0x860] sm:$0xff] }
  0xe5   : > { %2980 = vmatpush1.bf16.msra.mxu1 %v6441_v10  ;;  %2940 = vmatprep.subr.bf16.mxu0 %v6688_v11  ;;  %v6664_v35 = vcombine.high %v770_v28, %v774_v29  ;;  %v762_v36 = vld [vmem:[#allocation8 + $0x800] sm:$0xff]  ;;  %v6663_v41 = vcombine.low %v770_v28, %v774_v29  ;;  %v6513_v10 = vcombine.low %v619_v58, %v623_v61  ;;  %v695_v61 = vld [vmem:[#allocation8 + $0x5e8] sm:$0xff] }
  0xe6   : > { %2981 = vmatprep.subr.bf16.mxu1 %v6434_v15  ;;  %v766_v37 = vld [vmem:[#allocation8 + $0x820] sm:$0xff]  ;;  %v6506_v15 = vcombine.high %v611_v4, %v615_v6 }
  0xe7   : > { %v882_v42 = vld [vmem:[#allocation8 + $0xbc0] sm:$0xff]  ;;  %v6656_v44 = vcombine.high %v762_v36, %v766_v37  ;;  %v6655_v52 = vcombine.low %v762_v36, %v766_v37 }
  0xe8   : > { %2941 = vmatpush1.bf16.msra.mxu0 %v6687_v17  ;;  %v886_v46 = vld [vmem:[#allocation8 + $0xbe0] sm:$0xff] }
  0xe9   : > { %2982 = vmatpush1.bf16.msra.mxu1 %v6433_v18  ;;  %2942 = vmatprep.subr.bf16.mxu0 %v6680_v19  ;;  %v456_v51 = vld [vmem:[%s8407_s14 + $0x20] sm:$0xff]  ;;  %v6776_v54 = vcombine.high %v882_v42, %v886_v46  ;;  %v6775_v63 = vcombine.low %v882_v42, %v886_v46  ;;  %v6505_v18 = vcombine.low %v611_v4, %v615_v6  ;;  %v687_v6 = vld [vmem:[#allocation8 + $0x5a8] sm:$0xff] }
  0xea   : > { %2983 = vmatprep.subr.bf16.mxu1 %v6426_v23  ;;  %v874_v55 = vld [vmem:[#allocation8 + $0xb80] sm:$0xff]  ;;  %v462_v62 = vmul.f32 0.5, %v456_v51  ;;  %v6498_v23 = vcombine.high %v603_v14, %v607_v16  ;;  %v6481_v46 = vcombine.low %v587_v30, %v591_v32  ;;  %v575_v51 = vld [vmem:[#allocation8 + $0x228] sm:$0xff] }
  0xeb   : > { %v878_v56 = vld [vmem:[#allocation8 + $0xba0] sm:$0xff]  ;;  %v663_v32 = vld [vmem:[#allocation8 + $0x4e8] sm:$0xff] }
  0xec   : > { %2943 = vmatpush1.bf16.msra.mxu0 %v6679_v25  ;;  %v6768_v1 = vcombine.high %v874_v55, %v878_v56  ;;  %v866_v2 = vld [vmem:[#allocation8 + $0xb40] sm:$0xff]  ;;  %v472_v7 = vmul.f32 1.442695, %v462_v62  ;;  %v6767_v9 = vcombine.low %v874_v55, %v878_v56  ;;  %v819_v62 = vld [vmem:[#allocation8 + $0x9c8] sm:$0xff] }
  0xed   : > { %2984 = vmatpush1.bf16.msra.mxu1 %v6425_v26  ;;  %2944 = vmatprep.subr.bf16.mxu0 %v6672_v27  ;;  %v870_v3 = vld [vmem:[#allocation8 + $0xb60] sm:$0xff]  ;;  %v6497_v26 = vcombine.low %v603_v14, %v607_v16  ;;  %v679_v16 = vld [vmem:[#allocation8 + $0x568] sm:$0xff] }
  0xee   : > { %2985 = vmatprep.subr.bf16.mxu1 %v6418_v31  ;;  %v6760_v11 = vcombine.high %v866_v2, %v870_v3  ;;  %v858_v12 = vld [vmem:[#allocation8 + $0xb00] sm:$0xff]  ;;  %7880 = vpow2.f32 %v472_v7  ;;  %v6759_v17 = vcombine.low %v866_v2, %v870_v3  ;;  %v6490_v31 = vcombine.high %v595_v22, %v599_v24  ;;  %v811_v7 = vld [vmem:[#allocation8 + $0x988] sm:$0xff] }
  0xef   : > { %v862_v13 = vld [vmem:[#allocation8 + $0xb20] sm:$0xff] }
  0xf0   : > { %2945 = vmatpush1.bf16.msra.mxu0 %v6671_v33  ;;  %v6752_v19 = vcombine.high %v858_v12, %v862_v13  ;;  %v850_v20 = vld [vmem:[#allocation8 + $0xac0] sm:$0xff]  ;;  %v6751_v25 = vcombine.low %v858_v12, %v862_v13 }
  0xf1   : > { %2986 = vmatpush1.bf16.msra.mxu1 %v6417_v34  ;;  %2946 = vmatprep.subr.bf16.mxu0 %v6664_v35  ;;  %v854_v21 = vld [vmem:[#allocation8 + $0xae0] sm:$0xff]  ;;  %v6489_v35 = vcombine.low %v595_v22, %v599_v24  ;;  %v671_v24 = vld [vmem:[#allocation8 + $0x528] sm:$0xff] }
  0xf2   : > { %2987 = vmatprep.subr.bf16.mxu1 %v6410_v39  ;;  %v6744_v27 = vcombine.high %v850_v20, %v854_v21  ;;  %v842_v28 = vld [vmem:[#allocation8 + $0xa80] sm:$0xff]  ;;  %v6743_v33 = vcombine.low %v850_v20, %v854_v21  ;;  %v583_v39 = vld [vmem:[#allocation8 + $0x268] sm:$0xff] }
  0xf3   : > { %v846_v29 = vld [vmem:[#allocation8 + $0xaa0] sm:$0xff]  ;;  %v6473_v56 = vcombine.low %v579_v38, %v583_v39 }
  0xf4   : > { %2947 = vmatpush1.bf16.msra.mxu0 %v6663_v41  ;;  %v834_v34 = vld [vmem:[#allocation8 + $0xa40] sm:$0xff]  ;;  %v6736_v36 = vcombine.high %v842_v28, %v846_v29 }
  0xf5   : > { %2988 = vmatpush1.bf16.msra.mxu1 %v6409_v43  ;;  %2948 = vmatprep.subr.bf16.mxu0 %v6656_v44  ;;  %v838_v37 = vld [vmem:[#allocation8 + $0xa60] sm:$0xff]  ;;  %v6735_v43 = vcombine.low %v842_v28, %v846_v29 }
  0xf6   : > { %2989 = vmatprep.subr.bf16.mxu1 %v6402_v50  ;;  %v486_v41 = vld [vmem:[%s8414_s10 + $0x20] sm:$0xff]  ;;  %v6728_v47 = vcombine.high %v834_v34, %v838_v37  ;;  %v571_v50 = vld [vmem:[#allocation8 + $0x208] sm:$0xff]  ;;  %v6727_v55 = vcombine.low %v834_v34, %v838_v37 }
  0xf7   : > { %v826_v44 = vld [vmem:[#allocation8 + $0xa00] sm:$0xff]  ;;  %v6465_v3 = vcombine.low %v571_v50, %v575_v51 }
  0xf8   : > { %2949 = vmatpush1.bf16.msra.mxu0 %v6655_v52  ;;  %v830_v49 = vld [vmem:[#allocation8 + $0xa20] sm:$0xff]  ;;  %v6474_v52 = vcombine.high %v579_v38, %v583_v39  ;;  %v651_v39 = vld [vmem:[#allocation8 + $0x488] sm:$0xff] }
  0xf9   : > { %2990 = vmatpush1.bf16.msra.mxu1 %v6401_v53  ;;  %2950 = vmatprep.subr.bf16.mxu0 %v6776_v54  ;;  %v480_v53 = vld [vmem:[%s8399_s29 + $0x20] sm:$0xff]  ;;  %v6720_v58 = vcombine.high %v826_v44, %v830_v49  ;;  %v6719_v2 = vcombine.low %v826_v44, %v830_v49  ;;  %v643_v49 = vld [vmem:[#allocation8 + $0x448] sm:$0xff] }
  0xfa   : > { %2991 = vmatprep.subr.bf16.mxu1 %v6522_v59  ;;  %v691_v59 = vld [vmem:[#allocation8 + $0x5c8] sm:$0xff] }
  0xfb   : > { %v7881_v42 = vpop.eup %7880  ;;  %v6586_v4 = vcombine.high %v691_v59, %v695_v61  ;;  %v6585_v12 = vcombine.low %v691_v59, %v695_v61  ;;  %v639_v59 = vld [vmem:[#allocation8 + $0x428] sm:$0xff] }
  0xfc   : > { %2951 = vmatpush2.bf16.msra.mxu0 %v6775_v63  ;;  %v492_v54 = vmul.f32 %v7881_v42, %v486_v41  ;;  %v6466_v63 = vcombine.high %v571_v50, %v575_v51  ;;  %v779_v41 = vld [vmem:[#allocation8 + $0x888] sm:$0xff] }
  0xfd   : > { %2992 = vmatpush2.bf16.msra.mxu1 %v6521_v0  ;;  %2952 = vmatprep.subr.bf16.mxu0 %v6768_v1  ;;  %v823_v0 = vld [vmem:[#allocation8 + $0x9e8] sm:$0xff] }
  0xfe   : > { %2993 = vmatprep.subr.bf16.mxu1 %v6514_v5  ;;  %v498_v1 = vadd.f32 %v492_v54, %v480_v53  ;;  %v683_v5 = vld [vmem:[#allocation8 + $0x588] sm:$0xff]  ;;  %v6713_v13 = vcombine.low %v819_v62, %v823_v0 }
  0xff   : > { %v6578_v14 = vcombine.high %v683_v5, %v687_v6  ;;  %v6577_v20 = vcombine.low %v683_v5, %v687_v6  ;;  %v647_v50 = vld [vmem:[#allocation8 + $0x468] sm:$0xff] }
 0x100   : > { %2953 = vmatpush2.bf16.msra.mxu0 %v6767_v9  ;;  %v6714_v9 = vcombine.high %v819_v62, %v823_v0  ;;  %v771_v51 = vld [vmem:[#allocation8 + $0x848] sm:$0xff]  ;;  %v6537_v0 = vcombine.low %v643_v49, %v647_v50 }
 0x101   : > { %2994 = vmatpush2.bf16.msra.mxu1 %v6513_v10  ;;  %2954 = vmatprep.subr.bf16.mxu0 %v6760_v11  ;;  %v815_v10 = vld [vmem:[#allocation8 + $0x9a8] sm:$0xff]  ;;  %v8458_v11 = vpack.c.bf16 %v498_v1, %v498_v1 }
 0x102   : > { %2995 = vmatprep.subr.bf16.mxu1 %v6506_v15  ;;  %v675_v15 = vld [vmem:[#allocation8 + $0x548] sm:$0xff]  ;;  %v6705_v21 = vcombine.low %v811_v7, %v815_v10 }
 0x103   : > { %v6570_v22 = vcombine.high %v675_v15, %v679_v16  ;;  %v6569_v28 = vcombine.low %v675_v15, %v679_v16  ;;  %v775_v53 = vld [vmem:[#allocation8 + $0x868] sm:$0xff] }
 0x104   : > { %2955 = vmatpush2.bf16.msra.mxu0 %v6759_v17  ;;  %v6706_v17 = vcombine.high %v811_v7, %v815_v10  ;;  %v763_v61 = vld [vmem:[#allocation8 + $0x808] sm:$0xff]  ;;  %v6666_v62 = vcombine.high %v771_v51, %v775_v53  ;;  %v6665_v1 = vcombine.low %v771_v51, %v775_v53 }
 0x105   : > { %2996 = vmatpush2.bf16.msra.mxu1 %v6505_v18  ;;  %2956 = vmatprep.subr.bf16.mxu0 %v6752_v19  ;;  %v803_v18 = vld [vmem:[#allocation8 + $0x948] sm:$0xff] }
 0x106   : > { %2997 = vmatprep.subr.bf16.mxu1 %v6498_v23  ;;  %v807_v19 = vld [vmem:[#allocation8 + $0x968] sm:$0xff] }
 0x107   : > { %v667_v23 = vld [vmem:[#allocation8 + $0x508] sm:$0xff]  ;;  %v6697_v29 = vcombine.low %v803_v18, %v807_v19 }
 0x108   : > { %2957 = vmatpush2.bf16.msra.mxu0 %v6751_v25  ;;  %v795_v25 = vld [vmem:[#allocation8 + $0x908] sm:$0xff]  ;;  %v6562_v30 = vcombine.high %v667_v23, %v671_v24 }
 0x109   : > { %2998 = vmatpush2.bf16.msra.mxu1 %v6497_v26  ;;  %2958 = vmatprep.subr.bf16.mxu0 %v6744_v27  ;;  %v6698_v26 = vcombine.high %v803_v18, %v807_v19  ;;  %v799_v27 = vld [vmem:[#allocation8 + $0x928] sm:$0xff] }
 0x10a   : > { %2999 = vmatprep.subr.bf16.mxu1 %v6490_v31  ;;  %v659_v31 = vld [vmem:[#allocation8 + $0x4c8] sm:$0xff]  ;;  %v6690_v34 = vcombine.high %v795_v25, %v799_v27  ;;  %v6689_v37 = vcombine.low %v795_v25, %v799_v27 }
 0x10b   : > { %v6554_v38 = vcombine.high %v659_v31, %v663_v32  ;;  %v6553_v44 = vcombine.low %v659_v31, %v663_v32  ;;  %v883_v5 = vld [vmem:[#allocation8 + $0xbc8] sm:$0xff] }
 0x10c   : > { %2959 = vmatpush2.bf16.msra.mxu0 %v6743_v33  ;;  %v787_v33 = vld [vmem:[#allocation8 + $0x8c8] sm:$0xff] }
 0x10d   : > { %3000 = vmatpush2.bf16.msra.mxu1 %v6489_v35  ;;  %2960 = vmatprep.subr.bf16.mxu0 %v6736_v36  ;;  %v791_v35 = vld [vmem:[#allocation8 + $0x8e8] sm:$0xff]  ;;  %v6561_v36 = vcombine.low %v667_v23, %v671_v24 }
 0x10e   : > { %3001 = vmatprep.subr.bf16.mxu1 %v6482_v40  ;;  %v655_v40 = vld [vmem:[#allocation8 + $0x4a8] sm:$0xff]  ;;  %v6682_v42 = vcombine.high %v787_v33, %v791_v35 }
 0x10f   : > { %v6545_v54 = vcombine.low %v651_v39, %v655_v40  ;;  %v887_v7 = vld [vmem:[#allocation8 + $0xbe8] sm:$0xff] }
 0x110   : > { %2961 = vmatpush2.bf16.msra.mxu0 %v6735_v43  ;;  %v783_v43 = vld [vmem:[#allocation8 + $0x8a8] sm:$0xff]  ;;  %v6778_v16 = vcombine.high %v883_v5, %v887_v7  ;;  %v6777_v19 = vcombine.low %v883_v5, %v887_v7 }
 0x111   : > { %3002 = vmatpush2.bf16.msra.mxu1 %v6481_v46  ;;  %2962 = vmatprep.subr.bf16.mxu0 %v6728_v47  ;;  %v6681_v46 = vcombine.low %v787_v33, %v791_v35  ;;  %v6546_v47 = vcombine.high %v651_v39, %v655_v40  ;;  %v875_v15 = vld [vmem:[#allocation8 + $0xb88] sm:$0xff] }
 0x112   : > { %3003 = vmatprep.subr.bf16.mxu1 %v6474_v52  ;;  %v6674_v52 = vcombine.high %v779_v41, %v783_v43  ;;  %v867_v23 = vld [vmem:[#allocation8 + $0xb48] sm:$0xff] }
 0x113   : > { %v871_v25 = vld [vmem:[#allocation8 + $0xb68] sm:$0xff] }
 0x114   : > { %2963 = vmatpush2.bf16.msra.mxu0 %v6727_v55  ;;  %v6673_v55 = vcombine.low %v779_v41, %v783_v43  ;;  %v859_v31 = vld [vmem:[#allocation8 + $0xb08] sm:$0xff]  ;;  %v6762_v32 = vcombine.high %v867_v23, %v871_v25  ;;  %v6761_v35 = vcombine.low %v867_v23, %v871_v25  ;;  %v688_v23 = vld [vmem:[#allocation8 + $0x5b0] sm:$0xff] }
 0x115   : > { %3004 = vmatpush2.bf16.msra.mxu1 %v6473_v56  ;;  %2964 = vmatprep.subr.bf16.mxu0 %v6720_v58  ;;  %v6538_v56 = vcombine.high %v643_v49, %v647_v50  ;;  %v635_v58 = vld [vmem:[#allocation8 + $0x408] sm:$0xff] }
 0x116   : > { %3005 = vmatprep.subr.bf16.mxu1 %v6466_v63  ;;  %v767_v63 = vld [vmem:[#allocation8 + $0x828] sm:$0xff] }
 0x117   : > { %v6658_v6 = vcombine.high %v763_v61, %v767_v63  ;;  %v6657_v10 = vcombine.low %v763_v61, %v767_v63  ;;  %v863_v33 = vld [vmem:[#allocation8 + $0xb28] sm:$0xff] }
 0x118   : > { %2965 = vmatpush2.bf16.msra.mxu0 %v6719_v2  ;;  %v6530_v2 = vcombine.high %v635_v58, %v639_v59  ;;  %v851_v39 = vld [vmem:[#allocation8 + $0xac8] sm:$0xff]  ;;  %v6754_v40 = vcombine.high %v859_v31, %v863_v33  ;;  %v6753_v43 = vcombine.low %v859_v31, %v863_v33  ;;  %v680_v31 = vld [vmem:[#allocation8 + $0x570] sm:$0xff] }
 0x119   : > { %3006 = vmatpush2.bf16.msra.mxu1 %v6465_v3  ;;  %3016 = vmatprep.subr.bf16.mxu0 %v6586_v4  ;;  %v755_v3 = vld [vmem:[#allocation8 + $0x7c8] sm:$0xff] }
 0x11a   : > { %3057 = vmatprep.subr.bf16.mxu1 %v6714_v9  ;;  %v759_v4 = vld [vmem:[#allocation8 + $0x7e8] sm:$0xff]  ;;  %v6529_v9 = vcombine.low %v635_v58, %v639_v59 }
 0x11b   : > { %2967 = vmatmul.mubr.bf16.vlgmr.msra.gmra.mxu0 %v8458_v11  ;;  %v6649_v18 = vcombine.low %v755_v3, %v759_v4  ;;  %v855_v41 = vld [vmem:[#allocation8 + $0xae8] sm:$0xff] }
 0x11c   : > { %3008 = vmatmul.mubr.bf16.vlgmr.msra.gmra.mxu1 %v8443_v45  ;;  %3017 = vmatpush1.bf16.msra.mxu0 %v6585_v12  ;;  %v6650_v12 = vcombine.high %v755_v3, %v759_v4  ;;  %v843_v49 = vld [vmem:[#allocation8 + $0xa88] sm:$0xff]  ;;  %v6746_v50 = vcombine.high %v851_v39, %v855_v41  ;;  %v6745_v53 = vcombine.low %v851_v39, %v855_v41  ;;  %v672_v39 = vld [vmem:[#allocation8 + $0x530] sm:$0xff] }
 0x11d   : > { %3058 = vmatpush1.bf16.msra.mxu1 %v6713_v13  ;;  %3018 = vmatprep.subr.bf16.mxu0 %v6578_v14  ;;  %v747_v13 = vld [vmem:[#allocation8 + $0x788] sm:$0xff] }
 0x11e   : > { %3059 = vmatprep.subr.bf16.mxu1 %v6706_v17  ;;  %3048 = vmatprep.mubr.bf16.mxu0 %v8434_v60  ;;  %v751_v14 = vld [vmem:[#allocation8 + $0x7a8] sm:$0xff] }
 0x11f   : > { %3089 = vmatprep.mubr.bf16.mxu1 %v8452_v8  ;;  %v879_v17 = vld [vmem:[#allocation8 + $0xba8] sm:$0xff] }
 0x120   : > { %3019 = vmatpush1.bf16.msra.mxu0 %v6577_v20  ;;  %v6642_v20 = vcombine.high %v747_v13, %v751_v14  ;;  %v6770_v24 = vcombine.high %v875_v15, %v879_v17  ;;  %v6769_v27 = vcombine.low %v875_v15, %v879_v17  ;;  %v847_v51 = vld [vmem:[#allocation8 + $0xaa8] sm:$0xff]  ;;  %v696_v15 = vld [vmem:[#allocation8 + $0x5f0] sm:$0xff] }
 0x121   : > { %3060 = vmatpush1.bf16.msra.mxu1 %v6705_v21  ;;  %3020 = vmatprep.subr.bf16.mxu0 %v6570_v22  ;;  %v739_v21 = vld [vmem:[#allocation8 + $0x748] sm:$0xff]  ;;  %v6738_v59 = vcombine.high %v843_v49, %v847_v51  ;;  %v6737_v63 = vcombine.low %v843_v49, %v847_v51  ;;  %v664_v49 = vld [vmem:[#allocation8 + $0x4f0] sm:$0xff] }
 0x122   : > { %3061 = vmatprep.subr.bf16.mxu1 %v6698_v26  ;;  %v743_v22 = vld [vmem:[#allocation8 + $0x768] sm:$0xff]  ;;  %v6641_v26 = vcombine.low %v747_v13, %v751_v14  ;;  %v692_v13 = vld [vmem:[#allocation8 + $0x5d0] sm:$0xff] }
 0x123   : > { %v835_v58 = vld [vmem:[#allocation8 + $0xa48] sm:$0xff]  ;;  %v6587_v25 = vcombine.low %v692_v13, %v696_v15 }
 0x124   : > { %3021 = vmatpush1.bf16.msra.mxu0 %v6569_v28  ;;  %v6634_v28 = vcombine.high %v739_v21, %v743_v22  ;;  %v839_v61 = vld [vmem:[#allocation8 + $0xa68] sm:$0xff] }
 0x125   : > { %3062 = vmatpush1.bf16.msra.mxu1 %v6697_v29  ;;  %3022 = vmatprep.subr.bf16.mxu0 %v6562_v30  ;;  %v731_v29 = vld [vmem:[#allocation8 + $0x708] sm:$0xff]  ;;  %v6730_v4 = vcombine.high %v835_v58, %v839_v61  ;;  %v6729_v7 = vcombine.low %v835_v58, %v839_v61  ;;  %v656_v58 = vld [vmem:[#allocation8 + $0x4b0] sm:$0xff] }
 0x126   : > { %3063 = vmatprep.subr.bf16.mxu1 %v6690_v34  ;;  %v735_v30 = vld [vmem:[#allocation8 + $0x728] sm:$0xff]  ;;  %v6633_v34 = vcombine.low %v739_v21, %v743_v22  ;;  %v684_v21 = vld [vmem:[#allocation8 + $0x590] sm:$0xff]  ;;  %v6588_v22 = vcombine.high %v692_v13, %v696_v15 }
 0x127   : > { %v827_v3 = vld [vmem:[#allocation8 + $0xa08] sm:$0xff]  ;;  %v6579_v33 = vcombine.low %v684_v21, %v688_v23  ;;  %v640_v13 = vld [vmem:[#allocation8 + $0x430] sm:$0xff] }
 0x128   : > { %3023 = vmatpush1.bf16.msra.mxu0 %v6561_v36  ;;  %v6626_v36 = vcombine.high %v731_v29, %v735_v30  ;;  %v831_v5 = vld [vmem:[#allocation8 + $0xa28] sm:$0xff] }
 0x129   : > { %3064 = vmatpush1.bf16.msra.mxu1 %v6689_v37  ;;  %3024 = vmatprep.subr.bf16.mxu0 %v6554_v38  ;;  %v723_v37 = vld [vmem:[#allocation8 + $0x6c8] sm:$0xff]  ;;  %v6722_v14 = vcombine.high %v827_v3, %v831_v5  ;;  %v6721_v17 = vcombine.low %v827_v3, %v831_v5  ;;  %v648_v3 = vld [vmem:[#allocation8 + $0x470] sm:$0xff] }
 0x12a   : > { %3065 = vmatprep.subr.bf16.mxu1 %v6682_v42  ;;  %v727_v38 = vld [vmem:[#allocation8 + $0x6e8] sm:$0xff]  ;;  %v6625_v42 = vcombine.low %v731_v29, %v735_v30  ;;  %v676_v29 = vld [vmem:[#allocation8 + $0x550] sm:$0xff]  ;;  %v6580_v30 = vcombine.high %v684_v21, %v688_v23 }
 0x12b   : > { %v6571_v41 = vcombine.low %v676_v29, %v680_v31  ;;  %v760_v21 = vld [vmem:[#allocation8 + $0x7f0] sm:$0xff] }
 0x12c   : > { %3025 = vmatpush1.bf16.msra.mxu0 %v6553_v44  ;;  %v6618_v44 = vcombine.high %v723_v37, %v727_v38 }
 0x12d   : > { %3066 = vmatpush1.bf16.msra.mxu1 %v6681_v46  ;;  %3026 = vmatprep.subr.bf16.mxu0 %v6546_v47  ;;  %v715_v46 = vld [vmem:[#allocation8 + $0x688] sm:$0xff] }
 0x12e   : > { %3067 = vmatprep.subr.bf16.mxu1 %v6674_v52  ;;  %v719_v47 = vld [vmem:[#allocation8 + $0x6a8] sm:$0xff]  ;;  %v6617_v52 = vcombine.low %v723_v37, %v727_v38  ;;  %v668_v37 = vld [vmem:[#allocation8 + $0x510] sm:$0xff]  ;;  %v6572_v38 = vcombine.high %v676_v29, %v680_v31 }
 0x12f   : > { %v6563_v51 = vcombine.low %v668_v37, %v672_v39  ;;  %v752_v29 = vld [vmem:[#allocation8 + $0x7b0] sm:$0xff] }
 0x130   : > { %3027 = vmatpush1.bf16.msra.mxu0 %v6545_v54  ;;  %v6610_v54 = vcombine.high %v715_v46, %v719_v47 }
 0x131   : > { %3068 = vmatpush1.bf16.msra.mxu1 %v6673_v55  ;;  %3028 = vmatprep.subr.bf16.mxu0 %v6538_v56  ;;  %v707_v55 = vld [vmem:[#allocation8 + $0x648] sm:$0xff] }
 0x132   : > { %3069 = vmatprep.subr.bf16.mxu1 %v6666_v62  ;;  %v711_v56 = vld [vmem:[#allocation8 + $0x668] sm:$0xff]  ;;  %v6609_v62 = vcombine.low %v715_v46, %v719_v47  ;;  %v660_v46 = vld [vmem:[#allocation8 + $0x4d0] sm:$0xff]  ;;  %v6564_v47 = vcombine.high %v668_v37, %v672_v39 }
 0x133   : > { %v6555_v61 = vcombine.low %v660_v46, %v664_v49  ;;  %v744_v37 = vld [vmem:[#allocation8 + $0x770] sm:$0xff] }
 0x134   : > { %3029 = vmatpush1.bf16.msra.mxu0 %v6537_v0  ;;  %v6602_v0 = vcombine.high %v707_v55, %v711_v56 }
 0x135   : > { %3070 = vmatpush1.bf16.msra.mxu1 %v6665_v1  ;;  %3030 = vmatprep.subr.bf16.mxu0 %v6530_v2  ;;  %v699_v1 = vld [vmem:[#allocation8 + $0x608] sm:$0xff] }
 0x136   : > { %3071 = vmatprep.subr.bf16.mxu1 %v6658_v6  ;;  %v703_v2 = vld [vmem:[#allocation8 + $0x628] sm:$0xff]  ;;  %v6601_v6 = vcombine.low %v707_v55, %v711_v56  ;;  %v652_v55 = vld [vmem:[#allocation8 + $0x490] sm:$0xff]  ;;  %v6556_v56 = vcombine.high %v660_v46, %v664_v49 }
 0x137   : > { %v6547_v5 = vcombine.low %v652_v55, %v656_v58  ;;  %v736_v46 = vld [vmem:[#allocation8 + $0x730] sm:$0xff] }
 0x138   : > { %3031 = vmatpush1.bf16.msra.mxu0 %v6529_v9  ;;  %v6594_v9 = vcombine.high %v699_v1, %v703_v2 }
 0x139   : > { %3072 = vmatpush1.bf16.msra.mxu1 %v6657_v10  ;;  %3032 = vmatprep.subr.bf16.mxu0 %v6650_v12  ;;  %v564_v10 = vld [vmem:[#allocation8 + $0x1d0] sm:$0xff] }
 0x13a   : > { %3073 = vmatprep.subr.bf16.mxu1 %v6778_v16  ;;  %v568_v12 = vld [vmem:[#allocation8 + $0x1f0] sm:$0xff]  ;;  %v6593_v16 = vcombine.low %v699_v1, %v703_v2  ;;  %v6548_v2 = vcombine.high %v652_v55, %v656_v58 }
 0x13b   : > { %v644_v1 = vld [vmem:[#allocation8 + $0x450] sm:$0xff] }
 0x13c   : > { %3033 = vmatpush2.bf16.msra.mxu0 %v6649_v18  ;;  %v6460_v18 = vcombine.high %v564_v10, %v568_v12  ;;  %v6539_v15 = vcombine.low %v644_v1, %v648_v3  ;;  %v728_v55 = vld [vmem:[#allocation8 + $0x6f0] sm:$0xff] }
 0x13d   : > { %3074 = vmatpush2.bf16.msra.mxu1 %v6777_v19  ;;  %3034 = vmatprep.subr.bf16.mxu0 %v6642_v20  ;;  %v556_v19 = vld [vmem:[#allocation8 + $0x190] sm:$0xff] }
 0x13e   : > { %3075 = vmatprep.subr.bf16.mxu1 %v6770_v24  ;;  %v560_v20 = vld [vmem:[#allocation8 + $0x1b0] sm:$0xff]  ;;  %v6459_v24 = vcombine.low %v564_v10, %v568_v12  ;;  %v6540_v12 = vcombine.high %v644_v1, %v648_v3 }
 0x13f   : > { %v636_v10 = vld [vmem:[#allocation8 + $0x410] sm:$0xff] }
 0x140   : > { %3035 = vmatpush2.bf16.msra.mxu0 %v6641_v26  ;;  %v6452_v26 = vcombine.high %v556_v19, %v560_v20  ;;  %v6531_v23 = vcombine.low %v636_v10, %v640_v13  ;;  %v720_v1 = vld [vmem:[#allocation8 + $0x6b0] sm:$0xff] }
 0x141   : > { %3076 = vmatpush2.bf16.msra.mxu1 %v6769_v27  ;;  %3036 = vmatprep.subr.bf16.mxu0 %v6634_v28  ;;  %v548_v27 = vld [vmem:[#allocation8 + $0x150] sm:$0xff] }
 0x142   : > { %3077 = vmatprep.subr.bf16.mxu1 %v6762_v32  ;;  %v552_v28 = vld [vmem:[#allocation8 + $0x170] sm:$0xff]  ;;  %v6451_v32 = vcombine.low %v556_v19, %v560_v20  ;;  %v6532_v20 = vcombine.high %v636_v10, %v640_v13  ;;  %v892_v13 = vlaneseq }
 0x143   : > { %v756_v19 = vld [vmem:[#allocation8 + $0x7d0] sm:$0xff] }
 0x144   : > { %3037 = vmatpush2.bf16.msra.mxu0 %v6633_v34  ;;  %v6444_v34 = vcombine.high %v548_v27, %v552_v28  ;;  %v6651_v31 = vcombine.low %v756_v19, %v760_v21  ;;  %v712_v10 = vld [vmem:[#allocation8 + $0x670] sm:$0xff] }
 0x145   : > { %3078 = vmatpush2.bf16.msra.mxu1 %v6761_v35  ;;  %3038 = vmatprep.subr.bf16.mxu0 %v6626_v36  ;;  %v540_v35 = vld [vmem:[#allocation8 + $0x110] sm:$0xff] }
 0x146   : > { %3079 = vmatprep.subr.bf16.mxu1 %v6754_v40  ;;  %v544_v36 = vld [vmem:[#allocation8 + $0x130] sm:$0xff]  ;;  %v6443_v40 = vcombine.low %v548_v27, %v552_v28  ;;  %v6652_v28 = vcombine.high %v756_v19, %v760_v21 }
 0x147   : > { %v748_v27 = vld [vmem:[#allocation8 + $0x790] sm:$0xff] }
 0x148   : > { %3039 = vmatpush2.bf16.msra.mxu0 %v6625_v42  ;;  %v6436_v42 = vcombine.high %v540_v35, %v544_v36  ;;  %v6643_v39 = vcombine.low %v748_v27, %v752_v29 }
 0x149   : > { %3080 = vmatpush2.bf16.msra.mxu1 %v6753_v43  ;;  %3040 = vmatprep.subr.bf16.mxu0 %v6618_v44  ;;  %v532_v43 = vld [vmem:[#allocation8 + $0xd0] sm:$0xff] }
 0x14a   : > { %3081 = vmatprep.subr.bf16.mxu1 %v6746_v50  ;;  %v536_v44 = vld [vmem:[#allocation8 + $0xf0] sm:$0xff]  ;;  %v6435_v50 = vcombine.low %v540_v35, %v544_v36  ;;  %v6644_v36 = vcombine.high %v748_v27, %v752_v29  ;;  %v565_v27 = vld [vmem:[#allocation8 + $0x1d8] sm:$0xff] }
 0x14b   : > { %v740_v35 = vld [vmem:[#allocation8 + $0x750] sm:$0xff]  ;;  %v569_v29 = vld [vmem:[#allocation8 + $0x1f8] sm:$0xff] }
 0x14c   : > { %3041 = vmatpush2.bf16.msra.mxu0 %v6617_v52  ;;  %v6428_v52 = vcombine.high %v532_v43, %v536_v44  ;;  %v6635_v49 = vcombine.low %v740_v35, %v744_v37 }
 0x14d   : > { %3082 = vmatpush2.bf16.msra.mxu1 %v6745_v53  ;;  %3042 = vmatprep.subr.bf16.mxu0 %v6610_v54  ;;  %v524_v53 = vld [vmem:[#allocation8 + $0x90] sm:$0xff] }
 0x14e   : > { %3083 = vmatprep.subr.bf16.mxu1 %v6738_v59  ;;  %v528_v54 = vld [vmem:[#allocation8 + $0xb0] sm:$0xff]  ;;  %v6427_v59 = vcombine.low %v532_v43, %v536_v44  ;;  %v6636_v44 = vcombine.high %v740_v35, %v744_v37  ;;  %v557_v37 = vld [vmem:[#allocation8 + $0x198] sm:$0xff] }
 0x14f   : > { %v732_v43 = vld [vmem:[#allocation8 + $0x710] sm:$0xff] }
 0x150   : > { %3043 = vmatpush2.bf16.msra.mxu0 %v6609_v62  ;;  %v6420_v62 = vcombine.high %v524_v53, %v528_v54  ;;  %v6627_v58 = vcombine.low %v732_v43, %v736_v46  ;;  %v812_v35 = vld [vmem:[#allocation8 + $0x990] sm:$0xff] }
 0x151   : > { %3084 = vmatpush2.bf16.msra.mxu1 %v6737_v63  ;;  %3044 = vmatprep.subr.bf16.mxu0 %v6602_v0  ;;  %v516_v63 = vld [vmem:[#allocation8 + $0x50] sm:$0xff] }
 0x152   : > { %3085 = vmatprep.subr.bf16.mxu1 %v6730_v4  ;;  %v520_v0 = vld [vmem:[#allocation8 + $0x70] sm:$0xff]  ;;  %v6419_v4 = vcombine.low %v524_v53, %v528_v54  ;;  %v6628_v54 = vcombine.high %v732_v43, %v736_v46  ;;  %v6461_v43 = vcombine.low %v565_v27, %v569_v29 }
 0x153   : > { %v724_v53 = vld [vmem:[#allocation8 + $0x6d0] sm:$0xff] }
 0x154   : > { %3045 = vmatpush2.bf16.msra.mxu0 %v6601_v6  ;;  %v6412_v6 = vcombine.high %v516_v63, %v520_v0  ;;  %v6619_v3 = vcombine.low %v724_v53, %v728_v55 }
 0x155   : > { %3086 = vmatpush2.bf16.msra.mxu1 %v6729_v7  ;;  %3046 = vmatprep.subr.bf16.mxu0 %v6594_v9  ;;  %v508_v7 = vld [vmem:[#allocation8 + $0x10] sm:$0xff] }
 0x156   : > { %3087 = vmatprep.subr.bf16.mxu1 %v6722_v14  ;;  %v512_v9 = vld [vmem:[#allocation8 + $0x30] sm:$0xff]  ;;  %v6411_v14 = vcombine.low %v516_v63, %v520_v0  ;;  %v6620_v0 = vcombine.high %v724_v53, %v728_v55  ;;  %v553_v53 = vld [vmem:[#allocation8 + $0x178] sm:$0xff] }
 0x157   : > { %v716_v63 = vld [vmem:[#allocation8 + $0x690] sm:$0xff] }
 0x158   : > { %3047 = vmatpush2.bf16.msra.mxu0 %v6593_v16  ;;  %v6404_v16 = vcombine.high %v508_v7, %v512_v9 }
 0x159   : > { %3088 = vmatpush2.bf16.msra.mxu1 %v6721_v17  ;;  %3098 = vmatprep.subr.bf16.mxu0 %v6460_v18  ;;  %v628_v17 = vld [vmem:[#allocation8 + $0x3d0] sm:$0xff] }
 0x15a   : > { %3139 = vmatprep.subr.bf16.mxu1 %v6588_v22  ;;  %v632_v18 = vld [vmem:[#allocation8 + $0x3f0] sm:$0xff]  ;;  %v6403_v22 = vcombine.low %v508_v7, %v512_v9  ;;  %v6612_v9 = vcombine.high %v716_v63, %v720_v1 }
 0x15b   : > { %3049 = vmatmul.mubr.bf16.vlgmr.msra.gmra.mxu0 %v8445_v48  ;;  %v708_v7 = vld [vmem:[#allocation8 + $0x650] sm:$0xff] }
 0x15c   : > { %3090 = vmatmul.mubr.bf16.vlgmr.msra.gmra.mxu1 %v8458_v11  ;;  %3099 = vmatpush1.bf16.msra.mxu0 %v6459_v24  ;;  %v6524_v24 = vcombine.high %v628_v17, %v632_v18  ;;  %v6604_v19 = vcombine.high %v708_v7, %v712_v10 }
 0x15d   : > { %3140 = vmatpush1.bf16.msra.mxu1 %v6587_v25  ;;  %3100 = vmatprep.subr.bf16.mxu0 %v6452_v26  ;;  %v620_v25 = vld [vmem:[#allocation8 + $0x390] sm:$0xff] }
 0x15e   : > { %3141 = vmatprep.subr.bf16.mxu1 %v6580_v30  ;;  %3130 = vmatprep.mubr.bf16.mxu0 %v8432_v57  ;;  %v624_v26 = vld [vmem:[#allocation8 + $0x3b0] sm:$0xff]  ;;  %v6523_v30 = vcombine.low %v628_v17, %v632_v18 }
 0x15f   : > { %3171 = vmatprep.mubr.bf16.mxu1 %v8434_v60  ;;  %v576_v17 = vld [vmem:[#allocation8 + $0x230] sm:$0xff] }
 0x160   : > { %3101 = vmatpush1.bf16.msra.mxu0 %v6451_v32  ;;  %v6516_v32 = vcombine.high %v620_v25, %v624_v26  ;;  %v700_v18 = vld [vmem:[#allocation8 + $0x610] sm:$0xff] }
 0x161   : > { %3142 = vmatpush1.bf16.msra.mxu1 %v6579_v33  ;;  %3102 = vmatprep.subr.bf16.mxu0 %v6444_v34  ;;  %v612_v33 = vld [vmem:[#allocation8 + $0x350] sm:$0xff] }
 0x162   : > { %3143 = vmatprep.subr.bf16.mxu1 %v6572_v38  ;;  %v616_v34 = vld [vmem:[#allocation8 + $0x370] sm:$0xff]  ;;  %v6515_v38 = vcombine.low %v620_v25, %v624_v26 }
 0x163   : > { %v820_v25 = vld [vmem:[#allocation8 + $0x9d0] sm:$0xff] }
 0x164   : > { %3103 = vmatpush1.bf16.msra.mxu0 %v6443_v40  ;;  %v6508_v40 = vcombine.high %v612_v33, %v616_v34  ;;  %v824_v26 = vld [vmem:[#allocation8 + $0x9f0] sm:$0xff] }
 0x165   : > { %3144 = vmatpush1.bf16.msra.mxu1 %v6571_v41  ;;  %3104 = vmatprep.subr.bf16.mxu0 %v6436_v42  ;;  %v604_v41 = vld [vmem:[#allocation8 + $0x310] sm:$0xff] }
 0x166   : > { %3145 = vmatprep.subr.bf16.mxu1 %v6564_v47  ;;  %v608_v42 = vld [vmem:[#allocation8 + $0x330] sm:$0xff]  ;;  %v6507_v47 = vcombine.low %v612_v33, %v616_v34  ;;  %v6716_v34 = vcombine.high %v820_v25, %v824_v26 }
 0x168   : > { %3105 = vmatpush1.bf16.msra.mxu0 %v6435_v50  ;;  %v6500_v50 = vcombine.high %v604_v41, %v608_v42 }
 0x169   : > { %3146 = vmatpush1.bf16.msra.mxu1 %v6563_v51  ;;  %3106 = vmatprep.subr.bf16.mxu0 %v6428_v52  ;;  %v596_v51 = vld [vmem:[#allocation8 + $0x2d0] sm:$0xff] }
 0x16a   : > { %3147 = vmatprep.subr.bf16.mxu1 %v6556_v56  ;;  %v600_v52 = vld [vmem:[#allocation8 + $0x2f0] sm:$0xff]  ;;  %v6499_v56 = vcombine.low %v604_v41, %v608_v42  ;;  %v6715_v42 = vcombine.low %v820_v25, %v824_v26 }
 0x16b   : > { %v780_v25 = vld [vmem:[#allocation8 + $0x890] sm:$0xff] }
 0x16c   : > { %3107 = vmatpush1.bf16.msra.mxu0 %v6427_v59  ;;  %v6492_v59 = vcombine.high %v596_v51, %v600_v52  ;;  %v784_v26 = vld [vmem:[#allocation8 + $0x8b0] sm:$0xff] }
 0x16d   : > { %3148 = vmatpush1.bf16.msra.mxu1 %v6555_v61  ;;  %3108 = vmatprep.subr.bf16.mxu0 %v6420_v62  ;;  %v588_v61 = vld [vmem:[#allocation8 + $0x290] sm:$0xff] }
 0x16e   : > { %3149 = vmatprep.subr.bf16.mxu1 %v6548_v2  ;;  %v592_v62 = vld [vmem:[#allocation8 + $0x2b0] sm:$0xff]  ;;  %v6491_v2 = vcombine.low %v596_v51, %v600_v52  ;;  %v549_v52 = vld [vmem:[#allocation8 + $0x158] sm:$0xff] }
 0x170   : > { %3109 = vmatpush1.bf16.msra.mxu0 %v6419_v4  ;;  %v6484_v4 = vcombine.high %v588_v61, %v592_v62 }
 0x171   : > { %3150 = vmatpush1.bf16.msra.mxu1 %v6547_v5  ;;  %3110 = vmatprep.subr.bf16.mxu0 %v6412_v6  ;;  %v580_v5 = vld [vmem:[#allocation8 + $0x250] sm:$0xff] }
 0x172   : > { %3151 = vmatprep.subr.bf16.mxu1 %v6540_v12  ;;  %v584_v6 = vld [vmem:[#allocation8 + $0x270] sm:$0xff]  ;;  %v6483_v12 = vcombine.low %v588_v61, %v592_v62 }
 0x173   : > { %v6475_v21 = vcombine.low %v580_v5, %v584_v6 }
 0x174   : > { %3111 = vmatpush1.bf16.msra.mxu0 %v6411_v14  ;;  %v6611_v14 = vcombine.low %v716_v63, %v720_v1  ;;  %v6446_v1 = vcombine.high %v549_v52, %v553_v53 }
 0x175   : > { %3152 = vmatpush1.bf16.msra.mxu1 %v6539_v15  ;;  %3112 = vmatprep.subr.bf16.mxu0 %v6404_v16  ;;  %v6476_v15 = vcombine.high %v580_v5, %v584_v6  ;;  %v572_v16 = vld [vmem:[#allocation8 + $0x210] sm:$0xff]  ;;  %v541_v5 = vld [vmem:[#allocation8 + $0x118] sm:$0xff] }
 0x176   : > { %3153 = vmatprep.subr.bf16.mxu1 %v6532_v20  ;;  %v704_v20 = vld [vmem:[#allocation8 + $0x630] sm:$0xff]  ;;  %v545_v6 = vld [vmem:[#allocation8 + $0x138] sm:$0xff] }
 0x177   : > { %v6595_v33 = vcombine.low %v700_v18, %v704_v20 }
 0x178   : > { %3113 = vmatpush1.bf16.msra.mxu0 %v6403_v22  ;;  %v8468_v22 = vshrl.u32 %v892_v13, 7  ;;  %v6445_v13 = vcombine.low %v549_v52, %v553_v53 }
 0x179   : > { %3154 = vmatpush1.bf16.msra.mxu1 %v6531_v23  ;;  %3114 = vmatprep.subr.bf16.mxu0 %v6524_v24  ;;  %v6603_v23 = vcombine.low %v708_v7, %v712_v10  ;;  %v6468_v24 = vcombine.high %v572_v16, %v576_v17 }
 0x17a   : > { %3155 = vmatprep.subr.bf16.mxu1 %v6652_v28  ;;  %v6596_v28 = vcombine.high %v700_v18, %v704_v20  ;;  %v792_v18 = vld [vmem:[#allocation8 + $0x8f0] sm:$0xff]  ;;  %v537_v20 = vld [vmem:[#allocation8 + $0xf8] sm:$0xff] }
 0x17c   : > { %3115 = vmatpush2.bf16.msra.mxu0 %v6523_v30  ;;  %v8470_v30 = vld [vmem:[#allocation10] sm:$0xff] }
 0x17d   : > { %3156 = vmatpush2.bf16.msra.mxu1 %v6651_v31  ;;  %3116 = vmatprep.subr.bf16.mxu0 %v6516_v32  ;;  %v6467_v31 = vcombine.low %v572_v16, %v576_v17  ;;  %v894_v32 = vsub.s32 0, %v8468_v22  ;;  %v6438_v16 = vcombine.high %v541_v5, %v545_v6  ;;  %v788_v17 = vld [vmem:[#allocation8 + $0x8d0] sm:$0xff] }
 0x17e   : > { %3157 = vmatprep.subr.bf16.mxu1 %v6644_v36  ;;  %v816_v36 = vld [vmem:[#allocation8 + $0x9b0] sm:$0xff] }
 0x17f   : > { %v895_v41 = vrot.slane %v8470_v30, %v894_v32 }
 0x180   : > { %3117 = vmatpush2.bf16.msra.mxu0 %v6515_v38  ;;  %v6462_v38 = vcombine.high %v565_v27, %v569_v29  ;;  %v525_v27 = vld [vmem:[#allocation8 + $0x98] sm:$0xff]  ;;  %v6683_v29 = vcombine.low %v788_v17, %v792_v18 }
 0x181   : > { %3158 = vmatpush2.bf16.msra.mxu1 %v6643_v39  ;;  %3118 = vmatprep.subr.bf16.mxu0 %v6508_v40  ;;  %v898_v39 = vsub.s32 1, %v8468_v22  ;;  %v561_v40 = vld [vmem:[#allocation8 + $0x1b8] sm:$0xff] }
 0x182   : > { %3159 = vmatprep.subr.bf16.mxu1 %v6636_v44  ;;  %v6708_v44 = vcombine.high %v812_v35, %v816_v36 }
 0x183   : > { %v899_v46 = vrot.slane %v8470_v30, %v898_v39 }
 0x184   : > { %3119 = vmatpush2.bf16.msra.mxu0 %v6507_v47  ;;  %v6454_v47 = vcombine.high %v557_v37, %v561_v40 }
 0x185   : > { %3160 = vmatpush2.bf16.msra.mxu1 %v6635_v49  ;;  %3120 = vmatprep.subr.bf16.mxu0 %v6500_v50  ;;  %v804_v49 = vld [vmem:[#allocation8 + $0x950] sm:$0xff] }
 0x186   : > { %3161 = vmatprep.subr.bf16.mxu1 %v6628_v54  ;;  %v808_v50 = vld [vmem:[#allocation8 + $0x970] sm:$0xff] }
 0x187   : > { %v6700_v61 = vcombine.high %v804_v49, %v808_v50  ;;  %v6699_v10 = vcombine.low %v804_v49, %v808_v50  ;;  %v513_v49 = vld [vmem:[#allocation8 + $0x38] sm:$0xff] }
 0x188   : > { %3121 = vmatpush2.bf16.msra.mxu0 %v6499_v56  ;;  %v6707_v56 = vcombine.low %v812_v35, %v816_v36  ;;  %v772_v35 = vld [vmem:[#allocation8 + $0x850] sm:$0xff] }
 0x189   : > { %3162 = vmatpush2.bf16.msra.mxu1 %v6627_v58  ;;  %3122 = vmatprep.subr.bf16.mxu0 %v6492_v59  ;;  %v6453_v59 = vcombine.low %v557_v37, %v561_v40  ;;  %v776_v36 = vld [vmem:[#allocation8 + $0x870] sm:$0xff]  ;;  %v517_v37 = vld [vmem:[#allocation8 + $0x58] sm:$0xff]  ;;  %v6675_v40 = vcombine.low %v780_v25, %v784_v26 }
 0x18a   : > { %3163 = vmatprep.subr.bf16.mxu1 %v6620_v0  ;;  %v6667_v50 = vcombine.low %v772_v35, %v776_v36 }
 0x18c   : > { %3123 = vmatpush2.bf16.msra.mxu0 %v6491_v2  ;;  %v796_v2 = vld [vmem:[#allocation8 + $0x910] sm:$0xff] }
 0x18d   : > { %3164 = vmatpush2.bf16.msra.mxu1 %v6619_v3  ;;  %3124 = vmatprep.subr.bf16.mxu0 %v6484_v4  ;;  %v800_v3 = vld [vmem:[#allocation8 + $0x930] sm:$0xff] }
 0x18e   : > { %3165 = vmatprep.subr.bf16.mxu1 %v6612_v9 }
 0x190   : > { %3125 = vmatpush2.bf16.msra.mxu0 %v6483_v12 }
 0x191   : > { %3166 = vmatpush2.bf16.msra.mxu1 %v6611_v14  ;;  %3126 = vmatprep.subr.bf16.mxu0 %v6476_v15  ;;  %v6692_v14 = vcombine.high %v796_v2, %v800_v3 }
 0x192   : > { %3167 = vmatprep.subr.bf16.mxu1 %v6604_v19  ;;  %v533_v19 = vld [vmem:[#allocation8 + $0xd8] sm:$0xff] }
 0x194   : > { %3127 = vmatpush2.bf16.msra.mxu0 %v6475_v21  ;;  %v6691_v21 = vcombine.low %v796_v2, %v800_v3  ;;  %v880_v2 = vld [vmem:[#allocation8 + $0xbb0] sm:$0xff]  ;;  %v621_v3 = vld [vmem:[#allocation8 + $0x398] sm:$0xff] }
 0x195   : > { %3168 = vmatpush2.bf16.msra.mxu1 %v6603_v23  ;;  %3128 = vmatprep.subr.bf16.mxu0 %v6468_v24  ;;  %v6684_v23 = vcombine.high %v788_v17, %v792_v18  ;;  %v6430_v24 = vcombine.high %v533_v19, %v537_v20 }
 0x196   : > { %3169 = vmatprep.subr.bf16.mxu1 %v6596_v28  ;;  %v529_v28 = vld [vmem:[#allocation8 + $0xb8] sm:$0xff] }
 0x198   : > { %3129 = vmatpush2.bf16.msra.mxu0 %v6467_v31  ;;  %v6429_v31 = vcombine.low %v533_v19, %v537_v20  ;;  %v860_v20 = vld [vmem:[#allocation8 + $0xb10] sm:$0xff] }
 0x199   : > { %3170 = vmatpush2.bf16.msra.mxu1 %v6595_v33  ;;  %3180 = vmatprep.subr.bf16.mxu0 %v6716_v34  ;;  %v6676_v33 = vcombine.high %v780_v25, %v784_v26  ;;  %v6422_v34 = vcombine.high %v525_v27, %v529_v28 }
 0x19a   : > { %3221 = vmatprep.subr.bf16.mxu1 %v6462_v38  ;;  %v521_v38 = vld [vmem:[#allocation8 + $0x78] sm:$0xff] }
 0x19b   : > { %v2886_v51 = vpop.f32.mrf.mxu0  ;;  %3131 = vmatmul.mubr.bf16.vlgmr.msra.gmra.mxu0 %v8443_v45 }
 0x19c   : > { %v2887_v54 = vadd.f32 %v2886_v51, %v895_v41  ;;  %v2927_v55 = vpop.f32.mrf.mxu1  ;;  %3172 = vmatmul.mubr.bf16.vlgmr.msra.gmra.mxu1 %v8445_v48  ;;  %3181 = vmatpush1.bf16.msra.mxu0 %v6715_v42  ;;  %v6421_v41 = vcombine.low %v525_v27, %v529_v28  ;;  %v6668_v42 = vcombine.high %v772_v35, %v776_v36  ;;  %v852_v28 = vld [vmem:[#allocation8 + $0xad0] sm:$0xff] }
 0x19d   : > { %3222 = vmatpush1.bf16.msra.mxu1 %v6461_v43  ;;  %v2888_v58 = vpop.f32.mrf.mxu0  ;;  %3182 = vmatprep.subr.bf16.mxu0 %v6708_v44  ;;  %v6414_v43 = vcombine.high %v517_v37, %v521_v38  ;;  %v764_v44 = vld [vmem:[#allocation8 + $0x810] sm:$0xff]  ;;  %v6413_v51 = vcombine.low %v517_v37, %v521_v38 }
 0x19e   : > { %v8482_v62 = vadd.f32 %v2927_v55, %v2887_v54  ;;  %v2889_v63 = vadd.f32 %v2888_v58, %v899_v46  ;;  %v2929_v0 = vpop.f32.mrf.mxu1  ;;  %3223 = vmatprep.subr.bf16.mxu1 %v6454_v47  ;;  %3212 = vmatprep.mubr.bf16.mxu0 %v8452_v8  ;;  %v768_v46 = vld [vmem:[#allocation8 + $0x830] sm:$0xff]  ;;  %v509_v47 = vld [vmem:[#allocation8 + $0x18] sm:$0xff] }
 0x19f   : > { %v2890_v4 = vpop.f32.mrf.mxu0  ;;  %3253 = vmatprep.mubr.bf16.mxu1 %v8432_v57  ;;  %v6437_v57 = vcombine.low %v541_v5, %v545_v6  ;;  %v6660_v52 = vcombine.high %v764_v44, %v768_v46  ;;  %v6406_v53 = vcombine.high %v509_v47, %v513_v49  ;;  %v884_v54 = vld [vmem:[#allocation8 + $0xbd0] sm:$0xff]  ;;  %v633_v58 = vld [vmem:[#allocation8 + $0x3f8] sm:$0xff] }
 0x1a0   : > { %v8486_v7 = vadd.f32 %v2929_v0, %v2889_v63  ;;  %v2931_v9 = vpop.f32.mrf.mxu1  ;;  %3183 = vmatpush1.bf16.msra.mxu0 %v6707_v56  ;;  %v888_v55 = vld [vmem:[#allocation8 + $0xbf0] sm:$0xff]  ;;  %v629_v56 = vld [vmem:[#allocation8 + $0x3d8] sm:$0xff] }
 0x1a1   : > { %3224 = vmatpush1.bf16.msra.mxu1 %v6453_v59  ;;  %v2891_v12 = vpop.f32.mrf.mxu0  ;;  %3184 = vmatprep.subr.bf16.mxu0 %v6700_v61  ;;  %v6659_v59 = vcombine.low %v764_v44, %v768_v46  ;;  %v6405_v61 = vcombine.low %v509_v47, %v513_v49  ;;  %v6780_v63 = vcombine.high %v884_v54, %v888_v55  ;;  %v625_v4 = vld [vmem:[#allocation8 + $0x3b8] sm:$0xff]  ;;  %v844_v38 = vld [vmem:[#allocation8 + $0xa90] sm:$0xff] }
 0x1a2   : > { %v2932_v15 = vpop.f32.mrf.mxu1  ;;  %3225 = vmatprep.subr.bf16.mxu1 %v6446_v1  ;;  %v6526_v0 = vcombine.high %v629_v56, %v633_v58  ;;  %v876_v1 = vld [vmem:[#allocation8 + $0xb90] sm:$0xff]  ;;  %v6779_v5 = vcombine.low %v884_v54, %v888_v55  ;;  %v6525_v6 = vcombine.low %v629_v56, %v633_v58  ;;  %v6517_v17 = vcombine.low %v621_v3, %v625_v4 }
 0x1a3   : > { %v6772_v9 = vcombine.high %v876_v1, %v880_v2  ;;  %v868_v12 = vld [vmem:[#allocation8 + $0xb50] sm:$0xff]  ;;  %v617_v15 = vld [vmem:[#allocation8 + $0x378] sm:$0xff] }
 0x1a4   : > { %3185 = vmatpush1.bf16.msra.mxu0 %v6699_v10  ;;  %v6518_v10 = vcombine.high %v621_v3, %v625_v4  ;;  %v836_v49 = vld [vmem:[#allocation8 + $0xa50] sm:$0xff]  ;;  %v693_v4 = vld [vmem:[#allocation8 + $0x5d8] sm:$0xff] }
 0x1a5   : > { %3226 = vmatpush1.bf16.msra.mxu1 %v6445_v13  ;;  %3186 = vmatprep.subr.bf16.mxu0 %v6692_v14  ;;  %v872_v13 = vld [vmem:[#allocation8 + $0xb70] sm:$0xff]  ;;  %v613_v14 = vld [vmem:[#allocation8 + $0x358] sm:$0xff] }
 0x1a6   : > { %3227 = vmatprep.subr.bf16.mxu1 %v6438_v16  ;;  %v6771_v16 = vcombine.low %v876_v1, %v880_v2  ;;  %v6764_v18 = vcombine.high %v868_v12, %v872_v13  ;;  %v6510_v19 = vcombine.high %v613_v14, %v617_v15  ;;  %v6509_v25 = vcombine.low %v613_v14, %v617_v15  ;;  %v828_v58 = vld [vmem:[#allocation8 + $0xa10] sm:$0xff]  ;;  %v685_v15 = vld [vmem:[#allocation8 + $0x598] sm:$0xff] }
 0x1a8   : > { %3187 = vmatpush1.bf16.msra.mxu0 %v6691_v21  ;;  %v864_v21 = vld [vmem:[#allocation8 + $0xb30] sm:$0xff] }
 0x1a9   : > { %3228 = vmatpush1.bf16.msra.mxu1 %v6437_v57  ;;  %3188 = vmatprep.subr.bf16.mxu0 %v6684_v23  ;;  %v605_v57 = vld [vmem:[#allocation8 + $0x318] sm:$0xff]  ;;  %v6756_v26 = vcombine.high %v860_v20, %v864_v21 }
 0x1aa   : > { %3229 = vmatprep.subr.bf16.mxu1 %v6430_v24  ;;  %v609_v23 = vld [vmem:[#allocation8 + $0x338] sm:$0xff]  ;;  %v6763_v24 = vcombine.low %v868_v12, %v872_v13 }
 0x1ab   : > { %v6502_v27 = vcombine.high %v605_v57, %v609_v23  ;;  %v6501_v35 = vcombine.low %v605_v57, %v609_v23  ;;  %v677_v23 = vld [vmem:[#allocation8 + $0x558] sm:$0xff] }
 0x1ac   : > { %3189 = vmatpush1.bf16.msra.mxu0 %v6683_v29  ;;  %v856_v29 = vld [vmem:[#allocation8 + $0xaf0] sm:$0xff] }
 0x1ad   : > { %3230 = vmatpush1.bf16.msra.mxu1 %v6429_v31  ;;  %3190 = vmatprep.subr.bf16.mxu0 %v6676_v33  ;;  %v597_v31 = vld [vmem:[#allocation8 + $0x2d8] sm:$0xff]  ;;  %v6748_v36 = vcombine.high %v852_v28, %v856_v29 }
 0x1ae   : > { %3231 = vmatprep.subr.bf16.mxu1 %v6422_v34  ;;  %v601_v33 = vld [vmem:[#allocation8 + $0x2f8] sm:$0xff]  ;;  %v6755_v34 = vcombine.low %v860_v20, %v864_v21 }
 0x1af   : > { %v6494_v37 = vcombine.high %v597_v31, %v601_v33  ;;  %v6493_v44 = vcombine.low %v597_v31, %v601_v33 }
 0x1b0   : > { %3191 = vmatpush1.bf16.msra.mxu0 %v6675_v40  ;;  %v848_v40 = vld [vmem:[#allocation8 + $0xab0] sm:$0xff] }
 0x1b1   : > { %3232 = vmatpush1.bf16.msra.mxu1 %v6421_v41  ;;  %3192 = vmatprep.subr.bf16.mxu0 %v6668_v42  ;;  %v589_v41 = vld [vmem:[#allocation8 + $0x298] sm:$0xff]  ;;  %v6740_v46 = vcombine.high %v844_v38, %v848_v40 }
 0x1b2   : > { %3233 = vmatprep.subr.bf16.mxu1 %v6414_v43  ;;  %v593_v42 = vld [vmem:[#allocation8 + $0x2b8] sm:$0xff]  ;;  %v6747_v43 = vcombine.low %v852_v28, %v856_v29 }
 0x1b3   : > { %v6486_v47 = vcombine.high %v589_v41, %v593_v42  ;;  %v6485_v54 = vcombine.low %v589_v41, %v593_v42  ;;  %v797_v41 = vld [vmem:[#allocation8 + $0x918] sm:$0xff] }
 0x1b4   : > { %3193 = vmatpush1.bf16.msra.mxu0 %v6667_v50  ;;  %v840_v50 = vld [vmem:[#allocation8 + $0xa70] sm:$0xff]  ;;  %v801_v42 = vld [vmem:[#allocation8 + $0x938] sm:$0xff] }
 0x1b5   : > { %3234 = vmatpush1.bf16.msra.mxu1 %v6413_v51  ;;  %3194 = vmatprep.subr.bf16.mxu0 %v6660_v52  ;;  %v581_v51 = vld [vmem:[#allocation8 + $0x258] sm:$0xff]  ;;  %v6732_v55 = vcombine.high %v836_v49, %v840_v50 }
 0x1b6   : > { %3235 = vmatprep.subr.bf16.mxu1 %v6406_v53  ;;  %v585_v52 = vld [vmem:[#allocation8 + $0x278] sm:$0xff]  ;;  %v6739_v53 = vcombine.low %v844_v38, %v848_v40 }
 0x1b7   : > { %v6478_v56 = vcombine.high %v581_v51, %v585_v52  ;;  %v6477_v1 = vcombine.low %v581_v51, %v585_v52  ;;  %v669_v38 = vld [vmem:[#allocation8 + $0x518] sm:$0xff] }
 0x1b8   : > { %3195 = vmatpush1.bf16.msra.mxu0 %v6659_v59  ;;  %v832_v59 = vld [vmem:[#allocation8 + $0xa30] sm:$0xff]  ;;  %v673_v40 = vld [vmem:[#allocation8 + $0x538] sm:$0xff] }
 0x1b9   : > { %3236 = vmatpush1.bf16.msra.mxu1 %v6405_v61  ;;  %3196 = vmatprep.subr.bf16.mxu0 %v6780_v63  ;;  %v573_v61 = vld [vmem:[#allocation8 + $0x218] sm:$0xff]  ;;  %v6724_v2 = vcombine.high %v828_v58, %v832_v59 }
 0x1ba   : > { %3237 = vmatprep.subr.bf16.mxu1 %v6526_v0  ;;  %v577_v63 = vld [vmem:[#allocation8 + $0x238] sm:$0xff]  ;;  %v6731_v0 = vcombine.low %v836_v49, %v840_v50  ;;  %v6694_v50 = vcombine.high %v797_v41, %v801_v42 }
 0x1bb   : > { %v6470_v3 = vcombine.high %v573_v61, %v577_v63  ;;  %v6469_v12 = vcombine.low %v573_v61, %v577_v63  ;;  %v661_v51 = vld [vmem:[#allocation8 + $0x4d8] sm:$0xff] }
 0x1bc   : > { %3197 = vmatpush2.bf16.msra.mxu0 %v6779_v5  ;;  %v697_v5 = vld [vmem:[#allocation8 + $0x5f8] sm:$0xff] }
 0x1bd   : > { %3238 = vmatpush2.bf16.msra.mxu1 %v6525_v6  ;;  %3198 = vmatprep.subr.bf16.mxu0 %v6772_v9  ;;  %v821_v6 = vld [vmem:[#allocation8 + $0x9d8] sm:$0xff]  ;;  %v6590_v13 = vcombine.high %v693_v4, %v697_v5 }
 0x1be   : > { %3239 = vmatprep.subr.bf16.mxu1 %v6518_v10  ;;  %v825_v9 = vld [vmem:[#allocation8 + $0x9f8] sm:$0xff]  ;;  %v6723_v10 = vcombine.low %v828_v58, %v832_v59 }
 0x1bf   : > { %v6718_v14 = vcombine.high %v821_v6, %v825_v9  ;;  %v6717_v20 = vcombine.low %v821_v6, %v825_v9  ;;  %v665_v52 = vld [vmem:[#allocation8 + $0x4f8] sm:$0xff] }
 0x1c0   : > { %3199 = vmatpush2.bf16.msra.mxu0 %v6771_v16  ;;  %v689_v16 = vld [vmem:[#allocation8 + $0x5b8] sm:$0xff] }
 0x1c1   : > { %3240 = vmatpush2.bf16.msra.mxu1 %v6517_v17  ;;  %3200 = vmatprep.subr.bf16.mxu0 %v6764_v18  ;;  %v813_v17 = vld [vmem:[#allocation8 + $0x998] sm:$0xff]  ;;  %v6582_v21 = vcombine.high %v685_v15, %v689_v16  ;;  %v6581_v31 = vcombine.low %v685_v15, %v689_v16 }
 0x1c2   : > { %3241 = vmatprep.subr.bf16.mxu1 %v6510_v19  ;;  %v817_v18 = vld [vmem:[#allocation8 + $0x9b8] sm:$0xff]  ;;  %v6589_v19 = vcombine.low %v693_v4, %v697_v5 }
 0x1c3   : > { %v6710_v57 = vcombine.high %v813_v17, %v817_v18  ;;  %v653_v58 = vld [vmem:[#allocation8 + $0x498] sm:$0xff] }
 0x1c4   : > { %3201 = vmatpush2.bf16.msra.mxu0 %v6763_v24  ;;  %v681_v24 = vld [vmem:[#allocation8 + $0x578] sm:$0xff] }
 0x1c5   : > { %3242 = vmatpush2.bf16.msra.mxu1 %v6509_v25  ;;  %3202 = vmatprep.subr.bf16.mxu0 %v6756_v26  ;;  %v805_v26 = vld [vmem:[#allocation8 + $0x958] sm:$0xff] }
 0x1c6   : > { %3243 = vmatprep.subr.bf16.mxu1 %v6502_v27  ;;  %v809_v27 = vld [vmem:[#allocation8 + $0x978] sm:$0xff] }
 0x1c7   : > { %v657_v59 = vld [vmem:[#allocation8 + $0x4b8] sm:$0xff] }
 0x1c8   : > { %3203 = vmatpush2.bf16.msra.mxu0 %v6755_v34  ;;  %v6709_v34 = vcombine.low %v813_v17, %v817_v18  ;;  %v781_v61 = vld [vmem:[#allocation8 + $0x898] sm:$0xff] }
 0x1c9   : > { %3244 = vmatpush2.bf16.msra.mxu1 %v6501_v35  ;;  %3204 = vmatprep.subr.bf16.mxu0 %v6748_v36  ;;  %v6574_v35 = vcombine.high %v677_v23, %v681_v24  ;;  %v785_v63 = vld [vmem:[#allocation8 + $0x8b8] sm:$0xff] }
 0x1ca   : > { %3245 = vmatprep.subr.bf16.mxu1 %v6494_v37  ;;  %v6702_v37 = vcombine.high %v805_v26, %v809_v27  ;;  %v645_v4 = vld [vmem:[#allocation8 + $0x458] sm:$0xff] }
 0x1cb   : > { %v649_v5 = vld [vmem:[#allocation8 + $0x478] sm:$0xff] }
 0x1cc   : > { %3205 = vmatpush2.bf16.msra.mxu0 %v6747_v43  ;;  %v6573_v43 = vcombine.low %v677_v23, %v681_v24  ;;  %v773_v6 = vld [vmem:[#allocation8 + $0x858] sm:$0xff] }
 0x1cd   : > { %3246 = vmatpush2.bf16.msra.mxu1 %v6493_v44  ;;  %3206 = vmatprep.subr.bf16.mxu0 %v6740_v46  ;;  %v6701_v46 = vcombine.low %v805_v26, %v809_v27  ;;  %v777_v9 = vld [vmem:[#allocation8 + $0x878] sm:$0xff] }
 0x1ce   : > { %3247 = vmatprep.subr.bf16.mxu1 %v6486_v47  ;;  %v6566_v47 = vcombine.high %v669_v38, %v673_v40  ;;  %v637_v15 = vld [vmem:[#allocation8 + $0x418] sm:$0xff] }
 0x1cf   : > { %v641_v16 = vld [vmem:[#allocation8 + $0x438] sm:$0xff] }
 0x1d0   : > { %3207 = vmatpush2.bf16.msra.mxu0 %v6739_v53  ;;  %v789_v53 = vld [vmem:[#allocation8 + $0x8d8] sm:$0xff]  ;;  %v6533_v27 = vcombine.low %v637_v15, %v641_v16 }
 0x1d1   : > { %3248 = vmatpush2.bf16.msra.mxu1 %v6485_v54  ;;  %3208 = vmatprep.subr.bf16.mxu0 %v6732_v55  ;;  %v6565_v54 = vcombine.low %v669_v38, %v673_v40  ;;  %v6558_v55 = vcombine.high %v661_v51, %v665_v52  ;;  %v765_v17 = vld [vmem:[#allocation8 + $0x818] sm:$0xff] }
 0x1d2   : > { %3249 = vmatprep.subr.bf16.mxu1 %v6478_v56  ;;  %v769_v18 = vld [vmem:[#allocation8 + $0x838] sm:$0xff] }
 0x1d3   : > { %v757_v23 = vld [vmem:[#allocation8 + $0x7d8] sm:$0xff] }
 0x1d4   : > { %3209 = vmatpush2.bf16.msra.mxu0 %v6731_v0  ;;  %v6557_v0 = vcombine.low %v661_v51, %v665_v52  ;;  %v761_v24 = vld [vmem:[#allocation8 + $0x7f8] sm:$0xff] }
 0x1d5   : > { %3250 = vmatpush2.bf16.msra.mxu1 %v6477_v1  ;;  %3210 = vmatprep.subr.bf16.mxu0 %v6724_v2  ;;  %v6550_v2 = vcombine.high %v653_v58, %v657_v59  ;;  %v889_v26 = vld [vmem:[#allocation8 + $0xbf8] sm:$0xff] }
 0x1d6   : > { %3251 = vmatprep.subr.bf16.mxu1 %v6470_v3  ;;  %v6678_v3 = vcombine.high %v781_v61, %v785_v63  ;;  %v753_v38 = vld [vmem:[#allocation8 + $0x7b8] sm:$0xff] }
 0x1d7   : > { %v877_v40 = vld [vmem:[#allocation8 + $0xb98] sm:$0xff] }
 0x1d8   : > { %3211 = vmatpush2.bf16.msra.mxu0 %v6723_v10  ;;  %v6549_v10 = vcombine.low %v653_v58, %v657_v59 }
 0x1d9   : > { %3252 = vmatpush2.bf16.msra.mxu1 %v6469_v12  ;;  %3262 = vmatprep.subr.bf16.mxu0 %v6590_v13  ;;  %v6677_v12 = vcombine.low %v781_v61, %v785_v63  ;;  %v6542_v13 = vcombine.high %v645_v4, %v649_v5  ;;  %v725_v63 = vld [vmem:[#allocation8 + $0x6d8] sm:$0xff] }
 0x1da   : > { %3303 = vmatprep.subr.bf16.mxu1 %v6718_v14  ;;  %v6670_v14 = vcombine.high %v773_v6, %v777_v9 }
 0x1db   : > { %v2968_v25 = vpop.f32.mrf.mxu0  ;;  %3213 = vmatmul.mubr.bf16.vlgmr.msra.gmra.mxu0 %v8458_v11 }
 0x1dc   : > { %v8490_v28 = vadd.f32 %v2968_v25, %v8482_v62  ;;  %v8492_v29 = vpop.f32.mrf.mxu1  ;;  %3254 = vmatmul.mubr.bf16.vlgmr.msra.gmra.mxu1 %v8443_v45  ;;  %3263 = vmatpush1.bf16.msra.mxu0 %v6589_v19  ;;  %v6541_v19 = vcombine.low %v645_v4, %v649_v5  ;;  %v885_v25 = vld [vmem:[#allocation8 + $0xbd8] sm:$0xff] }
 0x1dd   : > { %3304 = vmatpush1.bf16.msra.mxu1 %v6717_v20  ;;  %v8495_v33 = vpop.f32.mrf.mxu0  ;;  %3264 = vmatprep.subr.bf16.mxu0 %v6582_v21  ;;  %v6669_v20 = vcombine.low %v773_v6, %v777_v9  ;;  %v6534_v21 = vcombine.high %v637_v15, %v641_v16  ;;  %v717_v9 = vld [vmem:[#allocation8 + $0x698] sm:$0xff] }
 0x1de   : > { %v8497_v36 = vpop.f32.mrf.mxu1  ;;  %3305 = vmatprep.subr.bf16.mxu1 %v6710_v57  ;;  %3294 = vmatprep.mubr.bf16.mxu0 %v8434_v60  ;;  %v793_v60 = vld [vmem:[#allocation8 + $0x8f8] sm:$0xff]  ;;  %v6662_v57 = vcombine.high %v765_v17, %v769_v18 }
 0x1df   : > { %v2972_v62 = vpop.f32.mrf.mxu0  ;;  %3335 = vmatprep.mubr.bf16.mxu1 %v8452_v8  ;;  %v6693_v8 = vcombine.low %v797_v41, %v801_v42  ;;  %v6686_v56 = vcombine.high %v789_v53, %v793_v60  ;;  %v6685_v1 = vcombine.low %v789_v53, %v793_v60  ;;  %v6653_v41 = vcombine.low %v757_v23, %v761_v24  ;;  %v733_v60 = vld [vmem:[#allocation8 + $0x718] sm:$0xff] }
 0x1e0   : > { %v3013_v45 = vpop.f32.mrf.mxu1  ;;  %3265 = vmatpush1.bf16.msra.mxu0 %v6581_v31  ;;  %v6661_v31 = vcombine.low %v765_v17, %v769_v18  ;;  %v881_v62 = vld [vmem:[#allocation8 + $0xbb8] sm:$0xff]  ;;  %v6781_v42 = vcombine.low %v885_v25, %v889_v26 }
 0x1e1   : > { %3306 = vmatpush1.bf16.msra.mxu1 %v6709_v34  ;;  %v2973_v44 = vpop.f32.mrf.mxu0  ;;  %3266 = vmatprep.subr.bf16.mxu0 %v6574_v35  ;;  %v6654_v34 = vcombine.high %v757_v23, %v761_v24  ;;  %v6782_v35 = vcombine.high %v885_v25, %v889_v26  ;;  %v6773_v51 = vcombine.low %v877_v40, %v881_v62  ;;  %v709_v18 = vld [vmem:[#allocation8 + $0x658] sm:$0xff] }
 0x1e2   : > { %v3014_v49 = vpop.f32.mrf.mxu1  ;;  %3307 = vmatprep.subr.bf16.mxu1 %v6702_v37  ;;  %v749_v37 = vld [vmem:[#allocation8 + $0x798] sm:$0xff] }
 0x1e3   : > { %v6646_v45 = vcombine.high %v749_v37, %v753_v38  ;;  %v741_v44 = vld [vmem:[#allocation8 + $0x758] sm:$0xff] }
 0x1e4   : > { %3267 = vmatpush1.bf16.msra.mxu0 %v6573_v43  ;;  %v6774_v43 = vcombine.high %v877_v40, %v881_v62  ;;  %v873_v49 = vld [vmem:[#allocation8 + $0xb78] sm:$0xff]  ;;  %v2971_v62 = vadd.f32 %v8495_v33, %v8486_v7  ;;  %v7302_v33 = vld [vmem:[#allocation11 + $0x124] ss:$24 sps:$4 sm:$0xff]  }
 0x1e5   : > { %3308 = vmatpush1.bf16.msra.mxu1 %v6701_v46  ;;  %3268 = vmatprep.subr.bf16.mxu0 %v6566_v47  ;;  %v745_v46 = vld [vmem:[#allocation8 + $0x778] sm:$0xff] }
 0x1e6   : > { %3309 = vmatprep.subr.bf16.mxu1 %v6694_v50  ;;  %v869_v47 = vld [vmem:[#allocation8 + $0xb58] sm:$0xff]  ;;  %v6645_v50 = vcombine.low %v749_v37, %v753_v38  ;;  %v6638_v52 = vcombine.high %v741_v44, %v745_v46 }
 0x1e7   : > { %v6766_v53 = vcombine.high %v869_v47, %v873_v49  ;;  %v6765_v58 = vcombine.low %v869_v47, %v873_v49  ;;  %v701_v26 = vld [vmem:[#allocation8 + $0x618] sm:$0xff] }
 0x1e8   : > { %3269 = vmatpush1.bf16.msra.mxu0 %v6565_v54  ;;  %v737_v54 = vld [vmem:[#allocation8 + $0x738] sm:$0xff] }
 0x1e9   : > { %3310 = vmatpush1.bf16.msra.mxu1 %v6693_v8  ;;  %3270 = vmatprep.subr.bf16.mxu0 %v6558_v55  ;;  %v861_v8 = vld [vmem:[#allocation8 + $0xb18] sm:$0xff]  ;;  %v6630_v59 = vcombine.high %v733_v60, %v737_v54 }
 0x1ea   : > { %3311 = vmatprep.subr.bf16.mxu1 %v6686_v56  ;;  %v865_v55 = vld [vmem:[#allocation8 + $0xb38] sm:$0xff]  ;;  %v6637_v56 = vcombine.low %v741_v44, %v745_v46  ;;  %v3345_v46 = vmax.f32 %v2971_v62, 0.0  ;;  %v7351_v62 = vld [vmem:[#allocation11 + $0x5a0] ss:$24 sps:$4 sm:$0xff]  }
 0x1eb   : > { %v6758_v61 = vcombine.high %v861_v8, %v865_v55  ;;  %v6757_v4 = vcombine.low %v861_v8, %v865_v55  ;;  %v7299_v44 = vld [vmem:[#allocation11 + $0x454] ss:$24 sps:$4 sm:$0xff]   ;;  %v7294_v49 = vld [vmem:[#allocation11 + $0x150] ss:$24 sps:$4 sm:$0xff]   ;;  %v7303_v8 = vld [vmem:[#allocation11 + $0x420] ss:$24 sps:$4 sm:$0xff]  }
 0x1ec   : > { %3271 = vmatpush1.bf16.msra.mxu0 %v6557_v0  ;;  %v729_v0 = vld [vmem:[#allocation8 + $0x6f8] sm:$0xff] }
 0x1ed   : > { %3312 = vmatpush1.bf16.msra.mxu1 %v6685_v1  ;;  %3272 = vmatprep.subr.bf16.mxu0 %v6550_v2  ;;  %v853_v1 = vld [vmem:[#allocation8 + $0xad8] sm:$0xff]  ;;  %v6622_v5 = vcombine.high %v725_v63, %v729_v0 }
 0x1ee   : > { %3313 = vmatprep.subr.bf16.mxu1 %v6678_v3  ;;  %v857_v2 = vld [vmem:[#allocation8 + $0xaf8] sm:$0xff]  ;;  %v6629_v3 = vcombine.low %v733_v60, %v737_v54 }
 0x1ef   : > { %v6750_v6 = vcombine.high %v853_v1, %v857_v2  ;;  %v6749_v15 = vcombine.low %v853_v1, %v857_v2  ;;  %v7297_v7 = vld [vmem:[#allocation11 + $0x450] ss:$24 sps:$4 sm:$0xff]   ;;  %v7308_v55 = vld [vmem:[#allocation11 + $0xf4] ss:$24 sps:$4 sm:$0xff]   ;;  %v7314_v1 = vld [vmem:[#allocation11 + $0xc4] ss:$24 sps:$4 sm:$0xff]  }
 0x1f0   : > { %3273 = vmatpush1.bf16.msra.mxu0 %v6549_v10  ;;  %v721_v10 = vld [vmem:[#allocation8 + $0x6b8] sm:$0xff] }
 0x1f1   : > { %3314 = vmatpush1.bf16.msra.mxu1 %v6677_v12  ;;  %3274 = vmatprep.subr.bf16.mxu0 %v6542_v13  ;;  %v845_v12 = vld [vmem:[#allocation8 + $0xa98] sm:$0xff]  ;;  %v6614_v16 = vcombine.high %v717_v9, %v721_v10 }
 0x1f2   : > { %3315 = vmatprep.subr.bf16.mxu1 %v6670_v14  ;;  %v849_v13 = vld [vmem:[#allocation8 + $0xab8] sm:$0xff]  ;;  %v6621_v14 = vcombine.low %v725_v63, %v729_v0 }
 0x1f3   : > { %v6742_v17 = vcombine.high %v845_v12, %v849_v13  ;;  %v6741_v23 = vcombine.low %v845_v12, %v849_v13  ;;  %v7306_v63 = vld [vmem:[#allocation11 + $0xf0] ss:$24 sps:$4 sm:$0xff]   ;;  %v7323_v12 = vld [vmem:[#allocation11 + $0x394] ss:$24 sps:$4 sm:$0xff]  }
 0x1f4   : > { %3275 = vmatpush1.bf16.msra.mxu0 %v6541_v19  ;;  %v713_v19 = vld [vmem:[#allocation8 + $0x678] sm:$0xff] }
 0x1f5   : > { %3316 = vmatpush1.bf16.msra.mxu1 %v6669_v20  ;;  %3276 = vmatprep.subr.bf16.mxu0 %v6534_v21  ;;  %v837_v20 = vld [vmem:[#allocation8 + $0xa58] sm:$0xff]  ;;  %v6606_v24 = vcombine.high %v709_v18, %v713_v19 }
 0x1f6   : > { %3317 = vmatprep.subr.bf16.mxu1 %v6662_v57  ;;  %v841_v21 = vld [vmem:[#allocation8 + $0xa78] sm:$0xff]  ;;  %v6613_v57 = vcombine.low %v717_v9, %v721_v10  ;;  %v7315_v9 = vld [vmem:[#allocation11 + $0x3c0] ss:$24 sps:$4 sm:$0xff]  }
 0x1f7   : > { %v6734_v25 = vcombine.high %v837_v20, %v841_v21  ;;  %v6733_v37 = vcombine.low %v837_v20, %v841_v21  ;;  %v7309_v0 = vld [vmem:[#allocation11 + $0x3f0] ss:$24 sps:$4 sm:$0xff]   ;;  %v7320_v10 = vld [vmem:[#allocation11 + $0x94] ss:$24 sps:$4 sm:$0xff]  }
 0x1f8   : > { %3277 = vmatpush1.bf16.msra.mxu0 %v6533_v27  ;;  %v705_v27 = vld [vmem:[#allocation8 + $0x638] sm:$0xff] }
 0x1f9   : > { %3318 = vmatpush1.bf16.msra.mxu1 %v6661_v31  ;;  %3278 = vmatprep.subr.bf16.mxu0 %v6654_v34  ;;  %v829_v31 = vld [vmem:[#allocation8 + $0xa18] sm:$0xff]  ;;  %v6598_v38 = vcombine.high %v701_v26, %v705_v27 }
 0x1fa   : > { %3319 = vmatprep.subr.bf16.mxu1 %v6782_v35  ;;  %v833_v34 = vld [vmem:[#allocation8 + $0xa38] sm:$0xff]  ;;  %v6605_v35 = vcombine.low %v709_v18, %v713_v19  ;;  %v7327_v18 = vld [vmem:[#allocation11 + $0x360] ss:$24 sps:$4 sm:$0xff]  }
 0x1fb   : > { %v6726_v40 = vcombine.high %v829_v31, %v833_v34  ;;  %v7318_v13 = vld [vmem:[#allocation11 + $0x90] ss:$24 sps:$4 sm:$0xff]   ;;  %v7332_v19 = vld [vmem:[#allocation11 + $0x34] ss:$24 sps:$4 sm:$0xff]  }
 0x1fc   : > { %3279 = vmatpush2.bf16.msra.mxu0 %v6653_v41  ;;  %v906_v41 = vsub.s32 3, %v8468_v22  ;;  %v7335_v20 = vld [vmem:[#allocation11 + $0x334] ss:$24 sps:$4 sm:$0xff]   ;;  %v7330_v21 = vld [vmem:[#allocation11 + $0x30] ss:$24 sps:$4 sm:$0xff]  }
 0x1fd   : > { %3320 = vmatpush2.bf16.msra.mxu1 %v6781_v42  ;;  %3280 = vmatprep.subr.bf16.mxu0 %v6646_v45  ;;  %v6597_v42 = vcombine.low %v701_v26, %v705_v27  ;;  %v6725_v45 = vcombine.low %v829_v31, %v833_v34  ;;  %v7339_v26 = vld [vmem:[#allocation11 + $0x300] ss:$24 sps:$4 sm:$0xff]   ;;  %v7344_v27 = vld [vmem:[#allocation11 + $0x2d4] ss:$24 sps:$4 sm:$0xff]   ;;  %v7342_v34 = vld [vmem:[#allocation11 + $0x2d0] ss:$24 sps:$4 sm:$0xff]  }
 0x1fe   : > { %3321 = vmatprep.subr.bf16.mxu1 %v6774_v43  ;;  %v7296_v43 = vld [vmem:[#allocation11 + $0x154] ss:$24 sps:$4 sm:$0xff]   ;;  %v907_v47 = vrot.slane %v8470_v30, %v906_v41  ;;  %v7300_v30 = vld [vmem:[#allocation11 + $0x120] ss:$24 sps:$4 sm:$0xff]  }
 0x1ff   : > { %v7347_v31 = vld [vmem:[#allocation11 + $0x5d4] ss:$24 sps:$4 sm:$0xff]  }
 0x200   : > { %3281 = vmatpush2.bf16.msra.mxu0 %v6645_v50  ;;  %v7305_v50 = vld [vmem:[#allocation11 + $0x424] ss:$24 sps:$4 sm:$0xff]  }
 0x201   : > { %3322 = vmatpush2.bf16.msra.mxu1 %v6773_v51  ;;  %3282 = vmatprep.subr.bf16.mxu0 %v6638_v52  ;;  %v8507_v51 = vpack.c.bf16 %v3345_v46, %v3345_v46  ;;  %v7362_v46 = vld [vmem:[#allocation11 + $0x244] ss:$24 sps:$4 sm:$0xff]  }
 0x202   : > { %3323 = vmatprep.subr.bf16.mxu1 %v6766_v53  ;;  %v3012_v53 = vadd.f32 %v8497_v36, %v907_v47  ;;  %v7365_v47 = vld [vmem:[#allocation11 + $0x544] ss:$24 sps:$4 sm:$0xff]  }
 0x204   : > { %3283 = vmatpush2.bf16.msra.mxu0 %v6637_v56 }
 0x205   : > { %3324 = vmatpush2.bf16.msra.mxu1 %v6765_v58  ;;  %3284 = vmatprep.subr.bf16.mxu0 %v6630_v59  ;;  %v7311_v59 = vld [vmem:[#allocation11 + $0x3f4] ss:$24 sps:$4 sm:$0xff]  }
 0x206   : > { %3325 = vmatprep.subr.bf16.mxu1 %v6758_v61 }
 0x208   : > { %3285 = vmatpush2.bf16.msra.mxu0 %v6629_v3 }
 0x209   : > { %3326 = vmatpush2.bf16.msra.mxu1 %v6757_v4  ;;  %3286 = vmatprep.subr.bf16.mxu0 %v6622_v5  ;;  %v7317_v4 = vld [vmem:[#allocation11 + $0x3c4] ss:$24 sps:$4 sm:$0xff]  }
 0x20a   : > { %3327 = vmatprep.subr.bf16.mxu1 %v6750_v6  ;;  %v7312_v6 = vld [vmem:[#allocation11 + $0xc0] ss:$24 sps:$4 sm:$0xff]  }
 0x20c   : > { %3287 = vmatpush2.bf16.msra.mxu0 %v6621_v14  ;;  %v7321_v14 = vld [vmem:[#allocation11 + $0x390] ss:$24 sps:$4 sm:$0xff]  }
 0x20d   : > { %3328 = vmatpush2.bf16.msra.mxu1 %v6749_v15  ;;  %3288 = vmatprep.subr.bf16.mxu0 %v6614_v16  ;;  %v7326_v15 = vld [vmem:[#allocation11 + $0x64] ss:$24 sps:$4 sm:$0xff]  }
 0x20e   : > { %3329 = vmatprep.subr.bf16.mxu1 %v6742_v17  ;;  %v7329_v16 = vld [vmem:[#allocation11 + $0x364] ss:$24 sps:$4 sm:$0xff]   ;;  %v7324_v17 = vld [vmem:[#allocation11 + $0x60] ss:$24 sps:$4 sm:$0xff]  }
 0x210   : > { %3289 = vmatpush2.bf16.msra.mxu0 %v6613_v57  ;;  %v7333_v57 = vld [vmem:[#allocation11 + $0x330] ss:$24 sps:$4 sm:$0xff]  }
 0x211   : > { %3330 = vmatpush2.bf16.msra.mxu1 %v6741_v23  ;;  %3290 = vmatprep.subr.bf16.mxu0 %v6606_v24  ;;  %v7338_v23 = vld [vmem:[#allocation11 + $0x4] ss:$24 sps:$4 sm:$0xff]  }
 0x212   : > { %3331 = vmatprep.subr.bf16.mxu1 %v6734_v25  ;;  %v7341_v24 = vld [vmem:[#allocation11 + $0x304] ss:$24 sps:$4 sm:$0xff]   ;;  %v7336_v25 = vld [vmem:[#allocation11] ss:$24 sps:$4 sm:$0xff]  }
 0x214   : > { %3291 = vmatpush2.bf16.msra.mxu0 %v6605_v35  ;;  %v7345_v35 = vld [vmem:[#allocation11 + $0x5d0] ss:$24 sps:$4 sm:$0xff]  }
 0x215   : > { %3332 = vmatpush2.bf16.msra.mxu1 %v6733_v37  ;;  %3292 = vmatprep.subr.bf16.mxu0 %v6598_v38  ;;  %v7350_v37 = vld [vmem:[#allocation11 + $0x2a4] ss:$24 sps:$4 sm:$0xff]  }
 0x216   : > { %3333 = vmatprep.subr.bf16.mxu1 %v6726_v40  ;;  %v7353_v38 = vld [vmem:[#allocation11 + $0x5a4] ss:$24 sps:$4 sm:$0xff]   ;;  %v7348_v40 = vld [vmem:[#allocation11 + $0x2a0] ss:$24 sps:$4 sm:$0xff]  }
 0x218   : > { %3293 = vmatpush2.bf16.msra.mxu0 %v6597_v42  ;;  %v7356_v42 = vld [vmem:[#allocation11 + $0x274] ss:$24 sps:$4 sm:$0xff]  }
 0x219   : > { %3334 = vmatpush2.bf16.msra.mxu1 %v6725_v45  ;;  %5696 = vmatprep.subr.bf16.mxu0 %v7296_v43  ;;  %v7359_v45 = vld [vmem:[#allocation11 + $0x574] ss:$24 sps:$4 sm:$0xff]   ;;  %v7354_v43 = vld [vmem:[#allocation11 + $0x270] ss:$24 sps:$4 sm:$0xff]  }
 0x21a   : > { %5737 = vmatprep.subr.bf16.mxu1 %v7299_v44  ;;  %v7357_v44 = vld [vmem:[#allocation11 + $0x570] ss:$24 sps:$4 sm:$0xff]  }
 0x21b   : > { %v8509_v52 = vpop.f32.mrf.mxu0  ;;  %3295 = vmatmul.mubr.bf16.vlgmr.msra.gmra.mxu0 %v8445_v48 }
 0x21c   : > { %v8513_v60 = vpop.f32.mrf.mxu1  ;;  %3336 = vmatmul.mubr.bf16.vlgmr.msra.gmra.mxu1 %v8458_v11  ;;  %5697 = vmatpush1.bf16.msra.mxu0 %v7294_v49  ;;  %v902_v49 = vsub.s32 2, %v8468_v22 }
 0x21d   : > { %5728 = vmatprep.mubr.bf16.mxu0 %v8507_v51  ;;  %5738 = vmatpush1.bf16.msra.mxu1 %v7297_v7  ;;  %v3052_v54 = vpop.f32.mrf.mxu0  ;;  %v7360_v7 = vld [vmem:[#allocation11 + $0x240] ss:$24 sps:$4 sm:$0xff]  }
 0x21e   : > { %v3053_v56 = vadd.f32 %v3052_v54, %v3012_v53  ;;  %v3093_v58 = vpop.f32.mrf.mxu1  ;;  %5698 = vmatprep.subr.bf16.mxu0 %v7302_v33  ;;  %5739 = vmatprep.subr.bf16.mxu1 %v7305_v50  ;;  %v7363_v33 = vld [vmem:[#allocation11 + $0x540] ss:$24 sps:$4 sm:$0xff]   ;;  %v7368_v50 = vld [vmem:[#allocation11 + $0x214] ss:$24 sps:$4 sm:$0xff]  }
 0x21f   : > { %v3054_v48 = vpop.f32.mrf.mxu0  ;;  %v7371_v53 = vld [vmem:[#allocation11 + $0x514] ss:$24 sps:$4 sm:$0xff]  }
 0x220   : > { %v3094_v61 = vadd.f32 %v3093_v58, %v3053_v56  ;;  %v3095_v36 = vpop.f32.mrf.mxu1  ;;  %5699 = vmatpush1.bf16.msra.mxu0 %v7300_v30  ;;  %v8521_v30 = vld [vmem:[#allocation10] sm:$0xff] }
 0x221   : > { %5740 = vmatpush1.bf16.msra.mxu1 %v7303_v8  ;;  %v3055_v11 = vpop.f32.mrf.mxu0  ;;  %5700 = vmatprep.subr.bf16.mxu0 %v7308_v55  ;;  %v903_v54 = vrot.slane %v8521_v30, %v902_v49  ;;  %v7366_v8 = vld [vmem:[#allocation11 + $0x210] ss:$24 sps:$4 sm:$0xff]   ;;  %v7374_v56 = vld [vmem:[#allocation11 + $0x1e4] ss:$24 sps:$4 sm:$0xff]   ;;  %v7372_v48 = vld [vmem:[#allocation11 + $0x1e0] ss:$24 sps:$4 sm:$0xff]  }
 0x222   : > { %v3347_v2 = vmax.f32 %v3094_v61, 0.0  ;;  %v3096_v3 = vpop.f32.mrf.mxu1  ;;  %5741 = vmatprep.subr.bf16.mxu1 %v7311_v59  ;;  %v7369_v55 = vld [vmem:[#allocation11 + $0x510] ss:$24 sps:$4 sm:$0xff]   ;;  %v7377_v58 = vld [vmem:[#allocation11 + $0x4e4] ss:$24 sps:$4 sm:$0xff]  }
 0x223   : > { %v3010_v59 = vadd.f32 %v8492_v29, %v903_v54  ;;  %v7375_v61 = vld [vmem:[#allocation11 + $0x4e0] ss:$24 sps:$4 sm:$0xff]   ;;  %v7380_v36 = vld [vmem:[#allocation11 + $0x1b4] ss:$24 sps:$4 sm:$0xff]   ;;  %v7389_v29 = vld [vmem:[#allocation11 + $0x484] ss:$24 sps:$4 sm:$0xff]  }
 0x224   : > { %v8517_v5 = vpack.c.bf16 %v3347_v2, %v3347_v2  ;;  %5701 = vmatpush1.bf16.msra.mxu0 %v7306_v63  ;;  %v7383_v11 = vld [vmem:[#allocation11 + $0x4b4] ss:$24 sps:$4 sm:$0xff]   ;;  %v7386_v2 = vld [vmem:[#allocation11 + $0x184] ss:$24 sps:$4 sm:$0xff]   ;;  %v7408_v54 = vld [vmem:[#allocation11 + $0x630] ss:$24 sps:$4 sm:$0xff]  }
 0x225   : > { %5742 = vmatpush1.bf16.msra.mxu1 %v7309_v0  ;;  %5702 = vmatprep.subr.bf16.mxu0 %v7314_v1  ;;  %v3051_v63 = vadd.f32 %v8509_v52, %v3010_v59  ;;  %v7378_v0 = vld [vmem:[#allocation11 + $0x1b0] ss:$24 sps:$4 sm:$0xff]   ;;  %v7392_v52 = vld [vmem:[#allocation11 + $0x754] ss:$24 sps:$4 sm:$0xff]  }
 0x226   : > { %5769 = vmatprep.mubr.bf16.mxu1 %v8517_v5  ;;  %5743 = vmatprep.subr.bf16.mxu1 %v7317_v4  ;;  %v7381_v1 = vld [vmem:[#allocation11 + $0x4b0] ss:$24 sps:$4 sm:$0xff]   ;;  %v7384_v4 = vld [vmem:[#allocation11 + $0x180] ss:$24 sps:$4 sm:$0xff]   ;;  %v7416_v59 = vld [vmem:[#allocation11 + $0x8d4] ss:$24 sps:$4 sm:$0xff]  }
 0x227   : > { %v3092_v3 = vadd.f32 %v8513_v60, %v3051_v63  ;;  %v7395_v60 = vld [vmem:[#allocation11 + $0x724] ss:$24 sps:$4 sm:$0xff]  }
 0x228   : > { %5703 = vmatpush1.bf16.msra.mxu0 %v7312_v6  ;;  %v3344_v6 = vmax.f32 %v8490_v28, 0.0  ;;  %v7419_v63 = vld [vmem:[#allocation11 + $0x8a4] ss:$24 sps:$4 sm:$0xff]  }
 0x229   : > { %5744 = vmatpush1.bf16.msra.mxu1 %v7315_v9  ;;  %5704 = vmatprep.subr.bf16.mxu0 %v7320_v10  ;;  %v7387_v9 = vld [vmem:[#allocation11 + $0x480] ss:$24 sps:$4 sm:$0xff]   ;;  %v3346_v10 = vmax.f32 %v3092_v3, 0.0 }
 0x22a   : > { %5745 = vmatprep.subr.bf16.mxu1 %v7323_v12  ;;  %v7443_v12 = vld [vmem:[#allocation11 + $0xa54] ss:$24 sps:$4 sm:$0xff]   ;;  %v7495_v3 = vld [vmem:[#allocation11 + $0xba0] ss:$24 sps:$4 sm:$0xff]  }
 0x22c   : > { %5705 = vmatpush1.bf16.msra.mxu0 %v7318_v13  ;;  %v7390_v13 = vld [vmem:[#allocation11 + $0x750] ss:$24 sps:$4 sm:$0xff]  }
 0x22d   : > { %5746 = vmatpush1.bf16.msra.mxu1 %v7321_v14  ;;  %5706 = vmatprep.subr.bf16.mxu0 %v7326_v15  ;;  %v8530_v14 = vpack.c.bf16 %v3344_v6, %v3344_v6  ;;  %v7441_v15 = vld [vmem:[#allocation11 + $0xa50] ss:$24 sps:$4 sm:$0xff]   ;;  %v7425_v6 = vld [vmem:[#allocation11 + $0x844] ss:$24 sps:$4 sm:$0xff]  }
 0x22e   : > { %5747 = vmatprep.subr.bf16.mxu1 %v7329_v16  ;;  %v8532_v16 = vpack.c.bf16 %v3346_v10, %v3346_v10  ;;  %v7423_v10 = vld [vmem:[#allocation11 + $0x840] ss:$24 sps:$4 sm:$0xff]  }
 0x230   : > { %5707 = vmatpush1.bf16.msra.mxu0 %v7324_v17  ;;  %v7449_v17 = vld [vmem:[#allocation11 + $0xa24] ss:$24 sps:$4 sm:$0xff]  }
 0x231   : > { %5748 = vmatpush1.bf16.msra.mxu1 %v7327_v18  ;;  %5708 = vmatprep.subr.bf16.mxu0 %v7332_v19  ;;  %v7393_v19 = vld [vmem:[#allocation11 + $0x720] ss:$24 sps:$4 sm:$0xff]  }
 0x232   : > { %5749 = vmatprep.subr.bf16.mxu1 %v7335_v20 }
 0x234   : > { %5709 = vmatpush1.bf16.msra.mxu0 %v7330_v21  ;;  %v7398_v21 = vld [vmem:[#allocation11 + $0x6f4] ss:$24 sps:$4 sm:$0xff]  }
 0x235   : > { %5750 = vmatpush1.bf16.msra.mxu1 %v7333_v57  ;;  %5710 = vmatprep.subr.bf16.mxu0 %v7338_v23  ;;  %v7447_v57 = vld [vmem:[#allocation11 + $0xa20] ss:$24 sps:$4 sm:$0xff]  }
 0x236   : > { %5751 = vmatprep.subr.bf16.mxu1 %v7341_v24  ;;  %v7455_v24 = vld [vmem:[#allocation11 + $0x9f4] ss:$24 sps:$4 sm:$0xff]  }
 0x238   : > { %5711 = vmatpush1.bf16.msra.mxu0 %v7336_v25 }
 0x239   : > { %5752 = vmatpush1.bf16.msra.mxu1 %v7339_v26  ;;  %5712 = vmatprep.subr.bf16.mxu0 %v7344_v27  ;;  %v7396_v27 = vld [vmem:[#allocation11 + $0x6f0] ss:$24 sps:$4 sm:$0xff]  }
 0x23a   : > { %5753 = vmatprep.subr.bf16.mxu1 %v7347_v31 }
 0x23c   : > { %5713 = vmatpush2.bf16.msra.mxu0 %v7342_v34  ;;  %v7401_v34 = vld [vmem:[#allocation11 + $0x6c4] ss:$24 sps:$4 sm:$0xff]  }
 0x23d   : > { %5754 = vmatpush2.bf16.msra.mxu1 %v7345_v35  ;;  %5714 = vmatprep.subr.bf16.mxu0 %v7350_v37  ;;  %v7453_v35 = vld [vmem:[#allocation11 + $0x9f0] ss:$24 sps:$4 sm:$0xff]  }
 0x23e   : > { %5755 = vmatprep.subr.bf16.mxu1 %v7353_v38  ;;  %v7461_v38 = vld [vmem:[#allocation11 + $0x9c4] ss:$24 sps:$4 sm:$0xff]  }
 0x240   : > { %5715 = vmatpush2.bf16.msra.mxu0 %v7348_v40  ;;  %v7399_v40 = vld [vmem:[#allocation11 + $0x6c0] ss:$24 sps:$4 sm:$0xff]  }
 0x241   : > { %5756 = vmatpush2.bf16.msra.mxu1 %v7351_v62  ;;  %5716 = vmatprep.subr.bf16.mxu0 %v7356_v42  ;;  %v7404_v62 = vld [vmem:[#allocation11 + $0x694] ss:$24 sps:$4 sm:$0xff]   ;;  %v7459_v42 = vld [vmem:[#allocation11 + $0x9c0] ss:$24 sps:$4 sm:$0xff]  }
 0x242   : > { %5757 = vmatprep.subr.bf16.mxu1 %v7359_v45  ;;  %v7467_v45 = vld [vmem:[#allocation11 + $0x994] ss:$24 sps:$4 sm:$0xff]  }
 0x244   : > { %5717 = vmatpush2.bf16.msra.mxu0 %v7354_v43  ;;  %v7402_v43 = vld [vmem:[#allocation11 + $0x690] ss:$24 sps:$4 sm:$0xff]  }
 0x245   : > { %5758 = vmatpush2.bf16.msra.mxu1 %v7357_v44  ;;  %5718 = vmatprep.subr.bf16.mxu0 %v7362_v46  ;;  %v7407_v44 = vld [vmem:[#allocation11 + $0x664] ss:$24 sps:$4 sm:$0xff]   ;;  %v7465_v46 = vld [vmem:[#allocation11 + $0x990] ss:$24 sps:$4 sm:$0xff]  }
 0x246   : > { %5759 = vmatprep.subr.bf16.mxu1 %v7365_v47  ;;  %v7473_v47 = vld [vmem:[#allocation11 + $0x964] ss:$24 sps:$4 sm:$0xff]  }
 0x248   : > { %5719 = vmatpush2.bf16.msra.mxu0 %v7360_v7  ;;  %v7405_v7 = vld [vmem:[#allocation11 + $0x660] ss:$24 sps:$4 sm:$0xff]  }
 0x249   : > { %5760 = vmatpush2.bf16.msra.mxu1 %v7363_v33  ;;  %5720 = vmatprep.subr.bf16.mxu0 %v7368_v50  ;;  %v7410_v33 = vld [vmem:[#allocation11 + $0x634] ss:$24 sps:$4 sm:$0xff]   ;;  %v7471_v50 = vld [vmem:[#allocation11 + $0x960] ss:$24 sps:$4 sm:$0xff]  }
 0x24a   : > { %5761 = vmatprep.subr.bf16.mxu1 %v7371_v53  ;;  %v7479_v53 = vld [vmem:[#allocation11 + $0x934] ss:$24 sps:$4 sm:$0xff]  }
 0x24c   : > { %5721 = vmatpush2.bf16.msra.mxu0 %v7366_v8  ;;  %v7413_v8 = vld [vmem:[#allocation11 + $0x604] ss:$24 sps:$4 sm:$0xff]  }
 0x24d   : > { %5762 = vmatpush2.bf16.msra.mxu1 %v7369_v55  ;;  %5722 = vmatprep.subr.bf16.mxu0 %v7374_v56  ;;  %v7477_v55 = vld [vmem:[#allocation11 + $0x930] ss:$24 sps:$4 sm:$0xff]   ;;  %v7485_v56 = vld [vmem:[#allocation11 + $0x904] ss:$24 sps:$4 sm:$0xff]  }
 0x24e   : > { %5763 = vmatprep.subr.bf16.mxu1 %v7377_v58  ;;  %v7411_v58 = vld [vmem:[#allocation11 + $0x600] ss:$24 sps:$4 sm:$0xff]  }
 0x250   : > { %5723 = vmatpush2.bf16.msra.mxu0 %v7372_v48  ;;  %v7483_v48 = vld [vmem:[#allocation11 + $0x900] ss:$24 sps:$4 sm:$0xff]  }
 0x251   : > { %5764 = vmatpush2.bf16.msra.mxu1 %v7375_v61  ;;  %5724 = vmatprep.subr.bf16.mxu0 %v7380_v36  ;;  %v7491_v61 = vld [vmem:[#allocation11 + $0xbd4] ss:$24 sps:$4 sm:$0xff]   ;;  %v7414_v36 = vld [vmem:[#allocation11 + $0x8d0] ss:$24 sps:$4 sm:$0xff]  }
 0x252   : > { %5765 = vmatprep.subr.bf16.mxu1 %v7383_v11  ;;  %v7489_v11 = vld [vmem:[#allocation11 + $0xbd0] ss:$24 sps:$4 sm:$0xff]  }
 0x254   : > { %5725 = vmatpush2.bf16.msra.mxu0 %v7378_v0  ;;  %v7497_v0 = vld [vmem:[#allocation11 + $0xba4] ss:$24 sps:$4 sm:$0xff]  }
 0x255   : > { %5766 = vmatpush2.bf16.msra.mxu1 %v7381_v1  ;;  %5726 = vmatprep.subr.bf16.mxu0 %v7386_v2  ;;  %v7417_v1 = vld [vmem:[#allocation11 + $0x8a0] ss:$24 sps:$4 sm:$0xff]   ;;  %v7422_v2 = vld [vmem:[#allocation11 + $0x874] ss:$24 sps:$4 sm:$0xff]  }
 0x256   : > { %5767 = vmatprep.subr.bf16.mxu1 %v7389_v29  ;;  %v7503_v29 = vld [vmem:[#allocation11 + $0xb74] ss:$24 sps:$4 sm:$0xff]  }
 0x258   : > { %5727 = vmatpush2.bf16.msra.mxu0 %v7384_v4  ;;  %v7420_v4 = vld [vmem:[#allocation11 + $0x870] ss:$24 sps:$4 sm:$0xff]  }
 0x259   : > { %5768 = vmatpush2.bf16.msra.mxu1 %v7387_v9  ;;  %5778 = vmatprep.subr.bf16.mxu0 %v7392_v52  ;;  %v7501_v9 = vld [vmem:[#allocation11 + $0xb70] ss:$24 sps:$4 sm:$0xff]   ;;  %v7509_v52 = vld [vmem:[#allocation11 + $0xb44] ss:$24 sps:$4 sm:$0xff]  }
 0x25a   : > { %5819 = vmatprep.subr.bf16.mxu1 %v7443_v12  ;;  %v7428_v12 = vld [vmem:[#allocation11 + $0x814] ss:$24 sps:$4 sm:$0xff]  }
 0x25b   : > { %v8534_v28 = vpop.f32.mrf.mxu0  ;;  %5729 = vmatmul.mubr.bf16.vlgmr.msra.gmra.mxu0 %v8530_v14 }
 0x25c   : > { %v8537_v18 = vpop.f32.mrf.mxu1  ;;  %5770 = vmatmul.mubr.bf16.vlgmr.msra.gmra.mxu1 %v8532_v16  ;;  %5779 = vmatpush1.bf16.msra.mxu0 %v7390_v13  ;;  %v7507_v13 = vld [vmem:[#allocation11 + $0xb40] ss:$24 sps:$4 sm:$0xff]  }
 0x25d   : > { %v8540_v20 = vpop.f32.mrf.mxu0  ;;  %5780 = vmatprep.subr.bf16.mxu0 %v7395_v60  ;;  %5820 = vmatpush1.bf16.msra.mxu1 %v7441_v15  ;;  %v7515_v60 = vld [vmem:[#allocation11 + $0xb14] ss:$24 sps:$4 sm:$0xff]   ;;  %v7426_v15 = vld [vmem:[#allocation11 + $0x810] ss:$24 sps:$4 sm:$0xff]  }
 0x25e   : > { %v8542_v23 = vpop.f32.mrf.mxu1  ;;  %5821 = vmatprep.subr.bf16.mxu1 %v7449_v17  ;;  %v7431_v17 = vld [vmem:[#allocation11 + $0x7e4] ss:$24 sps:$4 sm:$0xff]  }
 0x25f   : > { %v3136_v25 = vpop.f32.mrf.mxu0 }
 0x260   : > { %v3177_v26 = vpop.f32.mrf.mxu1  ;;  %5781 = vmatpush1.bf16.msra.mxu0 %v7393_v19  ;;  %v7513_v19 = vld [vmem:[#allocation11 + $0xb10] ss:$24 sps:$4 sm:$0xff]   ;;  %v7519_v25 = vld [vmem:[#allocation11 + $0xae0] ss:$24 sps:$4 sm:$0xff]  }
 0x261   : > { %v3137_v31 = vpop.f32.mrf.mxu0  ;;  %5782 = vmatprep.subr.bf16.mxu0 %v7398_v21  ;;  %5822 = vmatpush1.bf16.msra.mxu1 %v7447_v57  ;;  %v7521_v21 = vld [vmem:[#allocation11 + $0xae4] ss:$24 sps:$4 sm:$0xff]   ;;  %v7429_v57 = vld [vmem:[#allocation11 + $0x7e0] ss:$24 sps:$4 sm:$0xff]   ;;  %v910_v26 = vsub.s32 4, %v8468_v22 }
 0x262   : > { %v3178_v37 = vpop.f32.mrf.mxu1  ;;  %5823 = vmatprep.subr.bf16.mxu1 %v7455_v24  ;;  %v7434_v24 = vld [vmem:[#allocation11 + $0x7b4] ss:$24 sps:$4 sm:$0xff]   ;;  %v914_v31 = vsub.s32 5, %v8468_v22 }
 0x263   : > { %v7525_v37 = vld [vmem:[#allocation11 + $0xab0] ss:$24 sps:$4 sm:$0xff]  }
 0x264   : > { %5783 = vmatpush1.bf16.msra.mxu0 %v7396_v27  ;;  %v7527_v27 = vld [vmem:[#allocation11 + $0xab4] ss:$24 sps:$4 sm:$0xff]  }
 0x265   : > { %5784 = vmatprep.subr.bf16.mxu0 %v7401_v34  ;;  %5824 = vmatpush1.bf16.msra.mxu1 %v7453_v35  ;;  %v7432_v34 = vld [vmem:[#allocation11 + $0x7b0] ss:$24 sps:$4 sm:$0xff]   ;;  %v7437_v35 = vld [vmem:[#allocation11 + $0x784] ss:$24 sps:$4 sm:$0xff]  }
 0x266   : > { %5825 = vmatprep.subr.bf16.mxu1 %v7461_v38  ;;  %v911_v38 = vrot.slane %v8521_v30, %v910_v26 }
 0x268   : > { %5785 = vmatpush1.bf16.msra.mxu0 %v7399_v40  ;;  %v7533_v40 = vld [vmem:[#allocation11 + $0xa84] ss:$24 sps:$4 sm:$0xff]  }
 0x269   : > { %5786 = vmatprep.subr.bf16.mxu0 %v7404_v62  ;;  %5826 = vmatpush1.bf16.msra.mxu1 %v7459_v42  ;;  %v915_v62 = vrot.slane %v8521_v30, %v914_v31  ;;  %v7435_v42 = vld [vmem:[#allocation11 + $0x780] ss:$24 sps:$4 sm:$0xff]  }
 0x26a   : > { %5827 = vmatprep.subr.bf16.mxu1 %v7467_v45  ;;  %v7440_v45 = vld [vmem:[#allocation11 + $0x15c] ss:$24 sps:$4 sm:$0xff]  }
 0x26c   : > { %5787 = vmatpush1.bf16.msra.mxu0 %v7402_v43  ;;  %v7531_v43 = vld [vmem:[#allocation11 + $0xa80] ss:$24 sps:$4 sm:$0xff]  }
 0x26d   : > { %5788 = vmatprep.subr.bf16.mxu0 %v7407_v44  ;;  %5828 = vmatpush1.bf16.msra.mxu1 %v7465_v46  ;;  %v3133_v44 = vadd.f32 %v8534_v28, %v911_v38  ;;  %v7539_v46 = vld [vmem:[#allocation11 + $0x45c] ss:$24 sps:$4 sm:$0xff]   ;;  %v922_v38 = vsub.s32 7, %v8468_v22 }
 0x26e   : > { %5829 = vmatprep.subr.bf16.mxu1 %v7473_v47  ;;  %v3135_v47 = vadd.f32 %v8540_v20, %v915_v62  ;;  %v7516_v62 = vld [vmem:[#allocation11 + $0x1e8] ss:$24 sps:$4 sm:$0xff]  }
 0x270   : > { %5789 = vmatpush1.bf16.msra.mxu0 %v7405_v7  ;;  %v3174_v7 = vadd.f32 %v8537_v18, %v3133_v44  ;;  %v7438_v18 = vld [vmem:[#allocation11 + $0x158] ss:$24 sps:$4 sm:$0xff]  }
 0x271   : > { %5790 = vmatprep.subr.bf16.mxu0 %v7410_v33  ;;  %5830 = vmatpush1.bf16.msra.mxu1 %v7471_v50  ;;  %v3176_v50 = vadd.f32 %v8542_v23, %v3135_v47  ;;  %v7444_v23 = vld [vmem:[#allocation11 + $0x128] ss:$24 sps:$4 sm:$0xff]   ;;  %v7522_v44 = vld [vmem:[#allocation11 + $0x1b8] ss:$24 sps:$4 sm:$0xff]   ;;  %v7530_v47 = vld [vmem:[#allocation11 + $0x18c] ss:$24 sps:$4 sm:$0xff]  }
 0x272   : > { %5831 = vmatprep.subr.bf16.mxu1 %v7479_v53 }
 0x274   : > { %5791 = vmatpush1.bf16.msra.mxu0 %v7408_v54 }
 0x275   : > { %5792 = vmatprep.subr.bf16.mxu0 %v7413_v8  ;;  %5832 = vmatpush1.bf16.msra.mxu1 %v7477_v55 }
 0x276   : > { %5833 = vmatprep.subr.bf16.mxu1 %v7485_v56 }
 0x278   : > { %5793 = vmatpush1.bf16.msra.mxu0 %v7411_v58 }
 0x279   : > { %5794 = vmatprep.subr.bf16.mxu0 %v7416_v59  ;;  %5834 = vmatpush1.bf16.msra.mxu1 %v7483_v48 }
 0x27a   : > { %5835 = vmatprep.subr.bf16.mxu1 %v7491_v61 }
 0x27c   : > { %5795 = vmatpush2.bf16.msra.mxu0 %v7414_v36 }
 0x27d   : > { %5796 = vmatprep.subr.bf16.mxu0 %v7419_v63  ;;  %5836 = vmatpush2.bf16.msra.mxu1 %v7489_v11  ;;  %v7446_v11 = vld [vmem:[#allocation11 + $0x12c] ss:$24 sps:$4 sm:$0xff]  }
 0x27e   : > { %5837 = vmatprep.subr.bf16.mxu1 %v7497_v0  ;;  %v7452_v0 = vld [vmem:[#allocation11 + $0xfc] ss:$24 sps:$4 sm:$0xff]  }
 0x280   : > { %5797 = vmatpush2.bf16.msra.mxu0 %v7417_v1  ;;  %v7450_v1 = vld [vmem:[#allocation11 + $0xf8] ss:$24 sps:$4 sm:$0xff]  }
 0x281   : > { %5798 = vmatprep.subr.bf16.mxu0 %v7422_v2  ;;  %5838 = vmatpush2.bf16.msra.mxu1 %v7495_v3  ;;  %v7458_v2 = vld [vmem:[#allocation11 + $0xcc] ss:$24 sps:$4 sm:$0xff]   ;;  %v7456_v3 = vld [vmem:[#allocation11 + $0xc8] ss:$24 sps:$4 sm:$0xff]  }
 0x282   : > { %5839 = vmatprep.subr.bf16.mxu1 %v7503_v29  ;;  %v7464_v29 = vld [vmem:[#allocation11 + $0x9c] ss:$24 sps:$4 sm:$0xff]  }
 0x284   : > { %5799 = vmatpush2.bf16.msra.mxu0 %v7420_v4  ;;  %v7462_v4 = vld [vmem:[#allocation11 + $0x98] ss:$24 sps:$4 sm:$0xff]  }
 0x285   : > { %5800 = vmatprep.subr.bf16.mxu0 %v7425_v6  ;;  %5840 = vmatpush2.bf16.msra.mxu1 %v7501_v9  ;;  %v7470_v6 = vld [vmem:[#allocation11 + $0x6c] ss:$24 sps:$4 sm:$0xff]   ;;  %v7468_v9 = vld [vmem:[#allocation11 + $0x68] ss:$24 sps:$4 sm:$0xff]  }
 0x286   : > { %5841 = vmatprep.subr.bf16.mxu1 %v7509_v52  ;;  %v7476_v52 = vld [vmem:[#allocation11 + $0x3c] ss:$24 sps:$4 sm:$0xff]  }
 0x288   : > { %5801 = vmatpush2.bf16.msra.mxu0 %v7423_v10  ;;  %v7474_v10 = vld [vmem:[#allocation11 + $0x38] ss:$24 sps:$4 sm:$0xff]  }
 0x289   : > { %5802 = vmatprep.subr.bf16.mxu0 %v7428_v12  ;;  %5842 = vmatpush2.bf16.msra.mxu1 %v7507_v13  ;;  %v7482_v12 = vld [vmem:[#allocation11 + $0xc] ss:$24 sps:$4 sm:$0xff]   ;;  %v7480_v13 = vld [vmem:[#allocation11 + $0x8] ss:$24 sps:$4 sm:$0xff]  }
 0x28a   : > { %5843 = vmatprep.subr.bf16.mxu1 %v7515_v60  ;;  %v7488_v60 = vld [vmem:[#allocation11 + $0x2dc] ss:$24 sps:$4 sm:$0xff]  }
 0x28c   : > { %5803 = vmatpush2.bf16.msra.mxu0 %v7426_v15  ;;  %v7486_v15 = vld [vmem:[#allocation11 + $0x2d8] ss:$24 sps:$4 sm:$0xff]  }
 0x28d   : > { %5804 = vmatprep.subr.bf16.mxu0 %v7431_v17  ;;  %5844 = vmatpush2.bf16.msra.mxu1 %v7513_v19  ;;  %v7494_v17 = vld [vmem:[#allocation11 + $0x2ac] ss:$24 sps:$4 sm:$0xff]   ;;  %v7492_v19 = vld [vmem:[#allocation11 + $0x2a8] ss:$24 sps:$4 sm:$0xff]  }
 0x28e   : > { %5845 = vmatprep.subr.bf16.mxu1 %v7521_v21  ;;  %v7500_v21 = vld [vmem:[#allocation11 + $0x27c] ss:$24 sps:$4 sm:$0xff]  }
 0x290   : > { %5805 = vmatpush2.bf16.msra.mxu0 %v7429_v57  ;;  %v7498_v57 = vld [vmem:[#allocation11 + $0x278] ss:$24 sps:$4 sm:$0xff]  }
 0x291   : > { %5806 = vmatprep.subr.bf16.mxu0 %v7434_v24  ;;  %5846 = vmatpush2.bf16.msra.mxu1 %v7519_v25  ;;  %v7506_v24 = vld [vmem:[#allocation11 + $0x24c] ss:$24 sps:$4 sm:$0xff]   ;;  %v7504_v25 = vld [vmem:[#allocation11 + $0x248] ss:$24 sps:$4 sm:$0xff]  }
 0x292   : > { %5847 = vmatprep.subr.bf16.mxu1 %v7527_v27  ;;  %v7512_v27 = vld [vmem:[#allocation11 + $0x21c] ss:$24 sps:$4 sm:$0xff]  }
 0x294   : > { %5807 = vmatpush2.bf16.msra.mxu0 %v7432_v34  ;;  %v918_v34 = vsub.s32 6, %v8468_v22 }
 0x295   : > { %5808 = vmatprep.subr.bf16.mxu0 %v7437_v35  ;;  %5848 = vmatpush2.bf16.msra.mxu1 %v7525_v37  ;;  %v7510_v35 = vld [vmem:[#allocation11 + $0x218] ss:$24 sps:$4 sm:$0xff]   ;;  %v7518_v37 = vld [vmem:[#allocation11 + $0x1ec] ss:$24 sps:$4 sm:$0xff]  }
 0x296   : > { %5849 = vmatprep.subr.bf16.mxu1 %v7533_v40  ;;  %v919_v40 = vrot.slane %v8521_v30, %v918_v34  ;;  %v7572_v34 = vld [vmem:[#allocation11 + $0x63c] ss:$24 sps:$4 sm:$0xff]  }
 0x298   : > { %5809 = vmatpush2.bf16.msra.mxu0 %v7435_v42  ;;  %v7524_v42 = vld [vmem:[#allocation11 + $0x1bc] ss:$24 sps:$4 sm:$0xff]  }
 0x299   : > { %5860 = vmatprep.subr.bf16.mxu0 %v7440_v45  ;;  %5850 = vmatpush2.bf16.msra.mxu1 %v7531_v43  ;;  %v923_v45 = vrot.slane %v8521_v30, %v922_v38  ;;  %v7536_v30 = vld [vmem:[#allocation11 + $0x75c] ss:$24 sps:$4 sm:$0xff]  }
 0x29a   : > { %5901 = vmatprep.subr.bf16.mxu1 %v7539_v46  ;;  %v7575_v38 = vld [vmem:[#allocation11 + $0x33c] ss:$24 sps:$4 sm:$0xff]  }
 0x29b   : > { %v3214_v33 = vpop.f32.mrf.mxu0 }
 0x29c   : > { %v3215_v53 = vadd.f32 %v3214_v33, %v3174_v7  ;;  %v8556_v54 = vpop.f32.mrf.mxu1 }
 0x29d   : > { %v3216_v8 = vpop.f32.mrf.mxu0  ;;  %v3256_v43 = vadd.f32 %v8556_v54, %v919_v40  ;;  %v7578_v40 = vld [vmem:[#allocation11 + $0x60c] ss:$24 sps:$4 sm:$0xff]  }
 0x29e   : > { %v3217_v55 = vadd.f32 %v3216_v8, %v3176_v50  ;;  %v8558_v56 = vpop.f32.mrf.mxu1  ;;  %v3348_v28 = vmax.f32 %v3215_v53, 0.0 }
 0x29f   : > { %v3218_v58 = vpop.f32.mrf.mxu0  ;;  %v3258_v7 = vadd.f32 %v8558_v56, %v923_v45  ;;  %v7542_v56 = vld [vmem:[#allocation11 + $0x72c] ss:$24 sps:$4 sm:$0xff]  }
 0x2a0   : > { %v3349_v59 = vmax.f32 %v3217_v55, 0.0  ;;  %v3259_v20 = vpop.f32.mrf.mxu1  ;;  %v8562_v63 = vpack.c.bf16 %v3348_v28, %v3348_v28  ;;  %v7528_v58 = vld [vmem:[#allocation11 + $0x188] ss:$24 sps:$4 sm:$0xff]   ;;  %v7581_v45 = vld [vmem:[#allocation11 + $0x30c] ss:$24 sps:$4 sm:$0xff]  }
 0x2a1   : > { %v3219_v48 = vpop.f32.mrf.mxu0 }
 0x2a2   : > { %v8560_v61 = vpack.c.bf16 %v3349_v59, %v3349_v59  ;;  %v3260_v36 = vpop.f32.mrf.mxu1 }
 0x2a4   : > { %5810 = vmatprep.mubr.bf16.mxu0 %v8560_v61 }
 0x2a5   : > { %5811 = vmatmul.mubr.bf16.vlgmr.msra.gmra.mxu0 %v8562_v63 }
 0x2a6   : > { %5861 = vmatpush1.bf16.msra.mxu0 %v7438_v18  ;;  %5892 = vmatprep.mubr.bf16.mxu0 %v8507_v51 }
 0x2a7   : > { %5862 = vmatprep.subr.bf16.mxu0 %v7446_v11 }
 0x2aa   : > { %5863 = vmatpush1.bf16.msra.mxu0 %v7444_v23  ;;  %v7534_v23 = vld [vmem:[#allocation11 + $0x758] ss:$24 sps:$4 sm:$0xff]  }
 0x2ab   : > { %5864 = vmatprep.subr.bf16.mxu0 %v7452_v0 }
 0x2ae   : > { %5865 = vmatpush1.bf16.msra.mxu0 %v7450_v1  ;;  %v7537_v1 = vld [vmem:[#allocation11 + $0x458] ss:$24 sps:$4 sm:$0xff]  }
 0x2af   : > { %5866 = vmatprep.subr.bf16.mxu0 %v7458_v2 }
 0x2b2   : > { %5867 = vmatpush1.bf16.msra.mxu0 %v7456_v3  ;;  %v7540_v3 = vld [vmem:[#allocation11 + $0x728] ss:$24 sps:$4 sm:$0xff]  }
 0x2b3   : > { %5868 = vmatprep.subr.bf16.mxu0 %v7464_v29  ;;  %v7545_v29 = vld [vmem:[#allocation11 + $0x42c] ss:$24 sps:$4 sm:$0xff]  }
 0x2b6   : > { %5869 = vmatpush1.bf16.msra.mxu0 %v7462_v4  ;;  %v7548_v4 = vld [vmem:[#allocation11 + $0x6fc] ss:$24 sps:$4 sm:$0xff]  }
 0x2b7   : > { %5870 = vmatprep.subr.bf16.mxu0 %v7470_v6  ;;  %v7543_v6 = vld [vmem:[#allocation11 + $0x428] ss:$24 sps:$4 sm:$0xff]  }
 0x2ba   : > { %5871 = vmatpush1.bf16.msra.mxu0 %v7468_v9  ;;  %v7546_v9 = vld [vmem:[#allocation11 + $0x6f8] ss:$24 sps:$4 sm:$0xff]  }
 0x2bb   : > { %5872 = vmatprep.subr.bf16.mxu0 %v7476_v52  ;;  %v7551_v52 = vld [vmem:[#allocation11 + $0x3fc] ss:$24 sps:$4 sm:$0xff]  }
 0x2be   : > { %5873 = vmatpush1.bf16.msra.mxu0 %v7474_v10  ;;  %v7554_v10 = vld [vmem:[#allocation11 + $0x6cc] ss:$24 sps:$4 sm:$0xff]  }
 0x2bf   : > { %5874 = vmatprep.subr.bf16.mxu0 %v7482_v12  ;;  %v7549_v12 = vld [vmem:[#allocation11 + $0x3f8] ss:$24 sps:$4 sm:$0xff]  }
 0x2c2   : > { %5875 = vmatpush1.bf16.msra.mxu0 %v7480_v13  ;;  %v7552_v13 = vld [vmem:[#allocation11 + $0x6c8] ss:$24 sps:$4 sm:$0xff]  }
 0x2c3   : > { %5876 = vmatprep.subr.bf16.mxu0 %v7488_v60  ;;  %v7557_v60 = vld [vmem:[#allocation11 + $0x3cc] ss:$24 sps:$4 sm:$0xff]  }
 0x2c6   : > { %5877 = vmatpush2.bf16.msra.mxu0 %v7486_v15  ;;  %v7560_v15 = vld [vmem:[#allocation11 + $0x69c] ss:$24 sps:$4 sm:$0xff]  }
 0x2c7   : > { %5878 = vmatprep.subr.bf16.mxu0 %v7494_v17  ;;  %v7555_v17 = vld [vmem:[#allocation11 + $0x3c8] ss:$24 sps:$4 sm:$0xff]  }
 0x2ca   : > { %5879 = vmatpush2.bf16.msra.mxu0 %v7492_v19  ;;  %v7558_v19 = vld [vmem:[#allocation11 + $0x698] ss:$24 sps:$4 sm:$0xff]  }
 0x2cb   : > { %5880 = vmatprep.subr.bf16.mxu0 %v7500_v21  ;;  %v7563_v21 = vld [vmem:[#allocation11 + $0x39c] ss:$24 sps:$4 sm:$0xff]  }
 0x2ce   : > { %5881 = vmatpush2.bf16.msra.mxu0 %v7498_v57  ;;  %v7566_v57 = vld [vmem:[#allocation11 + $0x66c] ss:$24 sps:$4 sm:$0xff]  }
 0x2cf   : > { %5882 = vmatprep.subr.bf16.mxu0 %v7506_v24  ;;  %v7561_v24 = vld [vmem:[#allocation11 + $0x398] ss:$24 sps:$4 sm:$0xff]  }
 0x2d2   : > { %5883 = vmatpush2.bf16.msra.mxu0 %v7504_v25  ;;  %v7564_v25 = vld [vmem:[#allocation11 + $0x668] ss:$24 sps:$4 sm:$0xff]  }
 0x2d3   : > { %5884 = vmatprep.subr.bf16.mxu0 %v7512_v27  ;;  %v7569_v27 = vld [vmem:[#allocation11 + $0x36c] ss:$24 sps:$4 sm:$0xff]  }
 0x2d6   : > { %5885 = vmatpush2.bf16.msra.mxu0 %v7510_v35  ;;  %v7567_v35 = vld [vmem:[#allocation11 + $0x368] ss:$24 sps:$4 sm:$0xff]  }
 0x2d7   : > { %5886 = vmatprep.subr.bf16.mxu0 %v7518_v37  ;;  %v7570_v37 = vld [vmem:[#allocation11 + $0x638] ss:$24 sps:$4 sm:$0xff]  }
 0x2da   : > { %5887 = vmatpush2.bf16.msra.mxu0 %v7516_v62  ;;  %v7573_v62 = vld [vmem:[#allocation11 + $0x338] ss:$24 sps:$4 sm:$0xff]  }
 0x2db   : > { %v3296_v46 = vpop.f32.mrf.mxu0  ;;  %5888 = vmatprep.subr.bf16.mxu0 %v7524_v42  ;;  %v7576_v42 = vld [vmem:[#allocation11 + $0x608] ss:$24 sps:$4 sm:$0xff]  }
 0x2dc   : > { %v3297_v33 = vadd.f32 %v3296_v46, %v3256_v43  ;;  %v3337_v50 = vpop.f32.mrf.mxu1  ;;  %v7584_v43 = vld [vmem:[#allocation11 + $0x8dc] ss:$24 sps:$4 sm:$0xff]   ;;  %v7582_v46 = vld [vmem:[#allocation11 + $0x8d8] ss:$24 sps:$4 sm:$0xff]  }
 0x2dd   : > { %v3298_v53 = vpop.f32.mrf.mxu0 }
 0x2de   : > { %v3338_v8 = vadd.f32 %v3337_v50, %v3297_v33  ;;  %v3299_v55 = vadd.f32 %v3298_v53, %v3258_v7  ;;  %v3339_v28 = vpop.f32.mrf.mxu1  ;;  %5889 = vmatpush2.bf16.msra.mxu0 %v7522_v44  ;;  %v7579_v44 = vld [vmem:[#allocation11 + $0x308] ss:$24 sps:$4 sm:$0xff]   ;;  %v7590_v7 = vld [vmem:[#allocation11 + $0x8ac] ss:$24 sps:$4 sm:$0xff]   ;;  %v7585_v33 = vld [vmem:[#allocation11 + $0x5d8] ss:$24 sps:$4 sm:$0xff]  }
 0x2df   : > { %v3300_v59 = vpop.f32.mrf.mxu0  ;;  %5890 = vmatprep.subr.bf16.mxu0 %v7530_v47  ;;  %v7587_v47 = vld [vmem:[#allocation11 + $0x5dc] ss:$24 sps:$4 sm:$0xff]   ;;  %v7588_v50 = vld [vmem:[#allocation11 + $0x8a8] ss:$24 sps:$4 sm:$0xff]   ;;  %v7593_v53 = vld [vmem:[#allocation11 + $0x5ac] ss:$24 sps:$4 sm:$0xff]  }
 0x2e0   : > { %v3340_v20 = vadd.f32 %v3339_v28, %v3299_v55  ;;  %v3341_v54 = vpop.f32.mrf.mxu1  ;;  %v3350_v36 = vmax.f32 %v3338_v8, 0.0  ;;  %v7596_v8 = vld [vmem:[#allocation11 + $0x87c] ss:$24 sps:$4 sm:$0xff]   ;;  %v7591_v55 = vld [vmem:[#allocation11 + $0x5a8] ss:$24 sps:$4 sm:$0xff]  }
 0x2e1   : > { %v3301_v48 = vpop.f32.mrf.mxu0  ;;  %v7594_v28 = vld [vmem:[#allocation11 + $0x878] ss:$24 sps:$4 sm:$0xff]   ;;  %v7602_v59 = vld [vmem:[#allocation11 + $0x84c] ss:$24 sps:$4 sm:$0xff]  }
 0x2e2   : > { %v3351_v18 = vmax.f32 %v3340_v20, 0.0  ;;  %v3342_v11 = vpop.f32.mrf.mxu1  ;;  %5891 = vmatpush2.bf16.msra.mxu0 %v7528_v58  ;;  %v8576_v2 = vpack.c.bf16 %v3350_v36, %v3350_v36  ;;  %v7599_v58 = vld [vmem:[#allocation11 + $0x57c] ss:$24 sps:$4 sm:$0xff]   ;;  %v7600_v20 = vld [vmem:[#allocation11 + $0x848] ss:$24 sps:$4 sm:$0xff]  }
 0x2e3   : > { %5942 = vmatprep.subr.bf16.mxu0 %v7536_v30  ;;  %v7597_v30 = vld [vmem:[#allocation11 + $0x578] ss:$24 sps:$4 sm:$0xff]   ;;  %v7605_v54 = vld [vmem:[#allocation11 + $0x54c] ss:$24 sps:$4 sm:$0xff]   ;;  %v7608_v48 = vld [vmem:[#allocation11 + $0x81c] ss:$24 sps:$4 sm:$0xff]  }
 0x2e4   : > { %v8573_v0 = vpack.c.bf16 %v3351_v18, %v3351_v18  ;;  %v7603_v36 = vld [vmem:[#allocation11 + $0x548] ss:$24 sps:$4 sm:$0xff]   ;;  %v7606_v18 = vld [vmem:[#allocation11 + $0x818] ss:$24 sps:$4 sm:$0xff]   ;;  %v7611_v11 = vld [vmem:[#allocation11 + $0x51c] ss:$24 sps:$4 sm:$0xff]  }
 0x2e5   : > { %5893 = vmatmul.mubr.bf16.vlgmr.msra.gmra.mxu0 %v8530_v14 }
 0x2e6   : > { %5943 = vmatpush1.bf16.msra.mxu0 %v7534_v23  ;;  %5974 = vmatprep.mubr.bf16.mxu0 %v8560_v61  ;;  %v7614_v23 = vld [vmem:[#allocation11 + $0x7ec] ss:$24 sps:$4 sm:$0xff]  }
 0x2e7   : > { %5851 = vmatprep.mubr.bf16.mxu1 %v8573_v0  ;;  %5944 = vmatprep.subr.bf16.mxu0 %v7542_v56  ;;  %v7609_v56 = vld [vmem:[#allocation11 + $0x518] ss:$24 sps:$4 sm:$0xff]  }
 0x2e8   : > { %5852 = vmatmul.mubr.bf16.vlgmr.msra.gmra.mxu1 %v8576_v2 }
 0x2e9   : > { %5902 = vmatpush1.bf16.msra.mxu1 %v7537_v1  ;;  %5933 = vmatprep.mubr.bf16.mxu1 %v8517_v5  ;;  %v8582_v1 = vld [vmem:[#allocation13] sm:$0x3f] }
 0x2ea   : > { %5945 = vmatpush1.bf16.msra.mxu0 %v7540_v3  ;;  %5903 = vmatprep.subr.bf16.mxu1 %v7545_v29  ;;  %v7612_v3 = vld [vmem:[#allocation11 + $0x7e8] ss:$24 sps:$4 sm:$0xff]   ;;  %v7617_v29 = vld [vmem:[#allocation11 + $0x4ec] ss:$24 sps:$4 sm:$0xff]  }
 0x2eb   : > { %5946 = vmatprep.subr.bf16.mxu0 %v7548_v4  ;;  %v7620_v4 = vld [vmem:[#allocation11 + $0x7bc] ss:$24 sps:$4 sm:$0xff]  }
 0x2ed   : > { %5904 = vmatpush1.bf16.msra.mxu1 %v7543_v6  ;;  %v3749_v6 = vrot.slane %v8582_v1, %v894_v32 }
 0x2ee   : > { %5947 = vmatpush1.bf16.msra.mxu0 %v7546_v9  ;;  %5905 = vmatprep.subr.bf16.mxu1 %v7551_v52  ;;  %v7615_v9 = vld [vmem:[#allocation11 + $0x4e8] ss:$24 sps:$4 sm:$0xff]   ;;  %v7618_v52 = vld [vmem:[#allocation11 + $0x7b8] ss:$24 sps:$4 sm:$0xff]  }
 0x2ef   : > { %5948 = vmatprep.subr.bf16.mxu0 %v7554_v10  ;;  %v3753_v10 = vrot.slane %v8582_v1, %v898_v39  ;;  %v7632_v39 = vld [vmem:[#allocation11 + $0x164] ss:$24 sps:$4 sm:$0xff]  }
 0x2f1   : > { %5906 = vmatpush1.bf16.msra.mxu1 %v7549_v12  ;;  %v7623_v12 = vld [vmem:[#allocation11 + $0x4bc] ss:$24 sps:$4 sm:$0xff]  }
 0x2f2   : > { %5949 = vmatpush1.bf16.msra.mxu0 %v7552_v13  ;;  %5907 = vmatprep.subr.bf16.mxu1 %v7557_v60  ;;  %v7626_v60 = vld [vmem:[#allocation11 + $0x78c] ss:$24 sps:$4 sm:$0xff]  }
 0x2f3   : > { %5950 = vmatprep.subr.bf16.mxu0 %v7560_v15 }
 0x2f5   : > { %5908 = vmatpush1.bf16.msra.mxu1 %v7555_v17 }
 0x2f6   : > { %5951 = vmatpush1.bf16.msra.mxu0 %v7558_v19  ;;  %5909 = vmatprep.subr.bf16.mxu1 %v7563_v21  ;;  %v7621_v21 = vld [vmem:[#allocation11 + $0x4b8] ss:$24 sps:$4 sm:$0xff]  }
 0x2f7   : > { %5952 = vmatprep.subr.bf16.mxu0 %v7566_v57 }
 0x2f9   : > { %5910 = vmatpush1.bf16.msra.mxu1 %v7561_v24 }
 0x2fa   : > { %5953 = vmatpush1.bf16.msra.mxu0 %v7564_v25  ;;  %5911 = vmatprep.subr.bf16.mxu1 %v7569_v27  ;;  %v7624_v25 = vld [vmem:[#allocation11 + $0x788] ss:$24 sps:$4 sm:$0xff]   ;;  %v7629_v27 = vld [vmem:[#allocation11 + $0x48c] ss:$24 sps:$4 sm:$0xff]  }
 0x2fb   : > { %5954 = vmatprep.subr.bf16.mxu0 %v7572_v34 }
 0x2fd   : > { %5912 = vmatpush1.bf16.msra.mxu1 %v7567_v35 }
 0x2fe   : > { %5955 = vmatpush1.bf16.msra.mxu0 %v7570_v37  ;;  %5913 = vmatprep.subr.bf16.mxu1 %v7575_v38 }
 0x2ff   : > { %5956 = vmatprep.subr.bf16.mxu0 %v7578_v40  ;;  %v7627_v40 = vld [vmem:[#allocation11 + $0x488] ss:$24 sps:$4 sm:$0xff]  }
 0x301   : > { %5914 = vmatpush1.bf16.msra.mxu1 %v7573_v62 }
 0x302   : > { %5957 = vmatpush1.bf16.msra.mxu0 %v7576_v42  ;;  %5915 = vmatprep.subr.bf16.mxu1 %v7581_v45  ;;  %v7630_v42 = vld [vmem:[#allocation11 + $0x160] ss:$24 sps:$4 sm:$0xff]   ;;  %v7635_v45 = vld [vmem:[#allocation11 + $0xa5c] ss:$24 sps:$4 sm:$0xff]  }
 0x303   : > { %5958 = vmatprep.subr.bf16.mxu0 %v7584_v43  ;;  %v7638_v43 = vld [vmem:[#allocation11 + $0x134] ss:$24 sps:$4 sm:$0xff]  }
 0x305   : > { %5916 = vmatpush1.bf16.msra.mxu1 %v7579_v44  ;;  %v7633_v44 = vld [vmem:[#allocation11 + $0xa58] ss:$24 sps:$4 sm:$0xff]  }
 0x306   : > { %5959 = vmatpush2.bf16.msra.mxu0 %v7582_v46  ;;  %5917 = vmatprep.subr.bf16.mxu1 %v7587_v47  ;;  %v7636_v46 = vld [vmem:[#allocation11 + $0x130] ss:$24 sps:$4 sm:$0xff]   ;;  %v7641_v47 = vld [vmem:[#allocation11 + $0xa2c] ss:$24 sps:$4 sm:$0xff]  }
 0x307   : > { %5960 = vmatprep.subr.bf16.mxu0 %v7590_v7  ;;  %v7644_v7 = vld [vmem:[#allocation11 + $0x104] ss:$24 sps:$4 sm:$0xff]  }
 0x309   : > { %5918 = vmatpush2.bf16.msra.mxu1 %v7585_v33  ;;  %v7639_v33 = vld [vmem:[#allocation11 + $0xa28] ss:$24 sps:$4 sm:$0xff]  }
 0x30a   : > { %5961 = vmatpush2.bf16.msra.mxu0 %v7588_v50  ;;  %5919 = vmatprep.subr.bf16.mxu1 %v7593_v53  ;;  %v7642_v50 = vld [vmem:[#allocation11 + $0x100] ss:$24 sps:$4 sm:$0xff]   ;;  %v7647_v53 = vld [vmem:[#allocation11 + $0x9fc] ss:$24 sps:$4 sm:$0xff]  }
 0x30b   : > { %5962 = vmatprep.subr.bf16.mxu0 %v7596_v8  ;;  %v7650_v8 = vld [vmem:[#allocation11 + $0xd4] ss:$24 sps:$4 sm:$0xff]  }
 0x30d   : > { %5920 = vmatpush2.bf16.msra.mxu1 %v7591_v55  ;;  %v7645_v55 = vld [vmem:[#allocation11 + $0x9f8] ss:$24 sps:$4 sm:$0xff]  }
 0x30e   : > { %5963 = vmatpush2.bf16.msra.mxu0 %v7594_v28  ;;  %5921 = vmatprep.subr.bf16.mxu1 %v7599_v58  ;;  %v7653_v28 = vld [vmem:[#allocation11 + $0x9cc] ss:$24 sps:$4 sm:$0xff]  }
 0x30f   : > { %5964 = vmatprep.subr.bf16.mxu0 %v7602_v59  ;;  %v7656_v58 = vld [vmem:[#allocation11 + $0xa4] ss:$24 sps:$4 sm:$0xff]   ;;  %v7651_v59 = vld [vmem:[#allocation11 + $0x9c8] ss:$24 sps:$4 sm:$0xff]  }
 0x311   : > { %5922 = vmatpush2.bf16.msra.mxu1 %v7597_v30  ;;  %v7654_v30 = vld [vmem:[#allocation11 + $0xa0] ss:$24 sps:$4 sm:$0xff]  }
 0x312   : > { %5965 = vmatpush2.bf16.msra.mxu0 %v7600_v20  ;;  %5923 = vmatprep.subr.bf16.mxu1 %v7605_v54  ;;  %v7659_v20 = vld [vmem:[#allocation11 + $0x99c] ss:$24 sps:$4 sm:$0xff]  }
 0x313   : > { %5966 = vmatprep.subr.bf16.mxu0 %v7608_v48  ;;  %v7662_v54 = vld [vmem:[#allocation11 + $0x74] ss:$24 sps:$4 sm:$0xff]   ;;  %v7657_v48 = vld [vmem:[#allocation11 + $0x998] ss:$24 sps:$4 sm:$0xff]  }
 0x315   : > { %5924 = vmatpush2.bf16.msra.mxu1 %v7603_v36  ;;  %v7660_v36 = vld [vmem:[#allocation11 + $0x70] ss:$24 sps:$4 sm:$0xff]  }
 0x316   : > { %5967 = vmatpush2.bf16.msra.mxu0 %v7606_v18  ;;  %5925 = vmatprep.subr.bf16.mxu1 %v7611_v11  ;;  %v7665_v18 = vld [vmem:[#allocation11 + $0x96c] ss:$24 sps:$4 sm:$0xff]  }
 0x317   : > { %5968 = vmatprep.subr.bf16.mxu0 %v7614_v23  ;;  %v7668_v11 = vld [vmem:[#allocation11 + $0x44] ss:$24 sps:$4 sm:$0xff]   ;;  %v7663_v23 = vld [vmem:[#allocation11 + $0x968] ss:$24 sps:$4 sm:$0xff]  }
 0x319   : > { %5926 = vmatpush2.bf16.msra.mxu1 %v7609_v56  ;;  %v7666_v56 = vld [vmem:[#allocation11 + $0x40] ss:$24 sps:$4 sm:$0xff]  }
 0x31a   : > { %5969 = vmatpush2.bf16.msra.mxu0 %v7612_v3  ;;  %5927 = vmatprep.subr.bf16.mxu1 %v7617_v29  ;;  %v7671_v3 = vld [vmem:[#allocation11 + $0x93c] ss:$24 sps:$4 sm:$0xff]  }
 0x31b   : > { %v5730_v13 = vpop.f32.mrf.mxu0  ;;  %5970 = vmatprep.subr.bf16.mxu0 %v7620_v4  ;;  %v7674_v29 = vld [vmem:[#allocation11 + $0x14] ss:$24 sps:$4 sm:$0xff]   ;;  %v7669_v4 = vld [vmem:[#allocation11 + $0x938] ss:$24 sps:$4 sm:$0xff]  }
 0x31c   : > { %v5731_v15 = vadd.f32 %v5730_v13, %v3749_v6  ;;  %v5771_v17 = vpop.f32.mrf.mxu1  ;;  %v7672_v6 = vld [vmem:[#allocation11 + $0x10] ss:$24 sps:$4 sm:$0xff]   ;;  %v7683_v13 = vld [vmem:[#allocation11 + $0xbdc] ss:$24 sps:$4 sm:$0xff]  }
 0x31d   : > { %5928 = vmatpush2.bf16.msra.mxu1 %v7615_v9  ;;  %v5732_v19 = vpop.f32.mrf.mxu0  ;;  %v7677_v9 = vld [vmem:[#allocation11 + $0x90c] ss:$24 sps:$4 sm:$0xff]  }
 0x31e   : > { %v8590_v57 = vadd.f32 %v5771_v17, %v5731_v15  ;;  %v5733_v32 = vadd.f32 %v5732_v19, %v3753_v10  ;;  %v5773_v24 = vpop.f32.mrf.mxu1  ;;  %5971 = vmatpush2.bf16.msra.mxu0 %v7618_v52  ;;  %5929 = vmatprep.subr.bf16.mxu1 %v7623_v12  ;;  %v7680_v52 = vld [vmem:[#allocation11 + $0x2e4] ss:$24 sps:$4 sm:$0xff]   ;;  %v7675_v10 = vld [vmem:[#allocation11 + $0x908] ss:$24 sps:$4 sm:$0xff]   ;;  %v7681_v15 = vld [vmem:[#allocation11 + $0xbd8] ss:$24 sps:$4 sm:$0xff]  }
 0x31f   : > { %v5734_v34 = vpop.f32.mrf.mxu0  ;;  %5972 = vmatprep.subr.bf16.mxu0 %v7626_v60  ;;  %v7678_v12 = vld [vmem:[#allocation11 + $0x2e0] ss:$24 sps:$4 sm:$0xff]   ;;  %v7686_v60 = vld [vmem:[#allocation11 + $0x2b4] ss:$24 sps:$4 sm:$0xff]   ;;  %v7684_v17 = vld [vmem:[#allocation11 + $0x2b0] ss:$24 sps:$4 sm:$0xff]  }
 0x320   : > { %v8592_v35 = vadd.f32 %v5773_v24, %v5733_v32  ;;  %v5775_v37 = vpop.f32.mrf.mxu1  ;;  %v7689_v19 = vld [vmem:[#allocation11 + $0xbac] ss:$24 sps:$4 sm:$0xff]   ;;  %v7687_v32 = vld [vmem:[#allocation11 + $0xba8] ss:$24 sps:$4 sm:$0xff]   ;;  %v7693_v34 = vld [vmem:[#allocation11 + $0xb78] ss:$24 sps:$4 sm:$0xff]  }
 0x321   : > { %5930 = vmatpush2.bf16.msra.mxu1 %v7621_v21  ;;  %v5735_v38 = vpop.f32.mrf.mxu0  ;;  %v7692_v21 = vld [vmem:[#allocation11 + $0x284] ss:$24 sps:$4 sm:$0xff]   ;;  %v7690_v24 = vld [vmem:[#allocation11 + $0x280] ss:$24 sps:$4 sm:$0xff]  }
 0x322   : > { %v5776_v62 = vpop.f32.mrf.mxu1  ;;  %5973 = vmatpush2.bf16.msra.mxu0 %v7624_v25  ;;  %5931 = vmatprep.subr.bf16.mxu1 %v7629_v27  ;;  %v7695_v25 = vld [vmem:[#allocation11 + $0xb7c] ss:$24 sps:$4 sm:$0xff]   ;;  %v7701_v37 = vld [vmem:[#allocation11 + $0xb4c] ss:$24 sps:$4 sm:$0xff]  }
 0x323   : > { %6024 = vmatprep.subr.bf16.mxu0 %v7632_v39  ;;  %v7698_v27 = vld [vmem:[#allocation11 + $0x254] ss:$24 sps:$4 sm:$0xff]   ;;  %v7696_v39 = vld [vmem:[#allocation11 + $0x250] ss:$24 sps:$4 sm:$0xff]   ;;  %v7704_v38 = vld [vmem:[#allocation11 + $0x224] ss:$24 sps:$4 sm:$0xff]  }
 0x324   : > { %v7702_v62 = vld [vmem:[#allocation11 + $0x220] ss:$24 sps:$4 sm:$0xff]  }
 0x325   : > { %5932 = vmatpush2.bf16.msra.mxu1 %v7627_v40  ;;  %5975 = vmatmul.mubr.bf16.vlgmr.msra.gmra.mxu0 %v8562_v63  ;;  %v7699_v40 = vld [vmem:[#allocation11 + $0xb48] ss:$24 sps:$4 sm:$0xff]  }
 0x326   : > { %6025 = vmatpush1.bf16.msra.mxu0 %v7630_v42  ;;  %6056 = vmatprep.mubr.bf16.mxu0 %v8507_v51  ;;  %v7648_v51 = vld [vmem:[#allocation11 + $0xd0] ss:$24 sps:$4 sm:$0xff]   ;;  %v7707_v42 = vld [vmem:[#allocation11 + $0xb1c] ss:$24 sps:$4 sm:$0xff]  }
 0x327   : > { %5983 = vmatprep.subr.bf16.mxu1 %v7635_v45  ;;  %6026 = vmatprep.subr.bf16.mxu0 %v7638_v43  ;;  %v7710_v45 = vld [vmem:[#allocation11 + $0x1f4] ss:$24 sps:$4 sm:$0xff]   ;;  %v7705_v43 = vld [vmem:[#allocation11 + $0xb18] ss:$24 sps:$4 sm:$0xff]  }
 0x328   : > { %5934 = vmatmul.mubr.bf16.vlgmr.msra.gmra.mxu1 %v8532_v16 }
 0x329   : > { %5984 = vmatpush1.bf16.msra.mxu1 %v7633_v44  ;;  %6015 = vmatprep.mubr.bf16.mxu1 %v8573_v0  ;;  %v7708_v44 = vld [vmem:[#allocation11 + $0x1f0] ss:$24 sps:$4 sm:$0xff]  }
 0x32a   : > { %6027 = vmatpush1.bf16.msra.mxu0 %v7636_v46  ;;  %5985 = vmatprep.subr.bf16.mxu1 %v7641_v47  ;;  %v7713_v46 = vld [vmem:[#allocation11 + $0xaec] ss:$24 sps:$4 sm:$0xff]  }
 0x32b   : > { %6028 = vmatprep.subr.bf16.mxu0 %v7644_v7  ;;  %v7716_v47 = vld [vmem:[#allocation11 + $0x1c4] ss:$24 sps:$4 sm:$0xff]   ;;  %v7711_v7 = vld [vmem:[#allocation11 + $0xae8] ss:$24 sps:$4 sm:$0xff]  }
 0x32d   : > { %5986 = vmatpush1.bf16.msra.mxu1 %v7639_v33  ;;  %v7714_v33 = vld [vmem:[#allocation11 + $0x1c0] ss:$24 sps:$4 sm:$0xff]  }
 0x32e   : > { %6029 = vmatpush1.bf16.msra.mxu0 %v7642_v50  ;;  %5987 = vmatprep.subr.bf16.mxu1 %v7647_v53  ;;  %v7719_v50 = vld [vmem:[#allocation11 + $0xabc] ss:$24 sps:$4 sm:$0xff]  }
 0x32f   : > { %6030 = vmatprep.subr.bf16.mxu0 %v7650_v8  ;;  %v7722_v53 = vld [vmem:[#allocation11 + $0x194] ss:$24 sps:$4 sm:$0xff]   ;;  %v7717_v8 = vld [vmem:[#allocation11 + $0xab8] ss:$24 sps:$4 sm:$0xff]  }
 0x331   : > { %5988 = vmatpush1.bf16.msra.mxu1 %v7645_v55  ;;  %v7720_v55 = vld [vmem:[#allocation11 + $0x190] ss:$24 sps:$4 sm:$0xff]  }
 0x332   : > { %6031 = vmatpush1.bf16.msra.mxu0 %v7648_v51  ;;  %5989 = vmatprep.subr.bf16.mxu1 %v7653_v28  ;;  %v7725_v51 = vld [vmem:[#allocation11 + $0xa8c] ss:$24 sps:$4 sm:$0xff]  }
 0x333   : > { %6032 = vmatprep.subr.bf16.mxu0 %v7656_v58  ;;  %v7728_v28 = vld [vmem:[#allocation11 + $0x764] ss:$24 sps:$4 sm:$0xff]   ;;  %v7723_v58 = vld [vmem:[#allocation11 + $0xa88] ss:$24 sps:$4 sm:$0xff]  }
 0x335   : > { %5990 = vmatpush1.bf16.msra.mxu1 %v7651_v59  ;;  %v7726_v59 = vld [vmem:[#allocation11 + $0x760] ss:$24 sps:$4 sm:$0xff]  }
 0x336   : > { %6033 = vmatpush1.bf16.msra.mxu0 %v7654_v30  ;;  %5991 = vmatprep.subr.bf16.mxu1 %v7659_v20  ;;  %v7731_v30 = vld [vmem:[#allocation11 + $0x464] ss:$24 sps:$4 sm:$0xff]   ;;  %v7734_v20 = vld [vmem:[#allocation11 + $0x734] ss:$24 sps:$4 sm:$0xff]  }
 0x337   : > { %6034 = vmatprep.subr.bf16.mxu0 %v7662_v54 }
 0x339   : > { %5992 = vmatpush1.bf16.msra.mxu1 %v7657_v48  ;;  %v7729_v48 = vld [vmem:[#allocation11 + $0x460] ss:$24 sps:$4 sm:$0xff]  }
 0x33a   : > { %6035 = vmatpush1.bf16.msra.mxu0 %v7660_v36  ;;  %5993 = vmatprep.subr.bf16.mxu1 %v7665_v18  ;;  %v7732_v18 = vld [vmem:[#allocation11 + $0x730] ss:$24 sps:$4 sm:$0xff]  }
 0x33b   : > { %6036 = vmatprep.subr.bf16.mxu0 %v7668_v11  ;;  %v7737_v11 = vld [vmem:[#allocation11 + $0x434] ss:$24 sps:$4 sm:$0xff]  }
 0x33d   : > { %5994 = vmatpush1.bf16.msra.mxu1 %v7663_v23 }
 0x33e   : > { %6037 = vmatpush1.bf16.msra.mxu0 %v7666_v56  ;;  %5995 = vmatprep.subr.bf16.mxu1 %v7671_v3  ;;  %v7740_v56 = vld [vmem:[#allocation11 + $0x704] ss:$24 sps:$4 sm:$0xff]  }
 0x33f   : > { %6038 = vmatprep.subr.bf16.mxu0 %v7674_v29  ;;  %v7738_v29 = vld [vmem:[#allocation11 + $0x700] ss:$24 sps:$4 sm:$0xff]  }
 0x341   : > { %5996 = vmatpush1.bf16.msra.mxu1 %v7669_v4 }
 0x342   : > { %6039 = vmatpush1.bf16.msra.mxu0 %v7672_v6  ;;  %5997 = vmatprep.subr.bf16.mxu1 %v7677_v9  ;;  %v7746_v6 = vld [vmem:[#allocation11 + $0x6d4] ss:$24 sps:$4 sm:$0xff]   ;;  %v7741_v9 = vld [vmem:[#allocation11 + $0x400] ss:$24 sps:$4 sm:$0xff]  }
 0x343   : > { %6040 = vmatprep.subr.bf16.mxu0 %v7680_v52  ;;  %v7744_v52 = vld [vmem:[#allocation11 + $0x6d0] ss:$24 sps:$4 sm:$0xff]  }
 0x345   : > { %5998 = vmatpush1.bf16.msra.mxu1 %v7675_v10  ;;  %v7749_v10 = vld [vmem:[#allocation11 + $0x3d4] ss:$24 sps:$4 sm:$0xff]  }
 0x346   : > { %6041 = vmatpush2.bf16.msra.mxu0 %v7678_v12  ;;  %5999 = vmatprep.subr.bf16.mxu1 %v7683_v13  ;;  %v7747_v12 = vld [vmem:[#allocation11 + $0x3d0] ss:$24 sps:$4 sm:$0xff]   ;;  %v7755_v13 = vld [vmem:[#allocation11 + $0x3a4] ss:$24 sps:$4 sm:$0xff]  }
 0x347   : > { %6042 = vmatprep.subr.bf16.mxu0 %v7686_v60  ;;  %v7758_v60 = vld [vmem:[#allocation11 + $0x674] ss:$24 sps:$4 sm:$0xff]  }
 0x349   : > { %6000 = vmatpush2.bf16.msra.mxu1 %v7681_v15  ;;  %v7753_v15 = vld [vmem:[#allocation11 + $0x3a0] ss:$24 sps:$4 sm:$0xff]  }
 0x34a   : > { %6043 = vmatpush2.bf16.msra.mxu0 %v7684_v17  ;;  %6001 = vmatprep.subr.bf16.mxu1 %v7689_v19  ;;  %v7756_v17 = vld [vmem:[#allocation11 + $0x670] ss:$24 sps:$4 sm:$0xff]   ;;  %v7761_v19 = vld [vmem:[#allocation11 + $0x374] ss:$24 sps:$4 sm:$0xff]  }
 0x34b   : > { %6044 = vmatprep.subr.bf16.mxu0 %v7692_v21  ;;  %v7764_v21 = vld [vmem:[#allocation11 + $0x644] ss:$24 sps:$4 sm:$0xff]  }
 0x34d   : > { %6002 = vmatpush2.bf16.msra.mxu1 %v7687_v32  ;;  %v7759_v32 = vld [vmem:[#allocation11 + $0x370] ss:$24 sps:$4 sm:$0xff]  }
 0x34e   : > { %6045 = vmatpush2.bf16.msra.mxu0 %v7690_v24  ;;  %6003 = vmatprep.subr.bf16.mxu1 %v7695_v25  ;;  %v7762_v24 = vld [vmem:[#allocation11 + $0x640] ss:$24 sps:$4 sm:$0xff]   ;;  %v7767_v25 = vld [vmem:[#allocation11 + $0x344] ss:$24 sps:$4 sm:$0xff]  }
 0x34f   : > { %6046 = vmatprep.subr.bf16.mxu0 %v7698_v27  ;;  %v7770_v27 = vld [vmem:[#allocation11 + $0x614] ss:$24 sps:$4 sm:$0xff]  }
 0x351   : > { %6004 = vmatpush2.bf16.msra.mxu1 %v7693_v34  ;;  %v7765_v34 = vld [vmem:[#allocation11 + $0x340] ss:$24 sps:$4 sm:$0xff]  }
 0x352   : > { %6047 = vmatpush2.bf16.msra.mxu0 %v7696_v39  ;;  %6005 = vmatprep.subr.bf16.mxu1 %v7701_v37  ;;  %v7768_v39 = vld [vmem:[#allocation11 + $0x610] ss:$24 sps:$4 sm:$0xff]   ;;  %v7773_v37 = vld [vmem:[#allocation11 + $0x314] ss:$24 sps:$4 sm:$0xff]  }
 0x353   : > { %6048 = vmatprep.subr.bf16.mxu0 %v7704_v38  ;;  %v7776_v38 = vld [vmem:[#allocation11 + $0x8e4] ss:$24 sps:$4 sm:$0xff]  }
 0x355   : > { %6006 = vmatpush2.bf16.msra.mxu1 %v7699_v40  ;;  %v7771_v40 = vld [vmem:[#allocation11 + $0x310] ss:$24 sps:$4 sm:$0xff]  }
 0x356   : > { %6049 = vmatpush2.bf16.msra.mxu0 %v7702_v62  ;;  %6007 = vmatprep.subr.bf16.mxu1 %v7707_v42  ;;  %v7774_v62 = vld [vmem:[#allocation11 + $0x8e0] ss:$24 sps:$4 sm:$0xff]   ;;  %v7779_v42 = vld [vmem:[#allocation11 + $0x5e4] ss:$24 sps:$4 sm:$0xff]  }
 0x357   : > { %6050 = vmatprep.subr.bf16.mxu0 %v7710_v45  ;;  %v7782_v45 = vld [vmem:[#allocation11 + $0x8b4] ss:$24 sps:$4 sm:$0xff]  }
 0x359   : > { %6008 = vmatpush2.bf16.msra.mxu1 %v7705_v43  ;;  %v7777_v43 = vld [vmem:[#allocation11 + $0x5e0] ss:$24 sps:$4 sm:$0xff]  }
 0x35a   : > { %6051 = vmatpush2.bf16.msra.mxu0 %v7708_v44  ;;  %6009 = vmatprep.subr.bf16.mxu1 %v7713_v46  ;;  %v7780_v44 = vld [vmem:[#allocation11 + $0x8b0] ss:$24 sps:$4 sm:$0xff]   ;;  %v7785_v46 = vld [vmem:[#allocation11 + $0x5b4] ss:$24 sps:$4 sm:$0xff]  }
 0x35b   : > { %6052 = vmatprep.subr.bf16.mxu0 %v7716_v47  ;;  %v7788_v47 = vld [vmem:[#allocation11 + $0x884] ss:$24 sps:$4 sm:$0xff]  }
 0x35d   : > { %6010 = vmatpush2.bf16.msra.mxu1 %v7711_v7  ;;  %v7783_v7 = vld [vmem:[#allocation11 + $0x5b0] ss:$24 sps:$4 sm:$0xff]  }
 0x35e   : > { %6053 = vmatpush2.bf16.msra.mxu0 %v7714_v33  ;;  %6011 = vmatprep.subr.bf16.mxu1 %v7719_v50  ;;  %v7786_v33 = vld [vmem:[#allocation11 + $0x880] ss:$24 sps:$4 sm:$0xff]   ;;  %v7791_v50 = vld [vmem:[#allocation11 + $0x584] ss:$24 sps:$4 sm:$0xff]  }
 0x35f   : > { %6054 = vmatprep.subr.bf16.mxu0 %v7722_v53  ;;  %v7794_v53 = vld [vmem:[#allocation11 + $0x854] ss:$24 sps:$4 sm:$0xff]  }
 0x361   : > { %6012 = vmatpush2.bf16.msra.mxu1 %v7717_v8  ;;  %v7789_v8 = vld [vmem:[#allocation11 + $0x580] ss:$24 sps:$4 sm:$0xff]  }
 0x362   : > { %6055 = vmatpush2.bf16.msra.mxu0 %v7720_v55  ;;  %6013 = vmatprep.subr.bf16.mxu1 %v7725_v51  ;;  %v7792_v55 = vld [vmem:[#allocation11 + $0x850] ss:$24 sps:$4 sm:$0xff]   ;;  %v7797_v51 = vld [vmem:[#allocation11 + $0x554] ss:$24 sps:$4 sm:$0xff]  }
 0x363   : > { %6106 = vmatprep.subr.bf16.mxu0 %v7728_v28  ;;  %v7800_v28 = vld [vmem:[#allocation11 + $0x824] ss:$24 sps:$4 sm:$0xff]  }
 0x365   : > { %6014 = vmatpush2.bf16.msra.mxu1 %v7723_v58  ;;  %6057 = vmatmul.mubr.bf16.vlgmr.msra.gmra.mxu0 %v8530_v14  ;;  %v5812_v54 = vpop.f32.mrf.mxu0  ;;  %v7795_v58 = vld [vmem:[#allocation11 + $0x550] ss:$24 sps:$4 sm:$0xff]  }
 0x366   : > { %v8600_v36 = vadd.f32 %v5812_v54, %v8590_v57  ;;  %6107 = vmatpush1.bf16.msra.mxu0 %v7726_v59  ;;  %6138 = vmatprep.mubr.bf16.mxu0 %v8560_v61  ;;  %v7735_v57 = vld [vmem:[#allocation11 + $0x430] ss:$24 sps:$4 sm:$0xff]   ;;  %v7743_v61 = vld [vmem:[#allocation11 + $0x404] ss:$24 sps:$4 sm:$0xff]   ;;  %v7798_v59 = vld [vmem:[#allocation11 + $0x820] ss:$24 sps:$4 sm:$0xff]  }
 0x367   : > { %6065 = vmatprep.subr.bf16.mxu1 %v7731_v30  ;;  %v5814_v23 = vpop.f32.mrf.mxu0  ;;  %6108 = vmatprep.subr.bf16.mxu0 %v7734_v20  ;;  %v7803_v30 = vld [vmem:[#allocation11 + $0x524] ss:$24 sps:$4 sm:$0xff]   ;;  %v7806_v20 = vld [vmem:[#allocation11 + $0x7f4] ss:$24 sps:$4 sm:$0xff]   ;;  %v7801_v54 = vld [vmem:[#allocation11 + $0x520] ss:$24 sps:$4 sm:$0xff]  }
 0x368   : > { %6016 = vmatmul.mubr.bf16.vlgmr.msra.gmra.mxu1 %v8576_v2  ;;  %v8605_v3 = vadd.f32 %v5814_v23, %v8592_v35  ;;  %v7752_v35 = vld [vmem:[#allocation11 + $0x6a4] ss:$24 sps:$4 sm:$0xff]   ;;  %v7807_v23 = vld [vmem:[#allocation11 + $0x4f0] ss:$24 sps:$4 sm:$0xff]  }
 0x369   : > { %6066 = vmatpush1.bf16.msra.mxu1 %v7729_v48  ;;  %6097 = vmatprep.mubr.bf16.mxu1 %v8517_v5  ;;  %v5816_v14 = vpop.f32.mrf.mxu0  ;;  %v7750_v5 = vld [vmem:[#allocation11 + $0x6a0] ss:$24 sps:$4 sm:$0xff]   ;;  %v7804_v48 = vld [vmem:[#allocation11 + $0x7f0] ss:$24 sps:$4 sm:$0xff]  }
 0x36a   : > { %6109 = vmatpush1.bf16.msra.mxu0 %v7732_v18  ;;  %6067 = vmatprep.subr.bf16.mxu1 %v7737_v11  ;;  %v7809_v18 = vld [vmem:[#allocation11 + $0x4f4] ss:$24 sps:$4 sm:$0xff]   ;;  %v7812_v11 = vld [vmem:[#allocation11 + $0x7c4] ss:$24 sps:$4 sm:$0xff]  }
 0x36b   : > { %v5817_v4 = vpop.f32.mrf.mxu0  ;;  %6110 = vmatprep.subr.bf16.mxu0 %v7740_v56  ;;  %v7810_v56 = vld [vmem:[#allocation11 + $0x7c0] ss:$24 sps:$4 sm:$0xff]   ;;  %v7815_v14 = vld [vmem:[#allocation11 + $0x4c4] ss:$24 sps:$4 sm:$0xff]  }
 0x36c   : > { %v7821_v4 = vld [vmem:[#allocation11 + $0x494] ss:$24 sps:$4 sm:$0xff]  }
 0x36d   : > { %6068 = vmatpush1.bf16.msra.mxu1 %v7735_v57  ;;  %v7818_v57 = vld [vmem:[#allocation11 + $0x794] ss:$24 sps:$4 sm:$0xff]  }
 0x36e   : > { %6111 = vmatpush1.bf16.msra.mxu0 %v7738_v29  ;;  %6069 = vmatprep.subr.bf16.mxu1 %v7743_v61  ;;  %v7813_v29 = vld [vmem:[#allocation11 + $0x4c0] ss:$24 sps:$4 sm:$0xff]   ;;  %v7816_v61 = vld [vmem:[#allocation11 + $0x790] ss:$24 sps:$4 sm:$0xff]  }
 0x36f   : > { %6112 = vmatprep.subr.bf16.mxu0 %v7746_v6  ;;  %v7819_v6 = vld [vmem:[#allocation11 + $0x490] ss:$24 sps:$4 sm:$0xff]  }
 0x371   : > { %6070 = vmatpush1.bf16.msra.mxu1 %v7741_v9  ;;  %v7824_v9 = vld [vmem:[#allocation11 + $0xa64] ss:$24 sps:$4 sm:$0xff]  }
 0x372   : > { %6113 = vmatpush1.bf16.msra.mxu0 %v7744_v52  ;;  %6071 = vmatprep.subr.bf16.mxu1 %v7749_v10  ;;  %v7822_v10 = vld [vmem:[#allocation11 + $0xa60] ss:$24 sps:$4 sm:$0xff]  }
 0x373   : > { %6114 = vmatprep.subr.bf16.mxu0 %v7752_v35  ;;  %v7827_v35 = vld [vmem:[#allocation11 + $0xa34] ss:$24 sps:$4 sm:$0xff]  }
 0x375   : > { %6072 = vmatpush1.bf16.msra.mxu1 %v7747_v12 }
 0x376   : > { %6115 = vmatpush1.bf16.msra.mxu0 %v7750_v5  ;;  %6073 = vmatprep.subr.bf16.mxu1 %v7755_v13 }
 0x377   : > { %6116 = vmatprep.subr.bf16.mxu0 %v7758_v60 }
 0x379   : > { %6074 = vmatpush1.bf16.msra.mxu1 %v7753_v15  ;;  %v7825_v15 = vld [vmem:[#allocation11 + $0xa30] ss:$24 sps:$4 sm:$0xff]  }
 0x37a   : > { %6117 = vmatpush1.bf16.msra.mxu0 %v7756_v17  ;;  %6075 = vmatprep.subr.bf16.mxu1 %v7761_v19  ;;  %v7830_v19 = vld [vmem:[#allocation11 + $0xa04] ss:$24 sps:$4 sm:$0xff]  }
 0x37b   : > { %6118 = vmatprep.subr.bf16.mxu0 %v7764_v21 }
 0x37d   : > { %6076 = vmatpush1.bf16.msra.mxu1 %v7759_v32 }
 0x37e   : > { %6119 = vmatpush1.bf16.msra.mxu0 %v7762_v24  ;;  %6077 = vmatprep.subr.bf16.mxu1 %v7767_v25  ;;  %v7831_v24 = vld [vmem:[#allocation11 + $0x9d0] ss:$24 sps:$4 sm:$0xff]   ;;  %v7836_v25 = vld [vmem:[#allocation11 + $0x9a4] ss:$24 sps:$4 sm:$0xff]  }
 0x37f   : > { %6120 = vmatprep.subr.bf16.mxu0 %v7770_v27  ;;  %v7834_v27 = vld [vmem:[#allocation11 + $0x9a0] ss:$24 sps:$4 sm:$0xff]  }
 0x381   : > { %6078 = vmatpush1.bf16.msra.mxu1 %v7765_v34  ;;  %v7839_v34 = vld [vmem:[#allocation11 + $0x974] ss:$24 sps:$4 sm:$0xff]  }
 0x382   : > { %6121 = vmatpush1.bf16.msra.mxu0 %v7768_v39  ;;  %6079 = vmatprep.subr.bf16.mxu1 %v7773_v37  ;;  %v7837_v39 = vld [vmem:[#allocation11 + $0x970] ss:$24 sps:$4 sm:$0xff]   ;;  %v7840_v37 = vld [vmem:[#allocation11 + $0x940] ss:$24 sps:$4 sm:$0xff]  }
 0x383   : > { %6122 = vmatprep.subr.bf16.mxu0 %v7776_v38  ;;  %v7845_v38 = vld [vmem:[#allocation11 + $0x914] ss:$24 sps:$4 sm:$0xff]  }
 0x385   : > { %6080 = vmatpush1.bf16.msra.mxu1 %v7771_v40  ;;  %v7843_v40 = vld [vmem:[#allocation11 + $0x910] ss:$24 sps:$4 sm:$0xff]  }
 0x386   : > { %6123 = vmatpush2.bf16.msra.mxu0 %v7774_v62  ;;  %6081 = vmatprep.subr.bf16.mxu1 %v7779_v42  ;;  %v7848_v62 = vld [vmem:[#allocation11 + $0xbe4] ss:$24 sps:$4 sm:$0xff]   ;;  %v7846_v42 = vld [vmem:[#allocation11 + $0xbe0] ss:$24 sps:$4 sm:$0xff]  }
 0x387   : > { %6124 = vmatprep.subr.bf16.mxu0 %v7782_v45  ;;  %v7851_v45 = vld [vmem:[#allocation11 + $0xbb4] ss:$24 sps:$4 sm:$0xff]  }
 0x389   : > { %6082 = vmatpush2.bf16.msra.mxu1 %v7777_v43  ;;  %v7849_v43 = vld [vmem:[#allocation11 + $0xbb0] ss:$24 sps:$4 sm:$0xff]  }
 0x38a   : > { %6125 = vmatpush2.bf16.msra.mxu0 %v7780_v44  ;;  %6083 = vmatprep.subr.bf16.mxu1 %v7785_v46  ;;  %v7854_v44 = vld [vmem:[#allocation11 + $0xb84] ss:$24 sps:$4 sm:$0xff]   ;;  %v7852_v46 = vld [vmem:[#allocation11 + $0xb80] ss:$24 sps:$4 sm:$0xff]  }
 0x38b   : > { %6126 = vmatprep.subr.bf16.mxu0 %v7788_v47  ;;  %v7857_v47 = vld [vmem:[#allocation11 + $0xb54] ss:$24 sps:$4 sm:$0xff]  }
 0x38d   : > { %6084 = vmatpush2.bf16.msra.mxu1 %v7783_v7  ;;  %v7855_v7 = vld [vmem:[#allocation11 + $0xb50] ss:$24 sps:$4 sm:$0xff]  }
 0x38e   : > { %6127 = vmatpush2.bf16.msra.mxu0 %v7786_v33  ;;  %6085 = vmatprep.subr.bf16.mxu1 %v7791_v50  ;;  %v7860_v33 = vld [vmem:[#allocation11 + $0xb24] ss:$24 sps:$4 sm:$0xff]   ;;  %v7858_v50 = vld [vmem:[#allocation11 + $0xb20] ss:$24 sps:$4 sm:$0xff]  }
 0x38f   : > { %6128 = vmatprep.subr.bf16.mxu0 %v7794_v53  ;;  %v7863_v53 = vld [vmem:[#allocation11 + $0xaf4] ss:$24 sps:$4 sm:$0xff]  }
 0x391   : > { %6086 = vmatpush2.bf16.msra.mxu1 %v7789_v8  ;;  %v7861_v8 = vld [vmem:[#allocation11 + $0xaf0] ss:$24 sps:$4 sm:$0xff]  }
 0x392   : > { %6129 = vmatpush2.bf16.msra.mxu0 %v7792_v55  ;;  %6087 = vmatprep.subr.bf16.mxu1 %v7797_v51  ;;  %v7866_v55 = vld [vmem:[#allocation11 + $0xac4] ss:$24 sps:$4 sm:$0xff]   ;;  %v7864_v51 = vld [vmem:[#allocation11 + $0xac0] ss:$24 sps:$4 sm:$0xff]  }
 0x393   : > { %6130 = vmatprep.subr.bf16.mxu0 %v7800_v28  ;;  %v7869_v28 = vld [vmem:[#allocation11 + $0xa94] ss:$24 sps:$4 sm:$0xff]  }
 0x395   : > { %6088 = vmatpush2.bf16.msra.mxu1 %v7795_v58  ;;  %v7867_v58 = vld [vmem:[#allocation11 + $0xa90] ss:$24 sps:$4 sm:$0xff]  }
 0x396   : > { %6131 = vmatpush2.bf16.msra.mxu0 %v7798_v59  ;;  %6089 = vmatprep.subr.bf16.mxu1 %v7803_v30  ;;  %v3757_v59 = vrot.slane %v8582_v1, %v902_v49  ;;  %v3761_v30 = vrot.slane %v8582_v1, %v906_v41 }
 0x397   : > { %6132 = vmatprep.subr.bf16.mxu0 %v7806_v20 }
 0x399   : > { %6090 = vmatpush2.bf16.msra.mxu1 %v7801_v54 }
 0x39a   : > { %6133 = vmatpush2.bf16.msra.mxu0 %v7804_v48  ;;  %6091 = vmatprep.subr.bf16.mxu1 %v7809_v18 }
 0x39b   : > { %6134 = vmatprep.subr.bf16.mxu0 %v7812_v11 }
 0x39d   : > { %6092 = vmatpush2.bf16.msra.mxu1 %v7807_v23 }
 0x39e   : > { %6135 = vmatpush2.bf16.msra.mxu0 %v7810_v56  ;;  %6093 = vmatprep.subr.bf16.mxu1 %v7815_v14 }
 0x39f   : > { %6136 = vmatprep.subr.bf16.mxu0 %v7818_v57 }
 0x3a1   : > { %6094 = vmatpush2.bf16.msra.mxu1 %v7813_v29 }
 0x3a2   : > { %6137 = vmatpush2.bf16.msra.mxu0 %v7816_v61  ;;  %6095 = vmatprep.subr.bf16.mxu1 %v7821_v4 }
 0x3a5   : > { %6096 = vmatpush2.bf16.msra.mxu1 %v7819_v6  ;;  %v8608_v52 = vpop.f32.mrf.mxu0  ;;  %6139 = vmatmul.mubr.bf16.vlgmr.msra.gmra.mxu0 %v8562_v63 }
 0x3a6   : > { %6147 = vmatprep.subr.bf16.mxu1 %v7824_v9  ;;  %v5895_v54 = vadd.f32 %v8608_v52, %v3757_v59 }
 0x3a7   : > { %v8611_v12 = vpop.f32.mrf.mxu0 }
 0x3a8   : > { %6098 = vmatmul.mubr.bf16.vlgmr.msra.gmra.mxu1 %v8532_v16  ;;  %v5853_v5 = vpop.f32.mrf.mxu1  ;;  %v5897_v11 = vadd.f32 %v8611_v12, %v3761_v30 }
 0x3a9   : > { %v5854_v13 = vadd.f32 %v5853_v5, %v8600_v36  ;;  %6148 = vmatpush1.bf16.msra.mxu1 %v7822_v10  ;;  %6179 = vmatprep.mubr.bf16.mxu1 %v8573_v0  ;;  %v5898_v60 = vpop.f32.mrf.mxu0  ;;  %v7828_v36 = vld [vmem:[#allocation11 + $0xa00] ss:$24 sps:$4 sm:$0xff]   ;;  %v7833_v0 = vld [vmem:[#allocation11 + $0x9d4] ss:$24 sps:$4 sm:$0xff]  }
 0x3aa   : > { %v5855_v17 = vpop.f32.mrf.mxu1  ;;  %6149 = vmatprep.subr.bf16.mxu1 %v7827_v35 }
 0x3ab   : > { %6188 = vst [vmem:[%s8617_s30] sm:$0xff] %v5854_v13  ;;  %v5856_v63 = vadd.f32 %v5855_v17, %v8605_v3  ;;  %v5899_v21 = vpop.f32.mrf.mxu0  ;;  %v7842_v3 = vld [vmem:[#allocation11 + $0x944] ss:$24 sps:$4 sm:$0xff]   ;;  %v3769_v17 = vrot.slane %v8582_v1, %v914_v31 }
 0x3ac   : > { %v5857_v16 = vpop.f32.mrf.mxu1 }
 0x3ad   : > { %6189 = vst [vmem:[%s8617_s30 + $0x8] sm:$0xff] %v5856_v63  ;;  %6150 = vmatpush1.bf16.msra.mxu1 %v7825_v15  ;;  %v3765_v15 = vrot.slane %v8582_v1, %v910_v26 }
 0x3ae   : > { %v5858_v32 = vpop.f32.mrf.mxu1  ;;  %6151 = vmatprep.subr.bf16.mxu1 %v7830_v19 }
 0x3b1   : > { %6152 = vmatpush1.bf16.msra.mxu1 %v7828_v36 }
 0x3b2   : > { %6153 = vmatprep.subr.bf16.mxu1 %v7833_v0 }
 0x3b5   : > { %6154 = vmatpush1.bf16.msra.mxu1 %v7831_v24 }
 0x3b6   : > { %6155 = vmatprep.subr.bf16.mxu1 %v7836_v25 }
 0x3b9   : > { %6156 = vmatpush1.bf16.msra.mxu1 %v7834_v27 }
 0x3ba   : > { %6157 = vmatprep.subr.bf16.mxu1 %v7839_v34 }
 0x3bd   : > { %6158 = vmatpush1.bf16.msra.mxu1 %v7837_v39 }
 0x3be   : > { %6159 = vmatprep.subr.bf16.mxu1 %v7842_v3 }
 0x3c1   : > { %6160 = vmatpush1.bf16.msra.mxu1 %v7840_v37 }
 0x3c2   : > { %6161 = vmatprep.subr.bf16.mxu1 %v7845_v38 }
 0x3c5   : > { %6162 = vmatpush1.bf16.msra.mxu1 %v7843_v40 }
 0x3c6   : > { %6163 = vmatprep.subr.bf16.mxu1 %v7848_v62 }
 0x3c9   : > { %6164 = vmatpush2.bf16.msra.mxu1 %v7846_v42 }
 0x3ca   : > { %6165 = vmatprep.subr.bf16.mxu1 %v7851_v45 }
 0x3cd   : > { %6166 = vmatpush2.bf16.msra.mxu1 %v7849_v43 }
 0x3ce   : > { %6167 = vmatprep.subr.bf16.mxu1 %v7854_v44 }
 0x3d1   : > { %6168 = vmatpush2.bf16.msra.mxu1 %v7852_v46 }
 0x3d2   : > { %6169 = vmatprep.subr.bf16.mxu1 %v7857_v47 }
 0x3d5   : > { %6170 = vmatpush2.bf16.msra.mxu1 %v7855_v7 }
 0x3d6   : > { %6171 = vmatprep.subr.bf16.mxu1 %v7860_v33 }
 0x3d9   : > { %6172 = vmatpush2.bf16.msra.mxu1 %v7858_v50 }
 0x3da   : > { %6173 = vmatprep.subr.bf16.mxu1 %v7863_v53 }
 0x3dd   : > { %6174 = vmatpush2.bf16.msra.mxu1 %v7861_v8 }
 0x3de   : > { %6175 = vmatprep.subr.bf16.mxu1 %v7866_v55 }
 0x3e1   : > { %6176 = vmatpush2.bf16.msra.mxu1 %v7864_v51 }
 0x3e2   : > { %6177 = vmatprep.subr.bf16.mxu1 %v7869_v28 }
 0x3e5   : > { %6178 = vmatpush2.bf16.msra.mxu1 %v7867_v58  ;;  %v5976_v20 = vpop.f32.mrf.mxu0 }
 0x3e7   : > { %v5978_v48 = vpop.f32.mrf.mxu0 }
 0x3e8   : > { %v5935_v18 = vpop.f32.mrf.mxu1  ;;  %6180 = vmatmul.mubr.bf16.vlgmr.msra.gmra.mxu1 %v8576_v2 }
 0x3e9   : > { %v5936_v23 = vadd.f32 %v5935_v18, %v5895_v54  ;;  %v5980_v56 = vpop.f32.mrf.mxu0 }
 0x3ea   : > { %v5937_v14 = vpop.f32.mrf.mxu1 }
 0x3eb   : > { %v5938_v57 = vadd.f32 %v5937_v14, %v5897_v11  ;;  %v5981_v49 = vpop.f32.mrf.mxu0  ;;  %v5977_v29 = vadd.f32 %v5976_v20, %v5936_v23 }
 0x3ec   : > { %v5939_v61 = vpop.f32.mrf.mxu1 }
 0x3ed   : > { %v5979_v41 = vadd.f32 %v5978_v48, %v5938_v57 }
 0x3ee   : > { %v5940_v4 = vpop.f32.mrf.mxu1 }
 0x425   : > { %v6058_v6 = vpop.f32.mrf.mxu0 }
 0x426   : > { %v6059_v63 = vadd.f32 %v6058_v6, %v3765_v15 }
 0x427   : > { %v6060_v9 = vpop.f32.mrf.mxu0 }
 0x428   : > { %v6017_v52 = vpop.f32.mrf.mxu1  ;;  %v6061_v36 = vadd.f32 %v6060_v9, %v3769_v17 }
 0x429   : > { %v6018_v10 = vadd.f32 %v6017_v52, %v5977_v29  ;;  %v6062_v35 = vpop.f32.mrf.mxu0 }
 0x42a   : > { %v6019_v5 = vpop.f32.mrf.mxu1 }
 0x42b   : > { %6190 = vst [vmem:[%s8617_s30 + $0x10] sm:$0xff] %v6018_v10  ;;  %v6020_v2 = vadd.f32 %v6019_v5, %v5979_v41  ;;  %v6063_v12 = vpop.f32.mrf.mxu0 }
 0x42c   : > { %v6021_v13 = vpop.f32.mrf.mxu1 }
 0x42d   : > { %6191 = vst [vmem:[%s8617_s30 + $0x18] sm:$0xff] %v6020_v2 }
 0x42e   : > { %v6022_v60 = vpop.f32.mrf.mxu1 }
 0x465   : > { %v6140_v19 = vpop.f32.mrf.mxu0 }
 0x467   : > { %v6142_v21 = vpop.f32.mrf.mxu0 }
 0x468   : > { %v6099_v16 = vpop.f32.mrf.mxu1 }
 0x469   : > { %v6100_v32 = vadd.f32 %v6099_v16, %v6059_v63  ;;  %v6144_v0 = vpop.f32.mrf.mxu0 }
 0x46a   : > { %v6101_v24 = vpop.f32.mrf.mxu1 }
 0x46b   : > { %v6102_v25 = vadd.f32 %v6101_v24, %v6061_v36  ;;  %v6145_v27 = vpop.f32.mrf.mxu0  ;;  %v6141_v34 = vadd.f32 %v6140_v19, %v6100_v32 }
 0x46c   : > { %v6103_v26 = vpop.f32.mrf.mxu1 }
 0x46d   : > { %v6143_v22 = vadd.f32 %v6142_v21, %v6102_v25 }
 0x46e   : > { %v6104_v39 = vpop.f32.mrf.mxu1 }
 0x4a8   : > { %v6181_v31 = vpop.f32.mrf.mxu1 }
 0x4a9   : > { %v6182_v1 = vadd.f32 %v6181_v31, %v6141_v34 }
 0x4aa   : > { %v6183_v3 = vpop.f32.mrf.mxu1 }
 0x4ab   : > { %6192 = vst [vmem:[%s8617_s30 + $0x20] sm:$0xff] %v6182_v1  ;;  %v6184_v37 = vadd.f32 %v6183_v3, %v6143_v22 }
 0x4ac   : > { %v6185_v38 = vpop.f32.mrf.mxu1 }
 0x4ad   : > { %6193 = vst [vmem:[%s8617_s30 + $0x28] sm:$0xff] %v6184_v37 }
 0x4ae   : > { %v6186_v40 = vpop.f32.mrf.mxu1 }
 0x4af   : > { %8085 = shalt.err (!%p8082_p2)
}
 0x4b0   : > { %s8086_s11 = scalar_lea.hbm %s8645_s17, 768  ;;  %s8090_s13 = scalar_lea.hbm %s8701_s7, 1536 }
 0x4b1   : > { %p8087_p8 = scmp.ne.s32.totalorder %s8645_s17, %s8086_s11  ;;  %p8091_p7 = scmp.lt.s32.totalorder %s8645_s17, %s8701_s7 }
 0x4b2   : > { %p8092_p5 = scmp.lt.s32.totalorder %s8090_s13, %s8086_s11 }
 0x4b3   : > { %p8088_p6 = pnand %p8087_p8, %p8741_p13 }
 0x4b4   : > { %p8093_p4 = por %p8092_p5, %p8091_p7 }
 0x4b5   : > { %p8089_p1 = pneg %p8088_p6 }
 0x4b7   : > { %p8094_p10 = pnand %p8093_p4, %p8089_p1 }
 0x4b9   : > { %8097 = shalt.err (!%p8094_p10)
}
 0x4ba   : > { %7199 = dma.vmem_to_hbm [thread:$0]  (%p8741_p13), %s8647_s20, 768, %s8645_s17, %s6195_s27  }
 0x4bb PF: > { %s8742_s8 = sld [smem:[#allocation20_spill]] }
 0x4bc   : > { %s8743_s22 = sld [smem:[#allocation24_spill]] }
 0x4bd   : > { %s8744_s14 = sld [smem:[#allocation21_spill]] }
 0x4c1   : > { %s6223_s10 = sand.u32 1, %s8742_s8  }
 0x4c2   : > { %p8745_p9 = scmp.ne.s32.totalorder %s8743_s22, 0  ;;  %s6224_s30 = scalar_lea.sflag [#allocation4], %s6223_s10 }
 0x4c3   : > { %p8746_p3 = scmp.ge.s32.totalorder %s8744_s14, 2 }
 0x4c5   : > { %p7225_p11 = pnand %p8746_p3, %p8745_p9 }
 0x4c7   : > { %p7226_p12 = pneg %p7225_p11 }
 0x4c9   : > { %8139 = dma.done.wait (%p7226_p12), %s6224_s30, 768  }
 0x4ca   : > { %8141 = vsyncadd (%p7226_p12), %s6224_s30, 4294966528  ;;  %s28_s29 = sadd.s32 1, %s8744_s14   ;;  %s8747_s16 = sld [smem:[#allocation23_spill]] }
 0x4cb   : > { %p25_p0 = scmp.ge.s32.totalorder %s28_s29, 4   ;;  %s8748_s15 = sld [smem:[#allocation22_spill]] }
 0x4cc   : > { %s8749_s24 = smov %s8148_s25  ;;  %s8750_s25 = smov %s8152_s26 }
 0x4cd   : > { %s8752_s27 = smov %s8160_s28  ;;  %27 = sbr.rel (!%p25_p0) target bundleno = 13 (0xd), region = 133 }
 0x4d0   : > { %s8751_s26 = smov %s8747_s16 }
 0x4d1   : > { %s8753_s28 = smov %s8748_s15 }
 0x4d2   :  { %6229 = vsyncpa [#allocation3], 1 }
 0x4d3   :  { %6231 = vsyncpa [#allocation3 + $0x1], 1 }
 0x4d4   :  { %6232 = vsyncpa [#allocation6], 1 }
 0x4d5   :  { %6234 = vsyncpa [#allocation6 + $0x1], 1 }
 0x4d6   :  { %6235 = vsyncpa [#allocation9], 1 }
 0x4d7   :  { %6236 = vsyncpa [#allocation12], 1 }
 0x4d8   :  { %6237 = vsyncpa [#allocation4], 1 }
 0x4d9   :  { %6239 = vsyncpa [#allocation4 + $0x1], 1 }

</bundles_post_ra>
